<compile_context>
chip_gen: v5e
topology: v5e:2x2
jax: 0.10.0
libtpu: 0.0.40
codegen_flags: <defaults>
</compile_context>

<pallas_src>
import functools

import jax
import jax.numpy as jnp
from jax.experimental import pallas as pl
from jax.experimental.pallas import tpu as pltpu


def _round_up(x, m):
    return (x + m - 1) // m * m


def _video_attnet1_kernel(a_ref, v_ref, w12_ref, b12_ref, wv_ref, bv_ref, o_ref,
                          *, compute_dtype):
    D = wv_ref.shape[1]

    # In-kernel cast (inputs may arrive f32 or bf16); matmul runs on the MXU in bf16.
    audio = a_ref[...].astype(compute_dtype)          # (tb, D)
    video = v_ref[...].astype(compute_dtype)          # (tb, D)

    # Fused audioNet1 | audioNet2: one (tb, D) x (D, 2D) MXU pass, f32 accumulation.
    y12 = jnp.dot(audio, w12_ref[...],
                  preferred_element_type=jnp.float32) + b12_ref[...]
    y_aud = y12[:, :D]      # D % 128 == 0 -> split is (8,128)-tile aligned (no copy)
    x_aud = y12[:, D:]

    # videoNet
    y_vid = jnp.dot(video, wv_ref[...],
                    preferred_element_type=jnp.float32) + bv_ref[...]

    # Elementwise gate, then softmax over the feature dim (PyTorch dim=1). All f32.
    we = y_aud * y_vid
    we_max = jnp.max(we, axis=-1, keepdims=True)
    we_exp = jnp.exp(we - we_max)
    denom = jnp.sum(we_exp, axis=-1, keepdims=True)
    we_sm = we_exp * pl.reciprocal(denom, approx=True)   # EUP slot, ~free

    o_ref[...] = (we_sm * x_aud).astype(o_ref.dtype)


def prepare_params(params, compute_dtype=jnp.bfloat16):
    """One-time weight prep (hoist out of the per-call path): fuse audioNet1 and
    audioNet2 into a single (D, 2D) RHS so the shared audio LHS hits the MXU once,
    and cast weights to the compute dtype (biases stay f32 for f32 accumulation)."""
    w1, b1, wv, bv, w2, b2 = params            # w*: [in, out], b*: [1, out]
    w12 = jnp.concatenate([w1, w2], axis=1).astype(compute_dtype)   # (D, 2D)
    b12 = jnp.concatenate([b1, b2], axis=1).astype(jnp.float32)     # (1, 2D)
    return (w12, b12, wv.astype(compute_dtype), bv.astype(jnp.float32))


def video_attnet1(audio_emb, video_emb, prepared, *, tb=512, out_dtype=None,
                  compute_dtype=jnp.bfloat16):
    """audio_emb: [B, D], video_emb: [B, D]; `prepared` from prepare_params()."""
    B, D = audio_emb.shape
    assert video_emb.shape == (B, D)
    # The fused-RHS split (y12[:, :D] / y12[:, D:]) and partial-last-block masking
    # both rely on D being a lane-tile multiple. Module default D=256 satisfies it.
    assert D % 128 == 0, "dim_aud / dim_video must be a multiple of 128"
    w12, b12, wv_c, bv_c = prepared
    assert w12.shape == (D, 2 * D) and wv_c.shape == (D, D)
    out_dtype = audio_emb.dtype if out_dtype is None else out_dtype

    # Batch tiling. Small B: one block equal to the full batch (block == full dim,
    # so no multiple-of-8 requirement and no partial block). Large B: multiple-of-8
    # tile, grid = cdiv(B, tb); the partial last block (if any) is masked by Pallas.
    # NOTE(v7x): for best balance across the two TensorCores pick tb so the step
    # count is even; correctness never depends on it.
    if B <= tb:
        tb = B
        grid = (1,)
    else:
        tb = max(8, _round_up(tb, 8))
        grid = (pl.cdiv(B, tb),)

    batch_spec = pl.BlockSpec((tb, D), lambda i: (i, 0))

    def const_spec(shape):
        return pl.BlockSpec(shape, lambda i: (0, 0))

    in_bytes = jnp.dtype(audio_emb.dtype).itemsize
    w_bytes = jnp.dtype(compute_dtype).itemsize
    cost = pl.CostEstimate(
        flops=6 * B * D * D,                      # three D x D GEMMs
        transcendentals=B * D,                    # exp in the softmax
        bytes_accessed=(B * D * (2 * in_bytes + jnp.dtype(out_dtype).itemsize)
                        + 3 * D * D * w_bytes),
    )

    return pl.pallas_call(
        functools.partial(_video_attnet1_kernel, compute_dtype=compute_dtype),
        out_shape=jax.ShapeDtypeStruct((B, D), out_dtype),
        grid_spec=pltpu.PrefetchScalarGridSpec(
            num_scalar_prefetch=0,
            grid=grid,
            in_specs=[batch_spec, batch_spec,
                      const_spec((D, 2 * D)), const_spec((1, 2 * D)),
                      const_spec((D, D)), const_spec((1, D))],
            out_specs=batch_spec,
        ),
        compiler_params=pltpu.CompilerParams(
            dimension_semantics=("parallel",)),
        cost_estimate=cost,
    )(audio_emb, video_emb, w12, b12, wv_c, bv_c)


def init_params(key, dim_aud, dim_video, dtype=jnp.float32):
    """PyTorch-Linear-style init: U(-1/sqrt(in), 1/sqrt(in)).
    Weights stored transposed as [in, out] for x @ W."""
    ks = jax.random.split(key, 6)
    bound_a = 1.0 / jnp.sqrt(dim_aud)
    bound_v = 1.0 / jnp.sqrt(dim_video)
    w1 = jax.random.uniform(ks[0], (dim_aud, dim_aud), dtype, -bound_a, bound_a)
    b1 = jax.random.uniform(ks[1], (1, dim_aud), dtype, -bound_a, bound_a)
    wv = jax.random.uniform(ks[2], (dim_video, dim_video), dtype, -bound_v, bound_v)
    bv = jax.random.uniform(ks[3], (1, dim_video), dtype, -bound_v, bound_v)
    w2 = jax.random.uniform(ks[4], (dim_aud, dim_aud), dtype, -bound_a, bound_a)
    b2 = jax.random.uniform(ks[5], (1, dim_aud), dtype, -bound_a, bound_a)
    return (w1, b1, wv, bv, w2, b2)


def video_attnet1_ref(audio_emb, video_emb, params):
    """Pure-JAX f32 reference matching the PyTorch forward."""
    w1, b1, wv, bv, w2, b2 = params
    y_aud = audio_emb @ w1 + b1
    y_vid = video_emb @ wv + bv
    we = jax.nn.softmax(y_aud * y_vid, axis=1)
    x_aud = audio_emb @ w2 + b2
    return we * x_aud


if __name__ == "__main__":
    B = 300               # deliberately not a tile multiple
    dim_aud = 256         # module defaults
    dim_video = 256

    key = jax.random.PRNGKey(0)
    k_a, k_v, k_p = jax.random.split(key, 3)
    audio_emb = jax.random.normal(k_a, (B, dim_aud), jnp.float32)
    video_emb = jax.random.normal(k_v, (B, dim_video), jnp.float32)
    params = init_params(k_p, dim_aud, dim_video)
    prepared = prepare_params(params)          # one-time weight fuse + cast

    ref = video_attnet1_ref(audio_emb, video_emb, params)

    # Path 1: small batch -> single grid step, block == full batch (no padding at all).
    out1 = jax.block_until_ready(video_attnet1(audio_emb, video_emb, prepared))
    # Path 2: multi-step grid with a Pallas-masked partial last block (300 / 128 -> 3).
    out2 = jax.block_until_ready(
        video_attnet1(audio_emb, video_emb, prepared, tb=128))

    assert out1.shape == (B, dim_aud) and out2.shape == (B, dim_aud)
    # bf16 matmuls + approx reciprocal -> relaxed tolerance vs the f32 reference.
    assert jnp.allclose(out1, ref, atol=2e-3, rtol=2e-2), "single-step mismatch"
    assert jnp.allclose(out2, ref, atol=2e-3, rtol=2e-2), "partial-block mismatch"

    print("KERNEL_OK")
</pallas_src>

<mosaic_0001>
module attributes {stable_mosaic.version = 11 : i64} {
  func.func @_video_attnet1_kernel(%arg0: i32, %arg1: memref<300x256xf32, #tpu.memory_space<vmem>>, %arg2: memref<300x256xf32, #tpu.memory_space<vmem>>, %arg3: memref<256x512xbf16, #tpu.memory_space<vmem>>, %arg4: memref<1x512xf32, #tpu.memory_space<vmem>>, %arg5: memref<256x256xbf16, #tpu.memory_space<vmem>>, %arg6: memref<1x256xf32, #tpu.memory_space<vmem>>, %arg7: memref<300x256xf32, #tpu.memory_space<vmem>>) attributes {dimension_semantics = [#tpu.dimension_semantics<parallel>], iteration_bounds = array<i64: 1>, scalar_prefetch = 0 : i64, scratch_operands = 0 : i64, tpu.core_type = #tpu.core_type<tc>, window_params = [{transform_indices = @transform_0, window_bounds = array<i64: 300, 256>}, {transform_indices = @transform_1, window_bounds = array<i64: 300, 256>}, {pipeline_mode = #tpu.pipeline_mode<synchronous>, transform_indices = @transform_2, window_bounds = array<i64: 256, 512>}, {pipeline_mode = #tpu.pipeline_mode<synchronous>, transform_indices = @transform_3, window_bounds = array<i64: 1, 512>}, {pipeline_mode = #tpu.pipeline_mode<synchronous>, transform_indices = @transform_4, window_bounds = array<i64: 256, 256>}, {pipeline_mode = #tpu.pipeline_mode<synchronous>, transform_indices = @transform_5, window_bounds = array<i64: 1, 256>}, {transform_indices = @transform_6, window_bounds = array<i64: 300, 256>}]} {
    %c0 = arith.constant 0 : index
    %c0_0 = arith.constant 0 : index
    %0 = vector.load %arg1[%c0, %c0_0] : memref<300x256xf32, #tpu.memory_space<vmem>>, vector<300x256xf32>
    %1 = arith.truncf %0 : vector<300x256xf32> to vector<300x256xbf16>
    %c0_1 = arith.constant 0 : index
    %c0_2 = arith.constant 0 : index
    %2 = vector.load %arg2[%c0_1, %c0_2] : memref<300x256xf32, #tpu.memory_space<vmem>>, vector<300x256xf32>
    %3 = arith.truncf %2 : vector<300x256xf32> to vector<300x256xbf16>
    %c0_3 = arith.constant 0 : index
    %c0_4 = arith.constant 0 : index
    %4 = vector.load %arg3[%c0_3, %c0_4] : memref<256x512xbf16, #tpu.memory_space<vmem>>, vector<256x512xbf16>
    %cst = arith.constant dense<0.000000e+00> : vector<300x512xf32>
    %5 = tpu.matmul %1, %4, %cst {dimension_numbers = #tpu.dot_dimension_numbers<[1], [0], [0], [1], [0, 0, 1, 1], [], []>} : vector<300x256xbf16>, vector<256x512xbf16>, vector<300x512xf32> -> vector<300x512xf32>
    %c0_5 = arith.constant 0 : index
    %c0_6 = arith.constant 0 : index
    %6 = vector.load %arg4[%c0_5, %c0_6] : memref<1x512xf32, #tpu.memory_space<vmem>>, vector<1x512xf32>
    %7 = vector.broadcast %6 : vector<1x512xf32> to vector<300x512xf32>
    %8 = arith.addf %5, %7 : vector<300x512xf32>
    %9 = vector.extract_strided_slice %8 {offsets = [0, 0], sizes = [300, 256], strides = [1, 1]} : vector<300x512xf32> to vector<300x256xf32>
    %10 = vector.extract_strided_slice %8 {offsets = [0, 256], sizes = [300, 256], strides = [1, 1]} : vector<300x512xf32> to vector<300x256xf32>
    %c0_7 = arith.constant 0 : index
    %c0_8 = arith.constant 0 : index
    %11 = vector.load %arg5[%c0_7, %c0_8] : memref<256x256xbf16, #tpu.memory_space<vmem>>, vector<256x256xbf16>
    %cst_9 = arith.constant dense<0.000000e+00> : vector<300x256xf32>
    %12 = tpu.matmul %3, %11, %cst_9 {dimension_numbers = #tpu.dot_dimension_numbers<[1], [0], [0], [1], [0, 0, 1, 1], [], []>} : vector<300x256xbf16>, vector<256x256xbf16>, vector<300x256xf32> -> vector<300x256xf32>
    %c0_10 = arith.constant 0 : index
    %c0_11 = arith.constant 0 : index
    %13 = vector.load %arg6[%c0_10, %c0_11] : memref<1x256xf32, #tpu.memory_space<vmem>>, vector<1x256xf32>
    %14 = vector.broadcast %13 : vector<1x256xf32> to vector<300x256xf32>
    %15 = arith.addf %12, %14 : vector<300x256xf32>
    %16 = arith.mulf %9, %15 : vector<300x256xf32>
    %cst_12 = arith.constant dense<0xFF800000> : vector<300xf32>
    %17 = vector.multi_reduction <maximumf>, %16, %cst_12 [1] : vector<300x256xf32> to vector<300xf32>
    %18 = vector.shape_cast %17 : vector<300xf32> to vector<300x1xf32>
    %19 = vector.broadcast %18 : vector<300x1xf32> to vector<300x256xf32>
    %20 = arith.subf %16, %19 : vector<300x256xf32>
    %21 = math.exp %20 : vector<300x256xf32>
    %cst_13 = arith.constant dense<0.000000e+00> : vector<300xf32>
    %22 = vector.multi_reduction <add>, %21, %cst_13 [1] : vector<300x256xf32> to vector<300xf32>
    %23 = vector.shape_cast %22 : vector<300xf32> to vector<300x1xf32>
    %24 = tpu.reciprocal %23 {approx = true} : vector<300x1xf32> -> vector<300x1xf32>
    %25 = vector.broadcast %24 : vector<300x1xf32> to vector<300x256xf32>
    %26 = arith.mulf %21, %25 : vector<300x256xf32>
    %27 = arith.mulf %26, %10 : vector<300x256xf32>
    %c0_14 = arith.constant 0 : index
    %c0_15 = arith.constant 0 : index
    %28 = vector.load %arg7[%c0_14, %c0_15] : memref<300x256xf32, #tpu.memory_space<vmem>>, vector<300x256xf32>
    tpu.vector_store %arg7[%c0_14, %c0_15], %27 {strides = array<i32>} : memref<300x256xf32, #tpu.memory_space<vmem>>, vector<300x256xf32>,
    return
  }
  func.func @transform_0(%arg0: i32) -> (i32, i32) {
    %c0_i32 = arith.constant 0 : i32
    %c0_i32_0 = arith.constant 0 : i32
    return %arg0, %c0_i32 : i32, i32
  }
  func.func @transform_1(%arg0: i32) -> (i32, i32) {
    %c0_i32 = arith.constant 0 : i32
    %c0_i32_0 = arith.constant 0 : i32
    return %arg0, %c0_i32 : i32, i32
  }
  func.func @transform_2(%arg0: i32) -> (i32, i32) {
    %c0_i32 = arith.constant 0 : i32
    %c0_i32_0 = arith.constant 0 : i32
    %c0_i32_1 = arith.constant 0 : i32
    return %c0_i32, %c0_i32_0 : i32, i32
  }
  func.func @transform_3(%arg0: i32) -> (i32, i32) {
    %c0_i32 = arith.constant 0 : i32
    %c0_i32_0 = arith.constant 0 : i32
    %c0_i32_1 = arith.constant 0 : i32
    return %c0_i32, %c0_i32_0 : i32, i32
  }
  func.func @transform_4(%arg0: i32) -> (i32, i32) {
    %c0_i32 = arith.constant 0 : i32
    %c0_i32_0 = arith.constant 0 : i32
    %c0_i32_1 = arith.constant 0 : i32
    return %c0_i32, %c0_i32_0 : i32, i32
  }
  func.func @transform_5(%arg0: i32) -> (i32, i32) {
    %c0_i32 = arith.constant 0 : i32
    %c0_i32_0 = arith.constant 0 : i32
    %c0_i32_1 = arith.constant 0 : i32
    return %c0_i32, %c0_i32_0 : i32, i32
  }
  func.func @transform_6(%arg0: i32) -> (i32, i32) {
    %c0_i32 = arith.constant 0 : i32
    %c0_i32_0 = arith.constant 0 : i32
    return %arg0, %c0_i32 : i32, i32
  }
}

</mosaic_0001>

<bundles_post_ra>
// kernel: tpu_custom_call.1
= control target key start
LH: loop header
LB: loop body
LE: loop exit
PB: predicated region body
PF: predicated region fallthrough
CT: control target
= control target key end

     0   :  { %11 = vsyncpa [#allocation3], 0  ;;  %s5481_s0 = inlined_call_operand.hbm [shape: f32[300,256], index: 0, kind: input, shape index: {}]   ;;  %s5482_s1 = inlined_call_operand.hbm [shape: f32[300,256], index: 1, kind: input, shape index: {}]   ;;  %s5483_s2 = inlined_call_operand.hbm [shape: bf16[256,512], index: 2, kind: input, shape index: {}]   ;;  %s5484_s3 = inlined_call_operand.hbm [shape: f32[1,512], index: 3, kind: input, shape index: {}]   ;;  %s5485_s4 = inlined_call_operand.hbm [shape: bf16[256,256], index: 4, kind: input, shape index: {}]   ;;  %s5486_s5 = inlined_call_operand.vmem [shape: f32[1,256], index: 5, kind: input, shape index: {}]   ;;  %s5487_s6 = inlined_call_operand.hbm [shape: f32[300,256], index: 6, kind: output, shape index: {}]  }
   0x1   :  { %12 = vsyncpa [#allocation6], 0 }
   0x2   :  { %13 = vsyncpa [#allocation9], 0 }
   0x3   :  { %14 = vsyncpa [#allocation4], 0  ;;  %s32_s23 = sshll.u32 %s5482_s1, 4  ;;  %s3863_s24 = smov [#allocation5]   ;;  %s33_s23 = int_to_ptr.hbm [resolvable:$true] %s32_s23 }
   0x4   :  { %s34_s25 = sshll.u32 %s3863_s24, 4  ;;  %s59_s28 = sshll.u32 %s5484_s3, 4  ;;  %s35_s25 = int_to_ptr.vmem [resolvable:$true] %s34_s25  ;;  %s60_s28 = int_to_ptr.hbm [resolvable:$true] %s59_s28 }
   0x5   :  { %s3864_s29 = smov 256   ;;  %s3865_s30 = smov 16  }
   0x6   :  { %40 = dma.hbm_to_vmem [thread:$0]  %s33_s23, 9728, %s35_s25, [#allocation6], %s3864_s29, %s3864_s29, %s3865_s30  }
   0x7   :  { %s3866_s7 = smov [#allocation8]   ;;  %s19_s1 = sshll.u32 %s5481_s0, 4  ;;  %s20_s1 = int_to_ptr.hbm [resolvable:$true] %s19_s1 }
   0x8   :  { %s61_s8 = sshll.u32 %s3866_s7, 4  ;;  %s45_s3 = sshll.u32 %s5483_s2, 4  ;;  %s62_s8 = int_to_ptr.vmem [resolvable:$true] %s61_s8  ;;  %s46_s3 = int_to_ptr.hbm [resolvable:$true] %s45_s3 }
   0x9   :  { %64 = dma.hbm_to_vmem [thread:$0]  %s60_s28, 64, %s62_s8, [#allocation9]  }
   0xa   :  { %s3867_s13 = smov [#allocation2]   ;;  %s3868_s15 = smov [#allocation7]  }
   0xb   :  { %s21_s14 = sshll.u32 %s3867_s13, 4  ;;  %s47_s16 = sshll.u32 %s3868_s15, 4  ;;  %s22_s14 = int_to_ptr.vmem [resolvable:$true] %s21_s14  ;;  %s48_s16 = int_to_ptr.vmem [resolvable:$true] %s47_s16 }
   0xc   :  { %27 = dma.hbm_to_vmem [thread:$0]  %s20_s1, 9728, %s22_s14, [#allocation3], %s3864_s29, %s3864_s29, %s3865_s30  }
   0xd   :  { %s69_s0 = sshll.u32 %s5485_s4, 4  ;;  %s3869_s2 = smov [#allocation10]   ;;  %s70_s0 = int_to_ptr.hbm [resolvable:$true] %s69_s0 }
   0xe   :  { %53 = dma.hbm_to_vmem [thread:$0]  %s46_s3, 8192, %s48_s16, [#allocation6], %s3864_s29, %s3864_s29, %s3865_s30  }
   0xf   :  { %s71_s19 = sshll.u32 %s3869_s2, 4  ;;  %s3870_s20 = smov 128   ;;  %s72_s19 = int_to_ptr.vmem [resolvable:$true] %s71_s19 }
  0x10   :  { %s3871_s21 = smov 8  }
  0x11   :  { %77 = dma.hbm_to_vmem [thread:$0]  %s70_s0, 4096, %s72_s19, [#allocation9], %s3870_s20, %s3870_s20, %s3871_s21  }
  0x12   :  { %3855 = dma.done.wait [#allocation3], 9728  }
  0x13   :  { %3856 = vsyncadd [#allocation3], 4294957568 }
  0x14   :  { %3857 = dma.done.wait [#allocation6], 17920  }
  0x15   :  { %3858 = vsyncadd [#allocation6], 4294949376 }
  0x16   :  { %3859 = dma.done.wait [#allocation9], 4160  }
  0x17   :  { %3860 = vsyncadd [#allocation9], 4294963136  ;;  %v3106_v0 = vld [vmem:[#allocation7 + $0xe0] sm:$0xf]  ;;  %v3406_v1 = vld [vmem:[#allocation7 + $0xec] sm:$0xf0] }
  0x18   :  { %v3234_v2 = vld [vmem:[#allocation7 + $0x1e0] sm:$0xf]  ;;  %v3107_v3 = vor.u32 %v3406_v1, %v3106_v0  ;;  %v3438_v4 = vld [vmem:[#allocation7 + $0x1ec] sm:$0xf0]  ;;  %v3404_v5 = vld [vmem:[#allocation7 + $0xe4] sm:$0xf] }
  0x19   :  { %v3108_v6 = vld [vmem:[#allocation7 + $0xf0] sm:$0xf0]  ;;  %v3235_v7 = vor.u32 %v3438_v4, %v3234_v2  ;;  %v3436_v9 = vld [vmem:[#allocation7 + $0x1e4] sm:$0xf]  ;;  %v3090_v11 = vld [vmem:[#allocation7 + $0xc0] sm:$0xf] }
  0x1a   :  { %v3111_v8 = vor.u32 %v3404_v5, %v3108_v6  ;;  %v3236_v10 = vld [vmem:[#allocation7 + $0x1f0] sm:$0xf0]  ;;  %722 = vmatpush.bf16.msra.mxu0 %v3107_v3  ;;  %v3402_v13 = vld [vmem:[#allocation7 + $0xcc] sm:$0xf0]  ;;  %v3218_v14 = vld [vmem:[#allocation7 + $0x1c0] sm:$0xf] }
  0x1b   :  { %v3239_v12 = vor.u32 %v3436_v9, %v3236_v10  ;;  %v3434_v15 = vld [vmem:[#allocation7 + $0x1cc] sm:$0xf0]  ;;  %826 = vmatpush.bf16.msra.mxu1 %v3235_v7  ;;  %v3091_v16 = vor.u32 %v3402_v13, %v3090_v11  ;;  %v3400_v18 = vld [vmem:[#allocation7 + $0xc4] sm:$0xf]  ;;  %v3092_v19 = vld [vmem:[#allocation7 + $0xd0] sm:$0xf0] }
  0x1c   :  { %930 = vmatpush.bf16.msra.mxu2 %v3111_v8  ;;  %v3219_v17 = vor.u32 %v3434_v15, %v3218_v14  ;;  %v3432_v20 = vld [vmem:[#allocation7 + $0x1c4] sm:$0xf]  ;;  %v3095_v21 = vor.u32 %v3400_v18, %v3092_v19  ;;  %v3220_v22 = vld [vmem:[#allocation7 + $0x1d0] sm:$0xf0]  ;;  %v3074_v23 = vld [vmem:[#allocation7 + $0xa0] sm:$0xf] }
  0x1d   :  { %1034 = vmatpush.bf16.msra.mxu3 %v3239_v12  ;;  %v3398_v24 = vld [vmem:[#allocation7 + $0xac] sm:$0xf0]  ;;  %v3223_v25 = vor.u32 %v3432_v20, %v3220_v22  ;;  %v3202_v26 = vld [vmem:[#allocation7 + $0x1a0] sm:$0xf]  ;;  %v3396_v28 = vld [vmem:[#allocation7 + $0xa4] sm:$0xf] }
  0x1e   :  { %v3430_v27 = vld [vmem:[#allocation7 + $0x1ac] sm:$0xf0]  ;;  %723 = vmatpush.bf16.msra.mxu0 %v3091_v16  ;;  %v3075_v29 = vor.u32 %v3398_v24, %v3074_v23  ;;  %v3076_v30 = vld [vmem:[#allocation7 + $0xb0] sm:$0xf0]  ;;  %v3428_v31 = vld [vmem:[#allocation7 + $0x1a4] sm:$0xf] }
  0x1f   :  { %v3204_v32 = vld [vmem:[#allocation7 + $0x1b0] sm:$0xf0]  ;;  %827 = vmatpush.bf16.msra.mxu1 %v3219_v17  ;;  %v3203_v33 = vor.u32 %v3430_v27, %v3202_v26  ;;  %v3079_v34 = vor.u32 %v3396_v28, %v3076_v30  ;;  %v3058_v35 = vld [vmem:[#allocation7 + $0x80] sm:$0xf]  ;;  %v3394_v36 = vld [vmem:[#allocation7 + $0x8c] sm:$0xf0] }
  0x20   :  { %931 = vmatpush.bf16.msra.mxu2 %v3095_v21  ;;  %v3186_v37 = vld [vmem:[#allocation7 + $0x180] sm:$0xf]  ;;  %v3207_v38 = vor.u32 %v3428_v31, %v3204_v32  ;;  %v3426_v39 = vld [vmem:[#allocation7 + $0x18c] sm:$0xf0]  ;;  %v3392_v40 = vld [vmem:[#allocation7 + $0x84] sm:$0xf]  ;;  %v3059_v44 = vor.u32 %v3394_v36, %v3058_v35 }
  0x21   :  { %1035 = vmatpush.bf16.msra.mxu3 %v3223_v25  ;;  %v3060_v41 = vld [vmem:[#allocation7 + $0x90] sm:$0xf0]  ;;  %v3424_v42 = vld [vmem:[#allocation7 + $0x184] sm:$0xf]  ;;  %v3187_v45 = vor.u32 %v3426_v39, %v3186_v37  ;;  %v3042_v47 = vld [vmem:[#allocation7 + $0x60] sm:$0xf] }
  0x22   :  { %v3188_v43 = vld [vmem:[#allocation7 + $0x190] sm:$0xf0]  ;;  %724 = vmatpush.bf16.msra.mxu0 %v3075_v29  ;;  %v3063_v46 = vor.u32 %v3392_v40, %v3060_v41  ;;  %v3390_v48 = vld [vmem:[#allocation7 + $0x6c] sm:$0xf0]  ;;  %v3170_v49 = vld [vmem:[#allocation7 + $0x160] sm:$0xf] }
  0x23   :  { %828 = vmatpush.bf16.msra.mxu1 %v3203_v33  ;;  %v3191_v50 = vor.u32 %v3424_v42, %v3188_v43  ;;  %v3422_v51 = vld [vmem:[#allocation7 + $0x16c] sm:$0xf0]  ;;  %v3388_v52 = vld [vmem:[#allocation7 + $0x64] sm:$0xf]  ;;  %v3044_v53 = vld [vmem:[#allocation7 + $0x70] sm:$0xf0]  ;;  %v3043_v56 = vor.u32 %v3390_v48, %v3042_v47 }
  0x24   :  { %932 = vmatpush.bf16.msra.mxu2 %v3079_v34  ;;  %v3420_v54 = vld [vmem:[#allocation7 + $0x164] sm:$0xf]  ;;  %v3172_v55 = vld [vmem:[#allocation7 + $0x170] sm:$0xf0]  ;;  %v3171_v57 = vor.u32 %v3422_v51, %v3170_v49  ;;  %v3047_v58 = vor.u32 %v3388_v52, %v3044_v53  ;;  %v3026_v59 = vld [vmem:[#allocation7 + $0x40] sm:$0xf] }
  0x25   :  { %1036 = vmatpush.bf16.msra.mxu3 %v3207_v38  ;;  %v3386_v60 = vld [vmem:[#allocation7 + $0x4c] sm:$0xf0]  ;;  %v3154_v61 = vld [vmem:[#allocation7 + $0x140] sm:$0xf]  ;;  %v3175_v62 = vor.u32 %v3420_v54, %v3172_v55  ;;  %v3384_v0 = vld [vmem:[#allocation7 + $0x44] sm:$0xf] }
  0x26   :  { %725 = vmatpush.bf16.msra.mxu0 %v3059_v44  ;;  %v3418_v63 = vld [vmem:[#allocation7 + $0x14c] sm:$0xf0]  ;;  %v3028_v1 = vld [vmem:[#allocation7 + $0x50] sm:$0xf0]  ;;  %v3416_v2 = vld [vmem:[#allocation7 + $0x144] sm:$0xf]  ;;  %v3027_v4 = vor.u32 %v3386_v60, %v3026_v59 }
  0x27   :  { %829 = vmatpush.bf16.msra.mxu1 %v3187_v45  ;;  %v3156_v3 = vld [vmem:[#allocation7 + $0x150] sm:$0xf0]  ;;  %v3155_v5 = vor.u32 %v3418_v63, %v3154_v61  ;;  %v3031_v6 = vor.u32 %v3384_v0, %v3028_v1  ;;  %v3010_v7 = vld [vmem:[#allocation7 + $0x20] sm:$0xf]  ;;  %v3382_v8 = vld [vmem:[#allocation7 + $0x2c] sm:$0xf0] }
  0x28   :  { %933 = vmatpush.bf16.msra.mxu2 %v3063_v46  ;;  %v3138_v9 = vld [vmem:[#allocation7 + $0x120] sm:$0xf]  ;;  %v3159_v10 = vor.u32 %v3416_v2, %v3156_v3  ;;  %v3414_v11 = vld [vmem:[#allocation7 + $0x12c] sm:$0xf0]  ;;  %v3380_v12 = vld [vmem:[#allocation7 + $0x24] sm:$0xf]  ;;  %v3011_v16 = vor.u32 %v3382_v8, %v3010_v7 }
  0x29   :  { %1037 = vmatpush.bf16.msra.mxu3 %v3191_v50  ;;  %v3012_v13 = vld [vmem:[#allocation7 + $0x30] sm:$0xf0]  ;;  %v3412_v14 = vld [vmem:[#allocation7 + $0x124] sm:$0xf]  ;;  %v2994_v17 = vld [vmem:[#allocation7] sm:$0xf]  ;;  %v3139_v19 = vor.u32 %v3414_v11, %v3138_v9 }
  0x2a   :  { %726 = vmatpush.bf16.msra.mxu0 %v3043_v56  ;;  %v3140_v15 = vld [vmem:[#allocation7 + $0x130] sm:$0xf0]  ;;  %v3378_v18 = vld [vmem:[#allocation7 + $0xc] sm:$0xf0]  ;;  %v3015_v20 = vor.u32 %v3380_v12, %v3012_v13  ;;  %v3122_v21 = vld [vmem:[#allocation7 + $0x100] sm:$0xf] }
  0x2b   :  { %830 = vmatpush.bf16.msra.mxu1 %v3171_v57  ;;  %v3410_v22 = vld [vmem:[#allocation7 + $0x10c] sm:$0xf0]  ;;  %v3376_v23 = vld [vmem:[#allocation7 + $0x4] sm:$0xf]  ;;  %v3143_v24 = vor.u32 %v3412_v14, %v3140_v15  ;;  %v2996_v25 = vld [vmem:[#allocation7 + $0x10] sm:$0xf0]  ;;  %v2995_v31 = vor.u32 %v3378_v18, %v2994_v17 }
  0x2c   :  { %934 = vmatpush.bf16.msra.mxu2 %v3047_v58  ;;  %v3408_v26 = vld [vmem:[#allocation7 + $0x104] sm:$0xf]  ;;  %v3124_v27 = vld [vmem:[#allocation7 + $0x110] sm:$0xf0]  ;;  %v3405_v29 = vld [vmem:[#allocation7 + $0xec] sm:$0xf]  ;;  %v3123_v35 = vor.u32 %v3410_v22, %v3122_v21  ;;  %v2999_v36 = vor.u32 %v3376_v23, %v2996_v25 }
  0x2d   :  { %1038 = vmatpush.bf16.msra.mxu3 %v3175_v62  ;;  %v100_v28 = vld [vmem:[#allocation2] sm:$0xff]  ;;  %v3116_v30 = vld [vmem:[#allocation7 + $0xf8] sm:$0xf0]  ;;  %v102_v32 = vld [vmem:[#allocation2 + $0x10] sm:$0xff]  ;;  %v3127_v39 = vor.u32 %v3408_v26, %v3124_v27  ;;  %vm2355_vm0 = vcmask 1043456   ;;  %s2977_s26 = sshll.u32 %s5487_s6, 4  ;;  %s2978_s26 = int_to_ptr.hbm [resolvable:$true] %s2977_s26 }
  0x2e   :  { %727 = vmatpush.bf16.msra.mxu0 %v3027_v4  ;;  %v3437_v33 = vld [vmem:[#allocation7 + $0x1ec] sm:$0xf]  ;;  %v3244_v34 = vld [vmem:[#allocation7 + $0x1f8] sm:$0xf0]  ;;  %v3119_v40 = vor.u32 %v3405_v29, %v3116_v30  ;;  %v3114_v41 = vld [vmem:[#allocation7 + $0xe8] sm:$0xf]  ;;  %v3932_v43 = vpack.c.bf16 %v102_v32, %v100_v28 }
  0x2f   :  { %831 = vmatpush.bf16.msra.mxu1 %v3155_v5  ;;  %v101_v37 = vld [vmem:[#allocation2 + $0x8] sm:$0xff]  ;;  %v103_v38 = vld [vmem:[#allocation2 + $0x18] sm:$0xff]  ;;  %v3247_v44 = vor.u32 %v3437_v33, %v3244_v34  ;;  %v104_v62 = vld [vmem:[#allocation2 + $0x20] sm:$0xff] }
  0x30   :  { %935 = vmatpush.bf16.msra.mxu2 %v3031_v6  ;;  %v3407_v42 = vld [vmem:[#allocation7 + $0xf4] sm:$0xf0]  ;;  %v3242_v45 = vld [vmem:[#allocation7 + $0x1e8] sm:$0xf]  ;;  %v3934_v47 = vpack.c.bf16 %v103_v38, %v101_v37  ;;  %v3401_v50 = vld [vmem:[#allocation7 + $0xcc] sm:$0xf] }
  0x31   :  { %1039 = vmatpush.bf16.msra.mxu3 %v3159_v10  ;;  %v3439_v46 = vld [vmem:[#allocation7 + $0x1f4] sm:$0xf0]  ;;  %v3115_v48 = vor.u32 %v3407_v42, %v3114_v41  ;;  %v3100_v51 = vld [vmem:[#allocation7 + $0xd8] sm:$0xf0]  ;;  %v3433_v52 = vld [vmem:[#allocation7 + $0x1cc] sm:$0xf] }
  0x32   :  { %728 = vmatpush.bf16.msra.mxu0 %v3011_v16  ;;  %v3243_v49 = vor.u32 %v3439_v46, %v3242_v45  ;;  %v3103_v53 = vor.u32 %v3401_v50, %v3100_v51  ;;  %v3228_v54 = vld [vmem:[#allocation7 + $0x1d8] sm:$0xf0]  ;;  %v3098_v55 = vld [vmem:[#allocation7 + $0xc8] sm:$0xf]  ;;  %v3403_v56 = vld [vmem:[#allocation7 + $0xd4] sm:$0xf0] }
  0x33   :  { %832 = vmatpush.bf16.msra.mxu1 %v3139_v19  ;;  %v3231_v57 = vor.u32 %v3433_v52, %v3228_v54  ;;  %v3099_v58 = vor.u32 %v3403_v56, %v3098_v55  ;;  %v3226_v59 = vld [vmem:[#allocation7 + $0x1c8] sm:$0xf]  ;;  %v3435_v60 = vld [vmem:[#allocation7 + $0x1d4] sm:$0xf0]  ;;  %v106_v63 = vld [vmem:[#allocation2 + $0x30] sm:$0xff] }
  0x34   :  { %936 = vmatpush.bf16.msra.mxu2 %v3015_v20  ;;  %v3227_v61 = vor.u32 %v3435_v60, %v3226_v59  ;;  %v105_v0 = vld [vmem:[#allocation2 + $0x28] sm:$0xff]  ;;  %v107_v1 = vld [vmem:[#allocation2 + $0x38] sm:$0xff]  ;;  %v3940_v2 = vpack.c.bf16 %v106_v63, %v104_v62  ;;  %v108_v4 = vld [vmem:[#allocation2 + $0x40] sm:$0xff] }
  0x35   :  { %1040 = vmatpush.bf16.msra.mxu3 %v3143_v24  ;;  %v3942_v3 = vpack.c.bf16 %v107_v1, %v105_v0  ;;  %v110_v5 = vld [vmem:[#allocation2 + $0x50] sm:$0xff]  ;;  %v109_v6 = vld [vmem:[#allocation2 + $0x48] sm:$0xff]  ;;  %v111_v7 = vld [vmem:[#allocation2 + $0x58] sm:$0xff] }
  0x36   :  { %729 = vmatpush.bf16.msra.mxu0 %v2995_v31  ;;  %v3948_v8 = vpack.c.bf16 %v110_v5, %v108_v4  ;;  %v3950_v9 = vpack.c.bf16 %v111_v7, %v109_v6  ;;  %v3397_v10 = vld [vmem:[#allocation7 + $0xac] sm:$0xf]  ;;  %v3084_v11 = vld [vmem:[#allocation7 + $0xb8] sm:$0xf0]  ;;  %v112_v16 = vld [vmem:[#allocation2 + $0x60] sm:$0xff] }
  0x37   :  { %833 = vmatpush.bf16.msra.mxu1 %v3123_v35  ;;  %v3429_v12 = vld [vmem:[#allocation7 + $0x1ac] sm:$0xf]  ;;  %v3087_v13 = vor.u32 %v3397_v10, %v3084_v11  ;;  %v3212_v14 = vld [vmem:[#allocation7 + $0x1b8] sm:$0xf0]  ;;  %v114_v17 = vld [vmem:[#allocation2 + $0x70] sm:$0xff] }
  0x38   :  { %937 = vmatpush.bf16.msra.mxu2 %v2999_v36  ;;  %v3215_v15 = vor.u32 %v3429_v12, %v3212_v14  ;;  %v113_v18 = vld [vmem:[#allocation2 + $0x68] sm:$0xff]  ;;  %v115_v19 = vld [vmem:[#allocation2 + $0x78] sm:$0xff]  ;;  %v3956_v20 = vpack.c.bf16 %v114_v17, %v112_v16  ;;  %v116_v28 = vld [vmem:[#allocation2 + $0x80] sm:$0xff] }
  0x39   :  { %1041 = vmatpush.bf16.msra.mxu3 %v3127_v39  ;;  %730 = vmatmul.bf16.vlgmr.msra.gmra.mxu0 %v3932_v43  ;;  %v3958_v21 = vpack.c.bf16 %v115_v19, %v113_v18  ;;  %v3082_v22 = vld [vmem:[#allocation7 + $0xa8] sm:$0xf]  ;;  %v3399_v23 = vld [vmem:[#allocation7 + $0xb4] sm:$0xf0]  ;;  %v118_v29 = vld [vmem:[#allocation2 + $0x90] sm:$0xff] }
  0x3a   :  { %834 = vmatmul.bf16.vlgmr.msra.gmra.mxu1 %v3934_v47  ;;  %1138 = vmatpush.bf16.msrb.mxu0 %v3115_v48  ;;  %v3210_v24 = vld [vmem:[#allocation7 + $0x1a8] sm:$0xf]  ;;  %v3083_v25 = vor.u32 %v3399_v23, %v3082_v22  ;;  %v3431_v26 = vld [vmem:[#allocation7 + $0x1b4] sm:$0xf0]  ;;  %v3964_v32 = vpack.c.bf16 %v118_v29, %v116_v28  ;;  %v120_v34 = vld [vmem:[#allocation2 + $0xa0] sm:$0xff] }
  0x3b   :  { %938 = vmatmul.bf16.vlgmr.msra.gmra.mxu2 %v3932_v43  ;;  %1242 = vmatpush.bf16.msrb.mxu1 %v3243_v49  ;;  %v3211_v27 = vor.u32 %v3431_v26, %v3210_v24  ;;  %v117_v30 = vld [vmem:[#allocation2 + $0x88] sm:$0xff]  ;;  %v119_v31 = vld [vmem:[#allocation2 + $0x98] sm:$0xff]  ;;  %v122_v35 = vld [vmem:[#allocation2 + $0xb0] sm:$0xff] }
  0x3c   :  { %1346 = vmatpush.bf16.msrb.mxu2 %v3119_v40  ;;  %1042 = vmatmul.bf16.vlgmr.msra.gmra.mxu3 %v3934_v47  ;;  %v3966_v33 = vpack.c.bf16 %v119_v31, %v117_v30  ;;  %v121_v36 = vld [vmem:[#allocation2 + $0xa8] sm:$0xff]  ;;  %v123_v37 = vld [vmem:[#allocation2 + $0xb8] sm:$0xff]  ;;  %v3972_v38 = vpack.c.bf16 %v122_v35, %v120_v34  ;;  %v124_v54 = vld [vmem:[#allocation2 + $0xc0] sm:$0xff] }
  0x3d   :  { %1450 = vmatpush.bf16.msrb.mxu3 %v3247_v44  ;;  %v3974_v39 = vpack.c.bf16 %v123_v37, %v121_v36  ;;  %v3393_v40 = vld [vmem:[#allocation7 + $0x8c] sm:$0xf]  ;;  %v3068_v41 = vld [vmem:[#allocation7 + $0x98] sm:$0xf0]  ;;  %v3066_v46 = vld [vmem:[#allocation7 + $0x88] sm:$0xf] }
  0x3e   :  { %1139 = vmatpush.bf16.msrb.mxu0 %v3099_v58  ;;  %v3425_v42 = vld [vmem:[#allocation7 + $0x18c] sm:$0xf]  ;;  %v3071_v44 = vor.u32 %v3393_v40, %v3068_v41  ;;  %v3196_v45 = vld [vmem:[#allocation7 + $0x198] sm:$0xf0]  ;;  %v3395_v48 = vld [vmem:[#allocation7 + $0x94] sm:$0xf0] }
  0x3f   :  { %1243 = vmatpush.bf16.msrb.mxu1 %v3227_v61  ;;  %v3199_v49 = vor.u32 %v3425_v42, %v3196_v45  ;;  %v3067_v50 = vor.u32 %v3395_v48, %v3066_v46  ;;  %v3194_v51 = vld [vmem:[#allocation7 + $0x188] sm:$0xf]  ;;  %v3427_v52 = vld [vmem:[#allocation7 + $0x194] sm:$0xf0]  ;;  %v126_v55 = vld [vmem:[#allocation2 + $0xd0] sm:$0xff] }
  0x40   :  { %1347 = vmatpush.bf16.msrb.mxu2 %v3103_v53  ;;  %v3195_v53 = vor.u32 %v3427_v52, %v3194_v51  ;;  %v125_v56 = vld [vmem:[#allocation2 + $0xc8] sm:$0xff]  ;;  %v3980_v58 = vpack.c.bf16 %v126_v55, %v124_v54  ;;  %v128_v60 = vld [vmem:[#allocation2 + $0xe0] sm:$0xff]  ;;  %v130_v61 = vld [vmem:[#allocation2 + $0xf0] sm:$0xff] }
  0x41   :  { %1451 = vmatpush.bf16.msrb.mxu3 %v3231_v57  ;;  %v127_v57 = vld [vmem:[#allocation2 + $0xd8] sm:$0xff]  ;;  %v129_v62 = vld [vmem:[#allocation2 + $0xe8] sm:$0xff]  ;;  %v3988_v0 = vpack.c.bf16 %v130_v61, %v128_v60  ;;  %v392_v4 = vld [vmem:[#allocation8] sm:$0xf] }
  0x42   :  { %1140 = vmatpush.bf16.msrb.mxu0 %v3083_v25  ;;  %v3982_v59 = vpack.c.bf16 %v127_v57, %v125_v56  ;;  %v131_v63 = vld [vmem:[#allocation2 + $0xf8] sm:$0xff]  ;;  %v3389_v5 = vld [vmem:[#allocation7 + $0x6c] sm:$0xf]  ;;  %v132_v10 = vld [vmem:[#allocation2 + $0x100] sm:$0xff]  ;;  %v3996_v14 = vperm.slane %v392_v4, 0  ;;  %v4008_v28 = vperm.slane %v392_v4, 1 }
  0x43   :  { %1244 = vmatpush.bf16.msrb.mxu1 %v3211_v27  ;;  %v3990_v1 = vpack.c.bf16 %v131_v63, %v129_v62  ;;  %v3052_v6 = vld [vmem:[#allocation7 + $0x78] sm:$0xf0]  ;;  %v3421_v7 = vld [vmem:[#allocation7 + $0x16c] sm:$0xf]  ;;  %v134_v11 = vld [vmem:[#allocation2 + $0x110] sm:$0xff] }
  0x44   :  { %1348 = vmatpush.bf16.msrb.mxu2 %v3087_v13  ;;  %v3055_v12 = vor.u32 %v3389_v5, %v3052_v6  ;;  %v3180_v13 = vld [vmem:[#allocation7 + $0x178] sm:$0xf0]  ;;  %v3998_v18 = vpack.c.bf16 %v134_v11, %v132_v10  ;;  %v3050_v26 = vld [vmem:[#allocation7 + $0x68] sm:$0xf]  ;;  %v3391_v27 = vld [vmem:[#allocation7 + $0x74] sm:$0xf0] }
  0x45   :  { %1452 = vmatpush.bf16.msrb.mxu3 %v3215_v15  ;;  %v133_v15 = vld [vmem:[#allocation2 + $0x108] sm:$0xff]  ;;  %v135_v16 = vld [vmem:[#allocation2 + $0x118] sm:$0xff]  ;;  %v3183_v17 = vor.u32 %v3421_v7, %v3180_v13  ;;  %v3051_v29 = vor.u32 %v3391_v27, %v3050_v26  ;;  %v136_v46 = vld [vmem:[#allocation2 + $0x120] sm:$0xff] }
  0x46   :  { %1141 = vmatpush.bf16.msrb.mxu0 %v3067_v50  ;;  %v4000_v22 = vpack.c.bf16 %v135_v16, %v133_v15  ;;  %v3178_v30 = vld [vmem:[#allocation7 + $0x168] sm:$0xf]  ;;  %v3423_v31 = vld [vmem:[#allocation7 + $0x174] sm:$0xf0]  ;;  %v138_v48 = vld [vmem:[#allocation2 + $0x130] sm:$0xff] }
  0x47   :  { %1245 = vmatpush.bf16.msrb.mxu1 %v3195_v53  ;;  %v3179_v34 = vor.u32 %v3423_v31, %v3178_v30  ;;  %v139_v50 = vld [vmem:[#allocation2 + $0x138] sm:$0xff]  ;;  %v4017_v52 = vpack.c.bf16 %v138_v48, %v136_v46  ;;  %v140_v13 = vld [vmem:[#allocation2 + $0x140] sm:$0xff]  ;;  %v142_v15 = vld [vmem:[#allocation2 + $0x150] sm:$0xff] }
  0x48   :  { %1349 = vmatpush.bf16.msrb.mxu2 %v3071_v44  ;;  %v141_v16 = vld [vmem:[#allocation2 + $0x148] sm:$0xff] }
  0x49   :  { %735 = vmatmul.bf16.gmra.mxu0 %v3940_v2  ;;  %1453 = vmatpush.bf16.msrb.mxu3 %v3199_v49  ;;  %v137_v49 = vld [vmem:[#allocation2 + $0x128] sm:$0xff] }
  0x4a   :  { %839 = vmatmul.bf16.gmra.mxu1 %v3942_v3  ;;  %1142 = vmatpush.bf16.msrb.mxu0 %v3051_v29  ;;  %v4020_v56 = vpack.c.bf16 %v139_v50, %v137_v49 }
  0x4b   :  { %943 = vmatmul.bf16.gmra.mxu2 %v3940_v2  ;;  %1246 = vmatpush.bf16.msrb.mxu1 %v3179_v34 }
  0x4c   :  { %1047 = vmatmul.bf16.gmra.mxu3 %v3942_v3  ;;  %1350 = vmatpush.bf16.msrb.mxu2 %v3055_v12 }
  0x4d   :  { %1454 = vmatpush.bf16.msrb.mxu3 %v3183_v17  ;;  %v143_v17 = vld [vmem:[#allocation2 + $0x158] sm:$0xff] }
  0x4e   :  { %v4040_v29 = vpack.c.bf16 %v143_v17, %v141_v16  ;;  %v147_v16 = vld [vmem:[#allocation2 + $0x178] sm:$0xff] }
  0x59   :  { %740 = vmatmul.bf16.gmra.mxu0 %v3948_v8 }
  0x5a   :  { %844 = vmatmul.bf16.gmra.mxu1 %v3950_v9 }
  0x5b   :  { %948 = vmatmul.bf16.gmra.mxu2 %v3948_v8 }
  0x5c   :  { %1052 = vmatmul.bf16.gmra.mxu3 %v3950_v9 }
  0x69   :  { %745 = vmatmul.bf16.gmra.mxu0 %v3956_v20 }
  0x6a   :  { %849 = vmatmul.bf16.gmra.mxu1 %v3958_v21 }
  0x6b   :  { %953 = vmatmul.bf16.gmra.mxu2 %v3956_v20 }
  0x6c   :  { %1057 = vmatmul.bf16.gmra.mxu3 %v3958_v21 }
  0x79   :  { %750 = vmatmul.bf16.gmra.mxu0 %v3964_v32 }
  0x7a   :  { %854 = vmatmul.bf16.gmra.mxu1 %v3966_v33 }
  0x7b   :  { %958 = vmatmul.bf16.gmra.mxu2 %v3964_v32 }
  0x7c   :  { %1062 = vmatmul.bf16.gmra.mxu3 %v3966_v33 }
  0x89   :  { %755 = vmatmul.bf16.gmra.mxu0 %v3972_v38 }
  0x8a   :  { %859 = vmatmul.bf16.gmra.mxu1 %v3974_v39 }
  0x8b   :  { %963 = vmatmul.bf16.gmra.mxu2 %v3972_v38 }
  0x8c   :  { %1067 = vmatmul.bf16.gmra.mxu3 %v3974_v39 }
  0x99   :  { %760 = vmatmul.bf16.gmra.mxu0 %v3980_v58 }
  0x9a   :  { %864 = vmatmul.bf16.gmra.mxu1 %v3982_v59 }
  0x9b   :  { %968 = vmatmul.bf16.gmra.mxu2 %v3980_v58 }
  0x9c   :  { %1072 = vmatmul.bf16.gmra.mxu3 %v3982_v59 }
  0xa9   :  { %765 = vmatmul.bf16.gmra.mxu0 %v3988_v0 }
  0xaa   :  { %869 = vmatmul.bf16.gmra.mxu1 %v3990_v1 }
  0xab   :  { %973 = vmatmul.bf16.gmra.mxu2 %v3988_v0 }
  0xac   :  { %1077 = vmatmul.bf16.gmra.mxu3 %v3990_v1 }
  0xb6   :  { %v731_v19 = vpop.f32.mrf.mxu0 }
  0xb7   :  { %v732_v23 = vadd.f32 %v731_v19, %v3996_v14  ;;  %v835_v24 = vpop.f32.mrf.mxu1 }
  0xb9   :  { %v4003_v25 = vadd.f32 %v835_v24, %v732_v23  ;;  %770 = vmatmul.bf16.gmra.mxu0 %v3998_v18  ;;  %v4037_v23 = vpack.c.bf16 %v142_v15, %v140_v13  ;;  %v145_v15 = vld [vmem:[#allocation2 + $0x168] sm:$0xff] }
  0xba   :  { %874 = vmatmul.bf16.gmra.mxu1 %v4000_v22 }
  0xbb   :  { %978 = vmatmul.bf16.gmra.mxu2 %v3998_v18 }
  0xbc   :  { %1082 = vmatmul.bf16.gmra.mxu3 %v4000_v22 }
  0xbe   :  { %v939_v35 = vpop.f32.mrf.mxu2  ;;  %v733_v40 = vpop.f32.mrf.mxu0 }
  0xbf   :  { %v940_v36 = vadd.f32 %v939_v35, %v4008_v28  ;;  %v1043_v37 = vpop.f32.mrf.mxu3  ;;  %v734_v41 = vadd.f32 %v733_v40, %v3996_v14  ;;  %v837_v42 = vpop.f32.mrf.mxu1 }
  0xc1   :  { %v4013_v44 = vadd.f32 %v1043_v37, %v940_v36  ;;  %v4015_v45 = vadd.f32 %v837_v42, %v734_v41  ;;  %v3385_v36 = vld [vmem:[#allocation7 + $0x4c] sm:$0xf]  ;;  %v3036_v37 = vld [vmem:[#allocation7 + $0x58] sm:$0xf0] }
  0xc2   :  { %v3039_v40 = vor.u32 %v3385_v36, %v3036_v37  ;;  %v3417_v41 = vld [vmem:[#allocation7 + $0x14c] sm:$0xf]  ;;  %v3164_v42 = vld [vmem:[#allocation7 + $0x158] sm:$0xf0] }
  0xc3   :  { %v3167_v46 = vor.u32 %v3417_v41, %v3164_v42 }
  0xc4   :  { %1351 = vmatpush.bf16.msrb.mxu2 %v3039_v40 }
  0xc5   :  { %1455 = vmatpush.bf16.msrb.mxu3 %v3167_v46 }
  0xc6   :  { %v941_v51 = vpop.f32.mrf.mxu2  ;;  %v736_v55 = vpop.f32.mrf.mxu0 }
  0xc7   :  { %v942_v53 = vadd.f32 %v941_v51, %v4008_v28  ;;  %v1045_v54 = vpop.f32.mrf.mxu3  ;;  %v737_v57 = vadd.f32 %v736_v55, %v3996_v14  ;;  %v840_v60 = vpop.f32.mrf.mxu1 }
  0xc9   :  { %v4023_v61 = vadd.f32 %v1045_v54, %v942_v53  ;;  %v4025_v62 = vadd.f32 %v840_v60, %v737_v57  ;;  %775 = vmatmul.bf16.gmra.mxu0 %v4017_v52  ;;  %v3034_v57 = vld [vmem:[#allocation7 + $0x48] sm:$0xf]  ;;  %v3387_v60 = vld [vmem:[#allocation7 + $0x54] sm:$0xf0] }
  0xca   :  { %879 = vmatmul.bf16.gmra.mxu1 %v4020_v56 }
  0xcb   :  { %983 = vmatmul.bf16.gmra.mxu2 %v4017_v52 }
  0xcc   :  { %1087 = vmatmul.bf16.gmra.mxu3 %v4020_v56 }
  0xce   :  { %v944_v63 = vpop.f32.mrf.mxu2  ;;  %v738_v6 = vpop.f32.mrf.mxu0 }
  0xcf   :  { %v945_v4 = vadd.f32 %v944_v63, %v4008_v28  ;;  %v1048_v5 = vpop.f32.mrf.mxu3  ;;  %v739_v7 = vadd.f32 %v738_v6, %v3996_v14  ;;  %v842_v10 = vpop.f32.mrf.mxu1  ;;  %v3419_v6 = vld [vmem:[#allocation7 + $0x154] sm:$0xf0] }
  0xd1   :  { %v4033_v11 = vadd.f32 %v1048_v5, %v945_v4  ;;  %v4035_v12 = vadd.f32 %v842_v10, %v739_v7  ;;  %v3035_v4 = vor.u32 %v3387_v60, %v3034_v57  ;;  %v3162_v5 = vld [vmem:[#allocation7 + $0x148] sm:$0xf]  ;;  %v144_v7 = vld [vmem:[#allocation2 + $0x160] sm:$0xff]  ;;  %v146_v10 = vld [vmem:[#allocation2 + $0x170] sm:$0xff] }
  0xd2   :  { %v3163_v13 = vor.u32 %v3419_v6, %v3162_v5  ;;  %v150_v57 = vld [vmem:[#allocation2 + $0x190] sm:$0xff]  ;;  %v149_v60 = vld [vmem:[#allocation2 + $0x188] sm:$0xff] }
  0xd3   :  { %5514 = vst [vmem:[#allocation16_spill] sm:$0xff] %v4035_v12  ;;  %1143 = vmatpush.bf16.msrb.mxu0 %v3035_v4  ;;  %v151_v4 = vld [vmem:[#allocation2 + $0x198] sm:$0xff] }
  0xd4   :  { %1247 = vmatpush.bf16.msrb.mxu1 %v3163_v13 }
  0xd6   :  { %v946_v19 = vpop.f32.mrf.mxu2  ;;  %v741_v27 = vpop.f32.mrf.mxu0 }
  0xd7   :  { %v947_v24 = vadd.f32 %v946_v19, %v4008_v28  ;;  %v1050_v26 = vpop.f32.mrf.mxu3  ;;  %v742_v30 = vadd.f32 %v741_v27, %v3996_v14  ;;  %v845_v31 = vpop.f32.mrf.mxu1  ;;  %v4057_v19 = vpack.c.bf16 %v146_v10, %v144_v7 }
  0xd9   :  { %v4043_v34 = vadd.f32 %v1050_v26, %v947_v24  ;;  %v4045_v35 = vadd.f32 %v845_v31, %v742_v30  ;;  %780 = vmatmul.bf16.gmra.mxu0 %v4037_v23  ;;  %v4060_v30 = vpack.c.bf16 %v147_v16, %v145_v15  ;;  %v4080_v15 = vpack.c.bf16 %v151_v4, %v149_v60  ;;  %v3413_v60 = vld [vmem:[#allocation7 + $0x12c] sm:$0xf]  ;;  %v3148_v4 = vld [vmem:[#allocation7 + $0x138] sm:$0xf0] }
  0xda   :  { %884 = vmatmul.bf16.gmra.mxu1 %v4040_v29 }
  0xdb   :  { %5515 = vst [vmem:[#allocation17_spill] sm:$0xff] %v4043_v34  ;;  %988 = vmatmul.bf16.gmra.mxu2 %v4037_v23 }
  0xdc   :  { %5516 = vst [vmem:[#allocation18_spill] sm:$0xff] %v4045_v35  ;;  %1092 = vmatmul.bf16.gmra.mxu3 %v4040_v29 }
  0xde   :  { %v949_v48 = vpop.f32.mrf.mxu2  ;;  %v743_v51 = vpop.f32.mrf.mxu0 }
  0xdf   :  { %v950_v49 = vadd.f32 %v949_v48, %v4008_v28  ;;  %v1053_v50 = vpop.f32.mrf.mxu3  ;;  %v744_v53 = vadd.f32 %v743_v51, %v3996_v14  ;;  %v847_v54 = vpop.f32.mrf.mxu1 }
  0xe1   :  { %v4053_v55 = vadd.f32 %v1053_v50, %v950_v49  ;;  %v4055_v63 = vadd.f32 %v847_v54, %v744_v53  ;;  %v148_v54 = vld [vmem:[#allocation2 + $0x180] sm:$0xff] }
  0xe2   :  { %v4077_v6 = vpack.c.bf16 %v150_v57, %v148_v54 }
  0xe3   :  { %5517 = vst [vmem:[#allocation19_spill] sm:$0xff] %v4053_v55  ;;  %v3370_v55 = vld [vmem:[#allocation10 + $0xf0] sm:$0xf] }
  0xe4   :  { %5518 = vst [vmem:[#allocation20_spill] sm:$0xff] %v4055_v63 }
  0xe6   :  { %v951_v17 = vpop.f32.mrf.mxu2  ;;  %v746_v27 = vpop.f32.mrf.mxu0 }
  0xe7   :  { %v952_v24 = vadd.f32 %v951_v17, %v4008_v28  ;;  %v1055_v26 = vpop.f32.mrf.mxu3  ;;  %v747_v31 = vadd.f32 %v746_v27, %v3996_v14  ;;  %v850_v36 = vpop.f32.mrf.mxu1 }
  0xe9   :  { %v4063_v37 = vadd.f32 %v1055_v26, %v952_v24  ;;  %v4065_v40 = vadd.f32 %v850_v36, %v747_v31  ;;  %785 = vmatmul.bf16.gmra.mxu0 %v4057_v19 }
  0xea   :  { %889 = vmatmul.bf16.gmra.mxu1 %v4060_v30 }
  0xeb   :  { %5519 = vst [vmem:[#allocation21_spill] sm:$0xff] %v4063_v37  ;;  %993 = vmatmul.bf16.gmra.mxu2 %v4057_v19 }
  0xec   :  { %5520 = vst [vmem:[#allocation22_spill] sm:$0xff] %v4065_v40  ;;  %1097 = vmatmul.bf16.gmra.mxu3 %v4060_v30 }
  0xee   :  { %v954_v41 = vpop.f32.mrf.mxu2  ;;  %v748_v48 = vpop.f32.mrf.mxu0 }
  0xef   :  { %v955_v42 = vadd.f32 %v954_v41, %v4008_v28  ;;  %v1058_v46 = vpop.f32.mrf.mxu3  ;;  %v749_v49 = vadd.f32 %v748_v48, %v3996_v14  ;;  %v852_v50 = vpop.f32.mrf.mxu1 }
  0xf1   :  { %v4073_v51 = vadd.f32 %v1058_v46, %v955_v42  ;;  %v4075_v53 = vadd.f32 %v852_v50, %v749_v49  ;;  %v3381_v49 = vld [vmem:[#allocation7 + $0x2c] sm:$0xf]  ;;  %v3020_v50 = vld [vmem:[#allocation7 + $0x38] sm:$0xf0] }
  0xf2   :  { %v3023_v57 = vor.u32 %v3381_v49, %v3020_v50 }
  0xf3   :  { %5521 = vst [vmem:[#allocation23_spill] sm:$0xff] %v4073_v51 }
  0xf4   :  { %5522 = vst [vmem:[#allocation24_spill] sm:$0xff] %v4075_v53  ;;  %1352 = vmatpush.bf16.msrb.mxu2 %v3023_v57 }
  0xf6   :  { %v956_v5 = vpop.f32.mrf.mxu2  ;;  %v751_v13 = vpop.f32.mrf.mxu0 }
  0xf7   :  { %v957_v7 = vadd.f32 %v956_v5, %v4008_v28  ;;  %v1060_v10 = vpop.f32.mrf.mxu3  ;;  %v752_v16 = vadd.f32 %v751_v13, %v3996_v14  ;;  %v855_v17 = vpop.f32.mrf.mxu1  ;;  %v3018_v5 = vld [vmem:[#allocation7 + $0x28] sm:$0xf]  ;;  %v3151_v13 = vor.u32 %v3413_v60, %v3148_v4 }
  0xf8   :  { %v3146_v4 = vld [vmem:[#allocation7 + $0x128] sm:$0xf] }
  0xf9   :  { %v4083_v24 = vadd.f32 %v1060_v10, %v957_v7  ;;  %v4085_v26 = vadd.f32 %v855_v17, %v752_v16  ;;  %790 = vmatmul.bf16.gmra.mxu0 %v4077_v6  ;;  %v152_v7 = vld [vmem:[#allocation2 + $0x1a0] sm:$0xff]  ;;  %v154_v10 = vld [vmem:[#allocation2 + $0x1b0] sm:$0xff]  ;;  %v3383_v16 = vld [vmem:[#allocation7 + $0x34] sm:$0xf0]  ;;  %1456 = vmatpush.bf16.msrb.mxu3 %v3151_v13 }
  0xfa   :  { %894 = vmatmul.bf16.gmra.mxu1 %v4080_v15  ;;  %v153_v17 = vld [vmem:[#allocation2 + $0x1a8] sm:$0xff] }
  0xfb   :  { %5523 = vst [vmem:[#allocation25_spill] sm:$0xff] %v4083_v24  ;;  %998 = vmatmul.bf16.gmra.mxu2 %v4077_v6 }
  0xfc   :  { %5524 = vst [vmem:[#allocation26_spill] sm:$0xff] %v4085_v26  ;;  %1102 = vmatmul.bf16.gmra.mxu3 %v4080_v15  ;;  %v3019_v26 = vor.u32 %v3383_v16, %v3018_v5 }
  0xfe   :  { %v959_v27 = vpop.f32.mrf.mxu2  ;;  %v753_v41 = vpop.f32.mrf.mxu0  ;;  %1144 = vmatpush.bf16.msrb.mxu0 %v3019_v26 }
  0xff   :  { %v960_v31 = vadd.f32 %v959_v27, %v4008_v28  ;;  %v1063_v36 = vpop.f32.mrf.mxu3  ;;  %v754_v42 = vadd.f32 %v753_v41, %v3996_v14  ;;  %v857_v46 = vpop.f32.mrf.mxu1  ;;  %v155_v27 = vld [vmem:[#allocation2 + $0x1b8] sm:$0xff] }
 0x100   :  { %v4100_v49 = vpack.c.bf16 %v155_v27, %v153_v17 }
 0x101   :  { %v4093_v48 = vadd.f32 %v1063_v36, %v960_v31  ;;  %v4095_v54 = vadd.f32 %v857_v46, %v754_v42  ;;  %v4097_v31 = vpack.c.bf16 %v154_v10, %v152_v7 }
 0x103   :  { %5525 = vst [vmem:[#allocation27_spill] sm:$0xff] %v4093_v48  ;;  %v3415_v48 = vld [vmem:[#allocation7 + $0x134] sm:$0xf0] }
 0x104   :  { %5526 = vst [vmem:[#allocation28_spill] sm:$0xff] %v4095_v54  ;;  %v3147_v5 = vor.u32 %v3415_v48, %v3146_v4  ;;  %v156_v48 = vld [vmem:[#allocation2 + $0x1c0] sm:$0xff] }
 0x106   :  { %v961_v41 = vpop.f32.mrf.mxu2  ;;  %v756_v46 = vpop.f32.mrf.mxu0  ;;  %1248 = vmatpush.bf16.msrb.mxu1 %v3147_v5 }
 0x107   :  { %v962_v36 = vadd.f32 %v961_v41, %v4008_v28  ;;  %v1065_v42 = vpop.f32.mrf.mxu3  ;;  %v757_v50 = vadd.f32 %v756_v46, %v3996_v14  ;;  %v860_v54 = vpop.f32.mrf.mxu1  ;;  %v158_v41 = vld [vmem:[#allocation2 + $0x1d0] sm:$0xff] }
 0x109   :  { %v4103_v60 = vadd.f32 %v1065_v42, %v962_v36  ;;  %v4105_v57 = vadd.f32 %v860_v54, %v757_v50  ;;  %795 = vmatmul.bf16.gmra.mxu0 %v4097_v31  ;;  %v157_v36 = vld [vmem:[#allocation2 + $0x1c8] sm:$0xff]  ;;  %v159_v42 = vld [vmem:[#allocation2 + $0x1d8] sm:$0xff]  ;;  %v4117_v50 = vpack.c.bf16 %v158_v41, %v156_v48 }
 0x10a   :  { %899 = vmatmul.bf16.gmra.mxu1 %v4100_v49 }
 0x10b   :  { %5527 = vst [vmem:[#allocation29_spill] sm:$0xff] %v4103_v60  ;;  %1003 = vmatmul.bf16.gmra.mxu2 %v4097_v31 }
 0x10c   :  { %5528 = vst [vmem:[#allocation30_spill] sm:$0xff] %v4105_v57  ;;  %1107 = vmatmul.bf16.gmra.mxu3 %v4100_v49  ;;  %v4120_v57 = vpack.c.bf16 %v159_v42, %v157_v36 }
 0x10e   :  { %v964_v26 = vpop.f32.mrf.mxu2  ;;  %v758_v13 = vpop.f32.mrf.mxu0 }
 0x10f   :  { %v965_v7 = vadd.f32 %v964_v26, %v4008_v28  ;;  %v1068_v10 = vpop.f32.mrf.mxu3  ;;  %v759_v16 = vadd.f32 %v758_v13, %v3996_v14  ;;  %v862_v17 = vpop.f32.mrf.mxu1 }
 0x111   :  { %v4113_v54 = vadd.f32 %v1068_v10, %v965_v7  ;;  %v4115_v27 = vadd.f32 %v862_v17, %v759_v16 }
 0x113   :  { %5529 = vst [vmem:[#allocation31_spill] sm:$0xff] %v4113_v54 }
 0x114   :  { %5530 = vst [vmem:[#allocation32_spill] sm:$0xff] %v4115_v27  ;;  %v163_v27 = vld [vmem:[#allocation2 + $0x1f8] sm:$0xff] }
 0x116   :  { %v966_v46 = vpop.f32.mrf.mxu2  ;;  %v761_v26 = vpop.f32.mrf.mxu0 }
 0x117   :  { %v967_v4 = vadd.f32 %v966_v46, %v4008_v28  ;;  %v1070_v5 = vpop.f32.mrf.mxu3  ;;  %v762_v13 = vadd.f32 %v761_v26, %v3996_v14  ;;  %v865_v60 = vpop.f32.mrf.mxu1  ;;  %v160_v26 = vld [vmem:[#allocation2 + $0x1e0] sm:$0xff] }
 0x119   :  { %v4123_v7 = vadd.f32 %v1070_v5, %v967_v4  ;;  %v4125_v10 = vadd.f32 %v865_v60, %v762_v13  ;;  %800 = vmatmul.bf16.gmra.mxu0 %v4117_v50  ;;  %v3377_v4 = vld [vmem:[#allocation7 + $0xc] sm:$0xf]  ;;  %v3004_v5 = vld [vmem:[#allocation7 + $0x18] sm:$0xf0]  ;;  %v162_v13 = vld [vmem:[#allocation2 + $0x1f0] sm:$0xff] }
 0x11a   :  { %904 = vmatmul.bf16.gmra.mxu1 %v4120_v57  ;;  %v4137_v24 = vpack.c.bf16 %v162_v13, %v160_v26 }
 0x11b   :  { %5531 = vst [vmem:[#allocation33_spill] sm:$0xff] %v4123_v7  ;;  %1008 = vmatmul.bf16.gmra.mxu2 %v4117_v50  ;;  %v161_v7 = vld [vmem:[#allocation2 + $0x1e8] sm:$0xff] }
 0x11c   :  { %5532 = vst [vmem:[#allocation34_spill] sm:$0xff] %v4125_v10  ;;  %1112 = vmatmul.bf16.gmra.mxu3 %v4120_v57  ;;  %v3007_v10 = vor.u32 %v3377_v4, %v3004_v5  ;;  %v4140_v51 = vpack.c.bf16 %v163_v27, %v161_v7  ;;  %v3379_v27 = vld [vmem:[#allocation7 + $0x14] sm:$0xf0]  ;;  %v3130_v7 = vld [vmem:[#allocation7 + $0x108] sm:$0xf] }
 0x11e   :  { %v969_v16 = vpop.f32.mrf.mxu2  ;;  %v763_v41 = vpop.f32.mrf.mxu0  ;;  %1353 = vmatpush.bf16.msrb.mxu2 %v3007_v10 }
 0x11f   :  { %v970_v17 = vadd.f32 %v969_v16, %v4008_v28  ;;  %v1073_v48 = vpop.f32.mrf.mxu3  ;;  %v764_v36 = vadd.f32 %v763_v41, %v3996_v14  ;;  %v867_v42 = vpop.f32.mrf.mxu1 }
 0x121   :  { %v4133_v46 = vadd.f32 %v1073_v48, %v970_v17  ;;  %v4135_v60 = vadd.f32 %v867_v42, %v764_v36  ;;  %v3409_v42 = vld [vmem:[#allocation7 + $0x10c] sm:$0xf] }
 0x123   :  { %5533 = vst [vmem:[#allocation35_spill] sm:$0xff] %v4133_v46  ;;  %v166_v46 = vld [vmem:[#allocation2 + $0x210] sm:$0xff] }
 0x124   :  { %5534 = vst [vmem:[#allocation36_spill] sm:$0xff] %v4135_v60  ;;  %v3132_v60 = vld [vmem:[#allocation7 + $0x118] sm:$0xf0] }
 0x125   :  { %v3135_v10 = vor.u32 %v3409_v42, %v3132_v60 }
 0x126   :  { %v971_v54 = vpop.f32.mrf.mxu2  ;;  %v766_v41 = vpop.f32.mrf.mxu0 }
 0x127   :  { %v972_v16 = vadd.f32 %v971_v54, %v4008_v28  ;;  %v1075_v53 = vpop.f32.mrf.mxu3  ;;  %v767_v17 = vadd.f32 %v766_v41, %v3996_v14  ;;  %v870_v48 = vpop.f32.mrf.mxu1  ;;  %v3002_v54 = vld [vmem:[#allocation7 + $0x8] sm:$0xf]  ;;  %1457 = vmatpush.bf16.msrb.mxu3 %v3135_v10 }
 0x128   :  { %v3003_v5 = vor.u32 %v3379_v27, %v3002_v54  ;;  %v165_v10 = vld [vmem:[#allocation2 + $0x208] sm:$0xff]  ;;  %v167_v54 = vld [vmem:[#allocation2 + $0x218] sm:$0xff] }
 0x129   :  { %v4143_v36 = vadd.f32 %v1075_v53, %v972_v16  ;;  %v4145_v4 = vadd.f32 %v870_v48, %v767_v17  ;;  %805 = vmatmul.bf16.gmra.mxu0 %v4137_v24  ;;  %v3411_v53 = vld [vmem:[#allocation7 + $0x114] sm:$0xf0] }
 0x12a   :  { %909 = vmatmul.bf16.gmra.mxu1 %v4140_v51  ;;  %v3131_v13 = vor.u32 %v3411_v53, %v3130_v7  ;;  %1145 = vmatpush.bf16.msrb.mxu0 %v3003_v5  ;;  %v4160_v5 = vpack.c.bf16 %v167_v54, %v165_v10 }
 0x12b   :  { %5535 = vst [vmem:[#allocation37_spill] sm:$0xff] %v4143_v36  ;;  %1013 = vmatmul.bf16.gmra.mxu2 %v4137_v24  ;;  %v164_v36 = vld [vmem:[#allocation2 + $0x200] sm:$0xff] }
 0x12c   :  { %5536 = vst [vmem:[#allocation38_spill] sm:$0xff] %v4145_v4  ;;  %1117 = vmatmul.bf16.gmra.mxu3 %v4140_v51  ;;  %1249 = vmatpush.bf16.msrb.mxu1 %v3131_v13  ;;  %v4157_v40 = vpack.c.bf16 %v166_v46, %v164_v36 }
 0x12e   :  { %v974_v26 = vpop.f32.mrf.mxu2  ;;  %v768_v17 = vpop.f32.mrf.mxu0 }
 0x12f   :  { %v975_v16 = vadd.f32 %v974_v26, %v4008_v28  ;;  %v1078_v41 = vpop.f32.mrf.mxu3  ;;  %v769_v60 = vadd.f32 %v768_v17, %v3996_v14  ;;  %v872_v48 = vpop.f32.mrf.mxu1 }
 0x131   :  { %v4153_v42 = vadd.f32 %v1078_v41, %v975_v16  ;;  %v4155_v4 = vadd.f32 %v872_v48, %v769_v60 }
 0x133   :  { %5537 = vst [vmem:[#allocation39_spill] sm:$0xff] %v4153_v42 }
 0x134   :  { %5538 = vst [vmem:[#allocation40_spill] sm:$0xff] %v4155_v4 }
 0x136   :  { %v976_v27 = vpop.f32.mrf.mxu2  ;;  %v771_v26 = vpop.f32.mrf.mxu0 }
 0x137   :  { %v977_v7 = vadd.f32 %v976_v27, %v4008_v28  ;;  %v1080_v53 = vpop.f32.mrf.mxu3  ;;  %v772_v17 = vadd.f32 %v771_v26, %v3996_v14  ;;  %v875_v13 = vpop.f32.mrf.mxu1  ;;  %v170_v26 = vld [vmem:[#allocation2 + $0x230] sm:$0xff] }
 0x139   :  { %v4163_v16 = vadd.f32 %v1080_v53, %v977_v7  ;;  %v4165_v41 = vadd.f32 %v875_v13, %v772_v17  ;;  %810 = vmatmul.bf16.gmra.mxu0 %v4157_v40  ;;  %v168_v53 = vld [vmem:[#allocation2 + $0x220] sm:$0xff]  ;;  %v169_v17 = vld [vmem:[#allocation2 + $0x228] sm:$0xff]  ;;  %v171_v13 = vld [vmem:[#allocation2 + $0x238] sm:$0xff] }
 0x13a   :  { %914 = vmatmul.bf16.gmra.mxu1 %v4160_v5  ;;  %v4180_v37 = vpack.c.bf16 %v171_v13, %v169_v17 }
 0x13b   :  { %5539 = vst [vmem:[#allocation41_spill] sm:$0xff] %v4163_v16  ;;  %1018 = vmatmul.bf16.gmra.mxu2 %v4157_v40  ;;  %v4177_v16 = vpack.c.bf16 %v170_v26, %v168_v53  ;;  %v3372_v26 = vld [vmem:[#allocation10 + $0xf8] sm:$0xf0] }
 0x13c   :  { %5540 = vst [vmem:[#allocation42_spill] sm:$0xff] %v4165_v41  ;;  %1122 = vmatmul.bf16.gmra.mxu3 %v4160_v5 }
 0x13e   :  { %v979_v46 = vpop.f32.mrf.mxu2  ;;  %v773_v48 = vpop.f32.mrf.mxu0 }
 0x13f   :  { %v980_v36 = vadd.f32 %v979_v46, %v4008_v28  ;;  %v1083_v60 = vpop.f32.mrf.mxu3  ;;  %v774_v10 = vadd.f32 %v773_v48, %v3996_v14  ;;  %v877_v54 = vpop.f32.mrf.mxu1 }
 0x141   :  { %v4173_v27 = vadd.f32 %v1083_v60, %v980_v36  ;;  %v4175_v7 = vadd.f32 %v877_v54, %v774_v10  ;;  %v3308_v10 = vld [vmem:[#allocation10 + $0x78] sm:$0xf0]  ;;  %v3470_v54 = vld [vmem:[#allocation10 + $0xf4] sm:$0xf] }
 0x142   :  { %v3375_v13 = vor.u32 %v3470_v54, %v3372_v26  ;;  %v3471_v54 = vld [vmem:[#allocation10 + $0xf4] sm:$0xf0]  ;;  %v173_v26 = vld [vmem:[#allocation2 + $0x248] sm:$0xff] }
 0x143   :  { %5541 = vst [vmem:[#allocation43_spill] sm:$0xff] %v4173_v27  ;;  %v3455_v27 = vld [vmem:[#allocation10 + $0x74] sm:$0xf0]  ;;  %v3371_v34 = vor.u32 %v3471_v54, %v3370_v55 }
 0x144   :  { %5542 = vst [vmem:[#allocation44_spill] sm:$0xff] %v4175_v7  ;;  %2064 = vmatpush.bf16.msra.mxu3 %v3375_v13  ;;  %v3306_v7 = vld [vmem:[#allocation10 + $0x70] sm:$0xf] }
 0x145   :  { %v3307_v35 = vor.u32 %v3455_v27, %v3306_v7  ;;  %1856 = vmatpush.bf16.msra.mxu1 %v3371_v34 }
 0x146   :  { %v981_v41 = vpop.f32.mrf.mxu2  ;;  %v776_v46 = vpop.f32.mrf.mxu0 }
 0x147   :  { %v982_v4 = vadd.f32 %v981_v41, %v4008_v28  ;;  %v1085_v42 = vpop.f32.mrf.mxu3  ;;  %v777_v48 = vadd.f32 %v776_v46, %v3996_v14  ;;  %v880_v63 = vpop.f32.mrf.mxu1  ;;  %v3454_v41 = vld [vmem:[#allocation10 + $0x74] sm:$0xf]  ;;  %1752 = vmatpush.bf16.msra.mxu0 %v3307_v35 }
 0x148   :  { %v3311_v53 = vor.u32 %v3454_v41, %v3308_v10  ;;  %v172_v41 = vld [vmem:[#allocation2 + $0x240] sm:$0xff]  ;;  %v174_v10 = vld [vmem:[#allocation2 + $0x250] sm:$0xf] }
 0x149   :  { %v4183_v36 = vadd.f32 %v1085_v42, %v982_v4  ;;  %v4185_v60 = vadd.f32 %v880_v63, %v777_v48  ;;  %815 = vmatmul.bf16.gmra.mxu0 %v4177_v16  ;;  %v4197_v12 = vpack.c.bf16 %v174_v10, %v172_v41 }
 0x14a   :  { %919 = vmatmul.bf16.gmra.mxu1 %v4180_v37  ;;  %1960 = vmatpush.bf16.msra.mxu2 %v3311_v53 }
 0x14b   :  { %5543 = vst [vmem:[#allocation45_spill] sm:$0xff] %v4183_v36  ;;  %1023 = vmatmul.bf16.gmra.mxu2 %v4177_v16 }
 0x14c   :  { %5544 = vst [vmem:[#allocation46_spill] sm:$0xff] %v4185_v60  ;;  %1127 = vmatmul.bf16.gmra.mxu3 %v4180_v37 }
 0x14e   :  { %v984_v17 = vpop.f32.mrf.mxu2  ;;  %v778_v63 = vpop.f32.mrf.mxu0 }
 0x14f   :  { %v985_v4 = vadd.f32 %v984_v17, %v4008_v28  ;;  %v1088_v42 = vpop.f32.mrf.mxu3  ;;  %v779_v46 = vadd.f32 %v778_v63, %v3996_v14  ;;  %v882_v48 = vpop.f32.mrf.mxu1  ;;  %v175_v17 = vld [vmem:[#allocation2 + $0x258] sm:$0xf] }
 0x150   :  { %v4200_v63 = vpack.c.bf16 %v175_v17, %v173_v26 }
 0x151   :  { %v4193_v60 = vadd.f32 %v1088_v42, %v985_v4  ;;  %v4195_v36 = vadd.f32 %v882_v48, %v779_v46 }
 0x153   :  { %5545 = vst [vmem:[#allocation47_spill] sm:$0xff] %v4195_v36 }
 0x156   :  { %v986_v53 = vpop.f32.mrf.mxu2  ;;  %v781_v42 = vpop.f32.mrf.mxu0 }
 0x157   :  { %v987_v13 = vadd.f32 %v986_v53, %v4008_v28  ;;  %v1090_v4 = vpop.f32.mrf.mxu3  ;;  %v782_v46 = vadd.f32 %v781_v42, %v3996_v14  ;;  %v885_v48 = vpop.f32.mrf.mxu1 }
 0x159   :  { %v4203_v36 = vadd.f32 %v1090_v4, %v987_v13  ;;  %v4205_v27 = vadd.f32 %v885_v48, %v782_v46  ;;  %820 = vmatmul.bf16.gmra.mxu0 %v4197_v12 }
 0x15a   :  { %924 = vmatmul.bf16.gmra.mxu1 %v4200_v63 }
 0x15b   :  { %5546 = vst [vmem:[#allocation48_spill] sm:$0xff] %v4205_v27  ;;  %1028 = vmatmul.bf16.gmra.mxu2 %v4197_v12 }
 0x15c   :  { %1132 = vmatmul.bf16.gmra.mxu3 %v4200_v63 }
 0x15e   :  { %v989_v34 = vpop.f32.mrf.mxu2  ;;  %v783_v7 = vpop.f32.mrf.mxu0 }
 0x15f   :  { %v990_v35 = vadd.f32 %v989_v34, %v4008_v28  ;;  %v1093_v55 = vpop.f32.mrf.mxu3  ;;  %v784_v41 = vadd.f32 %v783_v7, %v3996_v14  ;;  %v887_v10 = vpop.f32.mrf.mxu1 }
 0x161   :  { %v4213_v54 = vadd.f32 %v1093_v55, %v990_v35  ;;  %v4215_v26 = vadd.f32 %v887_v10, %v784_v41 }
 0x163   :  { %5547 = vst [vmem:[#allocation49_spill] sm:$0xff] %v4213_v54 }
 0x164   :  { %5548 = vst [vmem:[#allocation50_spill] sm:$0xff] %v4215_v26 }
 0x166   :  { %v991_v17 = vpop.f32.mrf.mxu2  ;;  %v786_v4 = vpop.f32.mrf.mxu0 }
 0x167   :  { %v992_v53 = vadd.f32 %v991_v17, %v4008_v28  ;;  %v1095_v13 = vpop.f32.mrf.mxu3  ;;  %v787_v42 = vadd.f32 %v786_v4, %v3996_v14  ;;  %v890_v46 = vpop.f32.mrf.mxu1  ;;  %v3452_v4 = vld [vmem:[#allocation10 + $0x64] sm:$0xf] }
 0x169   :  { %v4219_v48 = vadd.f32 %v1095_v13, %v992_v53  ;;  %v4221_v34 = vadd.f32 %v890_v46, %v787_v42  ;;  %1146 = vmatmul.bf16.vlgmr.msrb.gmra.mxu0 %v3932_v43  ;;  %v3300_v42 = vld [vmem:[#allocation10 + $0x68] sm:$0xf0]  ;;  %v3468_v46 = vld [vmem:[#allocation10 + $0xe4] sm:$0xf] }
 0x16a   :  { %1250 = vmatmul.bf16.vlgmr.msrb.gmra.mxu1 %v3934_v47 }
 0x16b   :  { %5549 = vst [vmem:[#allocation51_spill] sm:$0xff] %v4219_v48  ;;  %1354 = vmatmul.bf16.vlgmr.msrb.gmra.mxu2 %v3932_v43  ;;  %v3364_v48 = vld [vmem:[#allocation10 + $0xe8] sm:$0xf0] }
 0x16c   :  { %5550 = vst [vmem:[#allocation52_spill] sm:$0xff] %v4221_v34  ;;  %1458 = vmatmul.bf16.vlgmr.msrb.gmra.mxu3 %v3934_v47  ;;  %v3303_v34 = vor.u32 %v3452_v4, %v3300_v42  ;;  %v3367_v43 = vor.u32 %v3468_v46, %v3364_v48  ;;  %v3362_v48 = vld [vmem:[#allocation10 + $0xe0] sm:$0xf] }
 0x16e   :  { %v994_v35 = vpop.f32.mrf.mxu2  ;;  %v788_v41 = vpop.f32.mrf.mxu0  ;;  %1961 = vmatpush.bf16.msra.mxu2 %v3303_v34  ;;  %2065 = vmatpush.bf16.msra.mxu3 %v3367_v43  ;;  %v3469_v34 = vld [vmem:[#allocation10 + $0xe4] sm:$0xf0] }
 0x16f   :  { %v995_v55 = vadd.f32 %v994_v35, %v4008_v28  ;;  %v1098_v7 = vpop.f32.mrf.mxu3  ;;  %v789_v10 = vadd.f32 %v788_v41, %v3996_v14  ;;  %v892_v17 = vpop.f32.mrf.mxu1  ;;  %v3363_v42 = vor.u32 %v3469_v34, %v3362_v48 }
 0x171   :  { %v4229_v53 = vadd.f32 %v1098_v7, %v995_v55  ;;  %v4231_v13 = vadd.f32 %v892_v17, %v789_v10  ;;  %v3298_v7 = vld [vmem:[#allocation10 + $0x60] sm:$0xf]  ;;  %v3453_v10 = vld [vmem:[#allocation10 + $0x64] sm:$0xf0]  ;;  %1857 = vmatpush.bf16.msra.mxu1 %v3363_v42 }
 0x172   :  { %v3299_v4 = vor.u32 %v3453_v10, %v3298_v7 }
 0x174   :  { %1753 = vmatpush.bf16.msra.mxu0 %v3299_v4 }
 0x176   :  { %v996_v47 = vpop.f32.mrf.mxu2  ;;  %v791_v54 = vpop.f32.mrf.mxu0 }
 0x177   :  { %v997_v35 = vadd.f32 %v996_v47, %v4008_v28  ;;  %v1100_v26 = vpop.f32.mrf.mxu3  ;;  %v792_v41 = vadd.f32 %v791_v54, %v3996_v14  ;;  %v895_v27 = vpop.f32.mrf.mxu1 }
 0x179   :  { %v4235_v55 = vadd.f32 %v1100_v26, %v997_v35  ;;  %v4237_v17 = vadd.f32 %v895_v27, %v792_v41  ;;  %1151 = vmatmul.bf16.gmra.mxu0 %v3940_v2 }
 0x17a   :  { %1255 = vmatmul.bf16.gmra.mxu1 %v3942_v3 }
 0x17b   :  { %1359 = vmatmul.bf16.gmra.mxu2 %v3940_v2 }
 0x17c   :  { %1463 = vmatmul.bf16.gmra.mxu3 %v3942_v3 }
 0x17e   :  { %v999_v54 = vpop.f32.mrf.mxu2  ;;  %v793_v27 = vpop.f32.mrf.mxu0 }
 0x17f   :  { %v1000_v26 = vadd.f32 %v999_v54, %v4008_v28  ;;  %v1103_v46 = vpop.f32.mrf.mxu3  ;;  %v794_v43 = vadd.f32 %v793_v27, %v3996_v14  ;;  %v897_v47 = vpop.f32.mrf.mxu1 }
 0x181   :  { %v4245_v35 = vadd.f32 %v1103_v46, %v1000_v26  ;;  %v4247_v41 = vadd.f32 %v897_v47, %v794_v43 }
 0x183   :  { %5551 = vst [vmem:[#allocation53_spill] sm:$0xff] %v4247_v41 }
 0x186   :  { %v1001_v7 = vpop.f32.mrf.mxu2  ;;  %v796_v48 = vpop.f32.mrf.mxu0 }
 0x187   :  { %v1002_v2 = vadd.f32 %v1001_v7, %v4008_v28  ;;  %v1105_v10 = vpop.f32.mrf.mxu3  ;;  %v797_v3 = vadd.f32 %v796_v48, %v3996_v14  ;;  %v900_v4 = vpop.f32.mrf.mxu1 }
 0x189   :  { %v4251_v34 = vadd.f32 %v1105_v10, %v1002_v2  ;;  %v4253_v42 = vadd.f32 %v900_v4, %v797_v3  ;;  %1156 = vmatmul.bf16.gmra.mxu0 %v3948_v8 }
 0x18a   :  { %1260 = vmatmul.bf16.gmra.mxu1 %v3950_v9 }
 0x18b   :  { %5552 = vst [vmem:[#allocation54_spill] sm:$0xff] %v4251_v34  ;;  %1364 = vmatmul.bf16.gmra.mxu2 %v3948_v8  ;;  %v3292_v34 = vld [vmem:[#allocation10 + $0x58] sm:$0xf0] }
 0x18c   :  { %5553 = vst [vmem:[#allocation55_spill] sm:$0xff] %v4253_v42  ;;  %1468 = vmatmul.bf16.gmra.mxu3 %v3950_v9 }
 0x18e   :  { %v1004_v54 = vpop.f32.mrf.mxu2  ;;  %v798_v27 = vpop.f32.mrf.mxu0 }
 0x18f   :  { %v1005_v26 = vadd.f32 %v1004_v54, %v4008_v28  ;;  %v1108_v46 = vpop.f32.mrf.mxu3  ;;  %v799_v43 = vadd.f32 %v798_v27, %v3996_v14  ;;  %v902_v47 = vpop.f32.mrf.mxu1  ;;  %v3450_v54 = vld [vmem:[#allocation10 + $0x54] sm:$0xf]  ;;  %v3356_v27 = vld [vmem:[#allocation10 + $0xd8] sm:$0xf0] }
 0x191   :  { %v4261_v7 = vadd.f32 %v1108_v46, %v1005_v26  ;;  %v4263_v2 = vadd.f32 %v902_v47, %v799_v43  ;;  %v3295_v26 = vor.u32 %v3450_v54, %v3292_v34  ;;  %v3466_v46 = vld [vmem:[#allocation10 + $0xd4] sm:$0xf]  ;;  %v3290_v47 = vld [vmem:[#allocation10 + $0x50] sm:$0xf] }
 0x192   :  { %v3359_v43 = vor.u32 %v3466_v46, %v3356_v27  ;;  %v3467_v46 = vld [vmem:[#allocation10 + $0xd4] sm:$0xf0] }
 0x193   :  { %1962 = vmatpush.bf16.msra.mxu2 %v3295_v26 }
 0x194   :  { %2066 = vmatpush.bf16.msra.mxu3 %v3359_v43 }
 0x196   :  { %v1006_v10 = vpop.f32.mrf.mxu2  ;;  %v801_v4 = vpop.f32.mrf.mxu0 }
 0x197   :  { %v1007_v48 = vadd.f32 %v1006_v10, %v4008_v28  ;;  %v1110_v3 = vpop.f32.mrf.mxu3  ;;  %v802_v8 = vadd.f32 %v801_v4, %v3996_v14  ;;  %v905_v9 = vpop.f32.mrf.mxu1  ;;  %v3451_v10 = vld [vmem:[#allocation10 + $0x54] sm:$0xf0] }
 0x199   :  { %v4267_v42 = vadd.f32 %v1110_v3, %v1007_v48  ;;  %v4269_v41 = vadd.f32 %v905_v9, %v802_v8  ;;  %1161 = vmatmul.bf16.gmra.mxu0 %v3956_v20  ;;  %v3291_v48 = vor.u32 %v3451_v10, %v3290_v47 }
 0x19a   :  { %1265 = vmatmul.bf16.gmra.mxu1 %v3958_v21 }
 0x19b   :  { %5554 = vst [vmem:[#allocation56_spill] sm:$0xff] %v4267_v42  ;;  %1369 = vmatmul.bf16.gmra.mxu2 %v3956_v20  ;;  %1754 = vmatpush.bf16.msra.mxu0 %v3291_v48  ;;  %v3354_v20 = vld [vmem:[#allocation10 + $0xd0] sm:$0xf] }
 0x19c   :  { %5555 = vst [vmem:[#allocation57_spill] sm:$0xff] %v4269_v41  ;;  %1473 = vmatmul.bf16.gmra.mxu3 %v3958_v21  ;;  %v3355_v21 = vor.u32 %v3467_v46, %v3354_v20 }
 0x19e   :  { %v1009_v3 = vpop.f32.mrf.mxu2  ;;  %v803_v9 = vpop.f32.mrf.mxu0  ;;  %1858 = vmatpush.bf16.msra.mxu1 %v3355_v21 }
 0x19f   :  { %v1010_v4 = vadd.f32 %v1009_v3, %v4008_v28  ;;  %v1113_v8 = vpop.f32.mrf.mxu3  ;;  %v804_v34 = vadd.f32 %v803_v9, %v3996_v14  ;;  %v907_v54 = vpop.f32.mrf.mxu1 }
 0x1a1   :  { %v4277_v41 = vadd.f32 %v1113_v8, %v1010_v4  ;;  %v4279_v27 = vadd.f32 %v907_v54, %v804_v34 }
 0x1a6   :  { %v1011_v26 = vpop.f32.mrf.mxu2  ;;  %v806_v10 = vpop.f32.mrf.mxu0 }
 0x1a7   :  { %v1012_v43 = vadd.f32 %v1011_v26, %v4008_v28  ;;  %v1115_v47 = vpop.f32.mrf.mxu3  ;;  %v807_v3 = vadd.f32 %v806_v10, %v3996_v14  ;;  %v910_v42 = vpop.f32.mrf.mxu1 }
 0x1a9   :  { %v4283_v48 = vadd.f32 %v1115_v47, %v1012_v43  ;;  %v4285_v9 = vadd.f32 %v910_v42, %v807_v3  ;;  %1166 = vmatmul.bf16.gmra.mxu0 %v3964_v32 }
 0x1aa   :  { %1270 = vmatmul.bf16.gmra.mxu1 %v3966_v33 }
 0x1ab   :  { %5556 = vst [vmem:[#allocation58_spill] sm:$0xff] %v4283_v48  ;;  %1374 = vmatmul.bf16.gmra.mxu2 %v3964_v32  ;;  %v5675_v48 = vld [vmem:[#allocation41_spill] sm:$0xff] }
 0x1ac   :  { %5557 = vst [vmem:[#allocation59_spill] sm:$0xff] %v4285_v9  ;;  %1478 = vmatmul.bf16.gmra.mxu3 %v3966_v33 }
 0x1ae   :  { %v1014_v4 = vpop.f32.mrf.mxu2  ;;  %v808_v54 = vpop.f32.mrf.mxu0 }
 0x1af   :  { %v1015_v8 = vadd.f32 %v1014_v4, %v4008_v28  ;;  %v1118_v34 = vpop.f32.mrf.mxu3  ;;  %v809_v20 = vadd.f32 %v808_v54, %v3996_v14  ;;  %v912_v46 = vpop.f32.mrf.mxu1 }
 0x1b1   :  { %v4293_v21 = vadd.f32 %v1118_v34, %v1015_v8  ;;  %v4295_v42 = vadd.f32 %v912_v46, %v809_v20  ;;  %v3448_v8 = vld [vmem:[#allocation10 + $0x44] sm:$0xf]  ;;  %v3284_v34 = vld [vmem:[#allocation10 + $0x48] sm:$0xf0] }
 0x1b2   :  { %v3287_v54 = vor.u32 %v3448_v8, %v3284_v34  ;;  %v3465_v34 = vld [vmem:[#allocation10 + $0xc4] sm:$0xf0] }
 0x1b3   :  { %5558 = vst [vmem:[#allocation60_spill] sm:$0xff] %v4293_v21  ;;  %v3346_v21 = vld [vmem:[#allocation10 + $0xc0] sm:$0xf] }
 0x1b4   :  { %5559 = vst [vmem:[#allocation61_spill] sm:$0xff] %v4295_v42  ;;  %1963 = vmatpush.bf16.msra.mxu2 %v3287_v54  ;;  %v3449_v42 = vld [vmem:[#allocation10 + $0x44] sm:$0xf0] }
 0x1b6   :  { %v1016_v26 = vpop.f32.mrf.mxu2  ;;  %v811_v10 = vpop.f32.mrf.mxu0 }
 0x1b7   :  { %v1017_v43 = vadd.f32 %v1016_v26, %v4008_v28  ;;  %v1120_v47 = vpop.f32.mrf.mxu3  ;;  %v812_v32 = vadd.f32 %v811_v10, %v3996_v14  ;;  %v915_v33 = vpop.f32.mrf.mxu1 }
 0x1b9   :  { %v4299_v3 = vadd.f32 %v1120_v47, %v1017_v43  ;;  %v4301_v4 = vadd.f32 %v915_v33, %v812_v32  ;;  %1171 = vmatmul.bf16.gmra.mxu0 %v3972_v38  ;;  %v3464_v33 = vld [vmem:[#allocation10 + $0xc4] sm:$0xf] }
 0x1ba   :  { %1275 = vmatmul.bf16.gmra.mxu1 %v3974_v39 }
 0x1bb   :  { %5560 = vst [vmem:[#allocation62_spill] sm:$0xff] %v4299_v3  ;;  %1379 = vmatmul.bf16.gmra.mxu2 %v3972_v38 }
 0x1bc   :  { %5561 = vst [vmem:[#allocation63_spill] sm:$0xff] %v4301_v4  ;;  %1483 = vmatmul.bf16.gmra.mxu3 %v3974_v39  ;;  %v3348_v4 = vld [vmem:[#allocation10 + $0xc8] sm:$0xf0]  ;;  %v3282_v39 = vld [vmem:[#allocation10 + $0x40] sm:$0xf] }
 0x1bd   :  { %v3351_v38 = vor.u32 %v3464_v33, %v3348_v4  ;;  %v3283_v8 = vor.u32 %v3449_v42, %v3282_v39 }
 0x1be   :  { %v1019_v20 = vpop.f32.mrf.mxu2  ;;  %v813_v10 = vpop.f32.mrf.mxu0 }
 0x1bf   :  { %v1020_v46 = vadd.f32 %v1019_v20, %v4008_v28  ;;  %v1123_v26 = vpop.f32.mrf.mxu3  ;;  %v814_v43 = vadd.f32 %v813_v10, %v3996_v14  ;;  %v917_v47 = vpop.f32.mrf.mxu1  ;;  %2067 = vmatpush.bf16.msra.mxu3 %v3351_v38  ;;  %v3347_v20 = vor.u32 %v3465_v34, %v3346_v21  ;;  %1755 = vmatpush.bf16.msra.mxu0 %v3283_v8 }
 0x1c1   :  { %v4309_v32 = vadd.f32 %v1123_v26, %v1020_v46  ;;  %v4311_v3 = vadd.f32 %v917_v47, %v814_v43  ;;  %1859 = vmatpush.bf16.msra.mxu1 %v3347_v20 }
 0x1c3   :  { %5562 = vst [vmem:[#allocation64_spill] sm:$0xff] %v4309_v32 }
 0x1c4   :  { %5563 = vst [vmem:[#allocation65_spill] sm:$0xff] %v4311_v3 }
 0x1c6   :  { %v1021_v9 = vpop.f32.mrf.mxu2  ;;  %v816_v46 = vpop.f32.mrf.mxu0 }
 0x1c7   :  { %v1022_v54 = vadd.f32 %v1021_v9, %v4008_v28  ;;  %v1125_v10 = vpop.f32.mrf.mxu3  ;;  %v817_v26 = vadd.f32 %v816_v46, %v3996_v14  ;;  %v920_v32 = vpop.f32.mrf.mxu1 }
 0x1c9   :  { %v4315_v43 = vadd.f32 %v1125_v10, %v1022_v54  ;;  %v4317_v4 = vadd.f32 %v920_v32, %v817_v26  ;;  %1176 = vmatmul.bf16.gmra.mxu0 %v3980_v58 }
 0x1ca   :  { %1280 = vmatmul.bf16.gmra.mxu1 %v3982_v59 }
 0x1cb   :  { %5564 = vst [vmem:[#allocation66_spill] sm:$0xff] %v4315_v43  ;;  %1384 = vmatmul.bf16.gmra.mxu2 %v3980_v58 }
 0x1cc   :  { %5565 = vst [vmem:[#allocation67_spill] sm:$0xff] %v4317_v4  ;;  %1488 = vmatmul.bf16.gmra.mxu3 %v3982_v59  ;;  %v5669_v4 = vld [vmem:[#allocation36_spill] sm:$0xff] }
 0x1ce   :  { %v1024_v21 = vpop.f32.mrf.mxu2  ;;  %v818_v47 = vpop.f32.mrf.mxu0 }
 0x1cf   :  { %v1025_v9 = vadd.f32 %v1024_v21, %v4008_v28  ;;  %v1128_v42 = vpop.f32.mrf.mxu3  ;;  %v819_v33 = vadd.f32 %v818_v47, %v3996_v14  ;;  %v922_v38 = vpop.f32.mrf.mxu1 }
 0x1d1   :  { %v4325_v39 = vadd.f32 %v1128_v42, %v1025_v9  ;;  %v4327_v32 = vadd.f32 %v922_v38, %v819_v33 }
 0x1d3   :  { %5566 = vst [vmem:[#allocation68_spill] sm:$0xff] %v4325_v39 }
 0x1d4   :  { %5567 = vst [vmem:[#allocation69_spill] sm:$0xff] %v4327_v32 }
 0x1d6   :  { %v1026_v8 = vpop.f32.mrf.mxu2  ;;  %v821_v54 = vpop.f32.mrf.mxu0 }
 0x1d7   :  { %v1027_v34 = vadd.f32 %v1026_v8, %v4008_v28  ;;  %v1130_v20 = vpop.f32.mrf.mxu3  ;;  %v822_v58 = vadd.f32 %v821_v54, %v3996_v14  ;;  %v925_v59 = vpop.f32.mrf.mxu1  ;;  %v3462_v54 = vld [vmem:[#allocation10 + $0xb4] sm:$0xf] }
 0x1d9   :  { %v4331_v10 = vadd.f32 %v1130_v20, %v1027_v34  ;;  %v4333_v46 = vadd.f32 %v925_v59, %v822_v58  ;;  %1181 = vmatmul.bf16.gmra.mxu0 %v3988_v0  ;;  %v3446_v34 = vld [vmem:[#allocation10 + $0x34] sm:$0xf]  ;;  %v3276_v20 = vld [vmem:[#allocation10 + $0x38] sm:$0xf0] }
 0x1da   :  { %1285 = vmatmul.bf16.gmra.mxu1 %v3990_v1  ;;  %v3279_v58 = vor.u32 %v3446_v34, %v3276_v20  ;;  %v3340_v59 = vld [vmem:[#allocation10 + $0xb8] sm:$0xf0]  ;;  %v3274_v34 = vld [vmem:[#allocation10 + $0x30] sm:$0xf]  ;;  %v3447_v20 = vld [vmem:[#allocation10 + $0x34] sm:$0xf0] }
 0x1db   :  { %5568 = vst [vmem:[#allocation70_spill] sm:$0xff] %v4331_v10  ;;  %1389 = vmatmul.bf16.gmra.mxu2 %v3988_v0  ;;  %v3710_v0 = vld [vmem:[#allocation8] sm:$0xf] }
 0x1dc   :  { %5569 = vst [vmem:[#allocation71_spill] sm:$0xff] %v4333_v46  ;;  %1493 = vmatmul.bf16.gmra.mxu3 %v3990_v1  ;;  %v4345_v46 = vperm.slane %v3710_v0, 2  ;;  %v3343_v1 = vor.u32 %v3462_v54, %v3340_v59  ;;  %1964 = vmatpush.bf16.msra.mxu2 %v3279_v58  ;;  %v4356_v54 = vperm.slane %v3710_v0, 3  ;;  %v3338_v58 = vld [vmem:[#allocation10 + $0xb0] sm:$0xf] }
 0x1dd   :  { %v3463_v59 = vld [vmem:[#allocation10 + $0xb4] sm:$0xf0] }
 0x1de   :  { %v1029_v26 = vpop.f32.mrf.mxu2  ;;  %v823_v42 = vpop.f32.mrf.mxu0  ;;  %2068 = vmatpush.bf16.msra.mxu3 %v3343_v1 }
 0x1df   :  { %v1030_v21 = vadd.f32 %v1029_v26, %v4008_v28  ;;  %v1133_v9 = vpop.f32.mrf.mxu3  ;;  %v824_v47 = vadd.f32 %v823_v42, %v3996_v14  ;;  %v927_v33 = vpop.f32.mrf.mxu1 }
 0x1e1   :  { %v4341_v38 = vadd.f32 %v1133_v9, %v1030_v21  ;;  %v4343_v8 = vadd.f32 %v927_v33, %v824_v47 }
 0x1e3   :  { %5570 = vst [vmem:[#allocation72_spill] sm:$0xff] %v4341_v38  ;;  %v3268_v38 = vld [vmem:[#allocation10 + $0x28] sm:$0xf0] }
 0x1e4   :  { %5571 = vst [vmem:[#allocation73_spill] sm:$0xff] %v4343_v8 }
 0x1e6   :  { %v1031_v26 = vpop.f32.mrf.mxu2  ;;  %v1147_v42 = vpop.f32.mrf.mxu0 }
 0x1e7   :  { %v1032_v10 = vadd.f32 %v1031_v26, %v4008_v28  ;;  %v1135_v14 = vpop.f32.mrf.mxu3  ;;  %v1148_v21 = vadd.f32 %v1147_v42, %v4345_v46  ;;  %v1251_v9 = vpop.f32.mrf.mxu1  ;;  %v3275_v28 = vor.u32 %v3447_v20, %v3274_v34 }
 0x1e9   :  { %v4349_v47 = vadd.f32 %v1135_v14, %v1032_v10  ;;  %v4351_v33 = vadd.f32 %v1251_v9, %v1148_v21  ;;  %1186 = vmatmul.bf16.gmra.mxu0 %v3998_v18  ;;  %v3339_v10 = vor.u32 %v3463_v59, %v3338_v58 }
 0x1ea   :  { %1290 = vmatmul.bf16.gmra.mxu1 %v4000_v22  ;;  %1756 = vmatpush.bf16.msra.mxu0 %v3275_v28 }
 0x1eb   :  { %5572 = vst [vmem:[#allocation74_spill] sm:$0xff] %v4349_v47  ;;  %1394 = vmatmul.bf16.gmra.mxu2 %v3998_v18  ;;  %1860 = vmatpush.bf16.msra.mxu1 %v3339_v10 }
 0x1ec   :  { %5573 = vst [vmem:[#allocation75_spill] sm:$0xff] %v4351_v33  ;;  %1498 = vmatmul.bf16.gmra.mxu3 %v4000_v22 }
 0x1ee   :  { %v1355_v1 = vpop.f32.mrf.mxu2  ;;  %v1149_v42 = vpop.f32.mrf.mxu0 }
 0x1ef   :  { %v1356_v26 = vadd.f32 %v1355_v1, %v4356_v54  ;;  %v1459_v14 = vpop.f32.mrf.mxu3  ;;  %v1150_v21 = vadd.f32 %v1149_v42, %v4345_v46  ;;  %v1253_v9 = vpop.f32.mrf.mxu1 }
 0x1f1   :  { %v4361_v47 = vadd.f32 %v1459_v14, %v1356_v26  ;;  %v4363_v18 = vadd.f32 %v1253_v9, %v1150_v21 }
 0x1f3   :  { %5574 = vst [vmem:[#allocation76_spill] sm:$0xff] %v4361_v47 }
 0x1f4   :  { %5575 = vst [vmem:[#allocation77_spill] sm:$0xff] %v4363_v18  ;;  %v5670_v18 = vld [vmem:[#allocation37_spill] sm:$0xff] }
 0x1f6   :  { %v1357_v0 = vpop.f32.mrf.mxu2  ;;  %v1152_v20 = vpop.f32.mrf.mxu0 }
 0x1f7   :  { %v1358_v22 = vadd.f32 %v1357_v0, %v4356_v54  ;;  %v1461_v34 = vpop.f32.mrf.mxu3  ;;  %v1153_v28 = vadd.f32 %v1152_v20, %v4345_v46  ;;  %v1256_v58 = vpop.f32.mrf.mxu1 }
 0x1f9   :  { %v4367_v59 = vadd.f32 %v1461_v34, %v1358_v22  ;;  %v4369_v1 = vadd.f32 %v1256_v58, %v1153_v28  ;;  %1191 = vmatmul.bf16.gmra.mxu0 %v4017_v52 }
 0x1fa   :  { %1295 = vmatmul.bf16.gmra.mxu1 %v4020_v56 }
 0x1fb   :  { %5576 = vst [vmem:[#allocation78_spill] sm:$0xff] %v4367_v59  ;;  %1399 = vmatmul.bf16.gmra.mxu2 %v4017_v52 }
 0x1fc   :  { %5577 = vst [vmem:[#allocation79_spill] sm:$0xff] %v4369_v1  ;;  %1503 = vmatmul.bf16.gmra.mxu3 %v4020_v56  ;;  %v5666_v1 = vld [vmem:[#allocation33_spill] sm:$0xff] }
 0x1fe   :  { %v1360_v10 = vpop.f32.mrf.mxu2  ;;  %v1154_v42 = vpop.f32.mrf.mxu0 }
 0x1ff   :  { %v1361_v26 = vadd.f32 %v1360_v10, %v4356_v54  ;;  %v1464_v14 = vpop.f32.mrf.mxu3  ;;  %v1155_v21 = vadd.f32 %v1154_v42, %v4345_v46  ;;  %v1258_v9 = vpop.f32.mrf.mxu1  ;;  %v3444_v42 = vld [vmem:[#allocation10 + $0x24] sm:$0xf] }
 0x201   :  { %v4377_v0 = vadd.f32 %v1464_v14, %v1361_v26  ;;  %v4379_v22 = vadd.f32 %v1258_v9, %v1155_v21  ;;  %v3271_v26 = vor.u32 %v3444_v42, %v3268_v38  ;;  %v3460_v14 = vld [vmem:[#allocation10 + $0xa4] sm:$0xf]  ;;  %v3332_v21 = vld [vmem:[#allocation10 + $0xa8] sm:$0xf0]  ;;  %v3330_v42 = vld [vmem:[#allocation10 + $0xa0] sm:$0xf] }
 0x202   :  { %v3335_v9 = vor.u32 %v3460_v14, %v3332_v21 }
 0x203   :  { %5578 = vst [vmem:[#allocation80_spill] sm:$0xff] %v4377_v0  ;;  %1965 = vmatpush.bf16.msra.mxu2 %v3271_v26 }
 0x204   :  { %5579 = vst [vmem:[#allocation81_spill] sm:$0xff] %v4379_v22  ;;  %2069 = vmatpush.bf16.msra.mxu3 %v3335_v9  ;;  %v3461_v22 = vld [vmem:[#allocation10 + $0xa4] sm:$0xf0] }
 0x205   :  { %v3331_v26 = vor.u32 %v3461_v22, %v3330_v42 }
 0x206   :  { %v1362_v34 = vpop.f32.mrf.mxu2  ;;  %v1157_v58 = vpop.f32.mrf.mxu0 }
 0x207   :  { %v1363_v20 = vadd.f32 %v1362_v34, %v4356_v54  ;;  %v1466_v28 = vpop.f32.mrf.mxu3  ;;  %v1158_v52 = vadd.f32 %v1157_v58, %v4345_v46  ;;  %v1261_v56 = vpop.f32.mrf.mxu1  ;;  %1861 = vmatpush.bf16.msra.mxu1 %v3331_v26 }
 0x209   :  { %v4383_v8 = vadd.f32 %v1466_v28, %v1363_v20  ;;  %v4385_v10 = vadd.f32 %v1261_v56, %v1158_v52  ;;  %1196 = vmatmul.bf16.gmra.mxu0 %v4037_v23 }
 0x20a   :  { %1300 = vmatmul.bf16.gmra.mxu1 %v4040_v29 }
 0x20b   :  { %5580 = vst [vmem:[#allocation82_spill] sm:$0xff] %v4383_v8  ;;  %1404 = vmatmul.bf16.gmra.mxu2 %v4037_v23  ;;  %v3266_v8 = vld [vmem:[#allocation10 + $0x20] sm:$0xf]  ;;  %v3445_v23 = vld [vmem:[#allocation10 + $0x24] sm:$0xf0] }
 0x20c   :  { %5581 = vst [vmem:[#allocation83_spill] sm:$0xff] %v4385_v10  ;;  %1508 = vmatmul.bf16.gmra.mxu3 %v4040_v29  ;;  %v3267_v29 = vor.u32 %v3445_v23, %v3266_v8 }
 0x20e   :  { %v1365_v34 = vpop.f32.mrf.mxu2  ;;  %v1159_v58 = vpop.f32.mrf.mxu0  ;;  %1757 = vmatpush.bf16.msra.mxu0 %v3267_v29 }
 0x20f   :  { %v1366_v20 = vadd.f32 %v1365_v34, %v4356_v54  ;;  %v1469_v28 = vpop.f32.mrf.mxu3  ;;  %v1160_v52 = vadd.f32 %v1159_v58, %v4345_v46  ;;  %v1263_v56 = vpop.f32.mrf.mxu1 }
 0x211   :  { %v4393_v10 = vadd.f32 %v1469_v28, %v1366_v20  ;;  %v4395_v38 = vadd.f32 %v1263_v56, %v1160_v52 }
 0x213   :  { %5582 = vst [vmem:[#allocation84_spill] sm:$0xff] %v4393_v10  ;;  %v5665_v10 = vld [vmem:[#allocation32_spill] sm:$0xff] }
 0x214   :  { %5583 = vst [vmem:[#allocation85_spill] sm:$0xff] %v4395_v38 }
 0x216   :  { %v1367_v14 = vpop.f32.mrf.mxu2  ;;  %v1162_v9 = vpop.f32.mrf.mxu0 }
 0x217   :  { %v1368_v21 = vadd.f32 %v1367_v14, %v4356_v54  ;;  %v1471_v34 = vpop.f32.mrf.mxu3  ;;  %v1163_v58 = vadd.f32 %v1162_v9, %v4345_v46  ;;  %v1266_v32 = vpop.f32.mrf.mxu1 }
 0x219   :  { %v4399_v20 = vadd.f32 %v1471_v34, %v1368_v21  ;;  %v4401_v28 = vadd.f32 %v1266_v32, %v1163_v58  ;;  %1201 = vmatmul.bf16.gmra.mxu0 %v4057_v19 }
 0x21a   :  { %1305 = vmatmul.bf16.gmra.mxu1 %v4060_v30 }
 0x21b   :  { %5584 = vst [vmem:[#allocation86_spill] sm:$0xff] %v4399_v20  ;;  %1409 = vmatmul.bf16.gmra.mxu2 %v4057_v19  ;;  %v5662_v20 = vld [vmem:[#allocation29_spill] sm:$0xff] }
 0x21c   :  { %5585 = vst [vmem:[#allocation87_spill] sm:$0xff] %v4401_v28  ;;  %1513 = vmatmul.bf16.gmra.mxu3 %v4060_v30 }
 0x21e   :  { %v1370_v8 = vpop.f32.mrf.mxu2  ;;  %v1164_v56 = vpop.f32.mrf.mxu0 }
 0x21f   :  { %v1371_v22 = vadd.f32 %v1370_v8, %v4356_v54  ;;  %v1474_v52 = vpop.f32.mrf.mxu3  ;;  %v1165_v23 = vadd.f32 %v1164_v56, %v4345_v46  ;;  %v1268_v29 = vpop.f32.mrf.mxu1 }
 0x221   :  { %v4409_v42 = vadd.f32 %v1474_v52, %v1371_v22  ;;  %v4411_v32 = vadd.f32 %v1268_v29, %v1165_v23 }
 0x223   :  { %5586 = vst [vmem:[#allocation88_spill] sm:$0xff] %v4409_v42 }
 0x224   :  { %5587 = vst [vmem:[#allocation89_spill] sm:$0xff] %v4411_v32 }
 0x226   :  { %v1372_v26 = vpop.f32.mrf.mxu2  ;;  %v1167_v34 = vpop.f32.mrf.mxu0 }
 0x227   :  { %v1373_v14 = vadd.f32 %v1372_v26, %v4356_v54  ;;  %v1476_v21 = vpop.f32.mrf.mxu3  ;;  %v1168_v19 = vadd.f32 %v1167_v34, %v4345_v46  ;;  %v1271_v30 = vpop.f32.mrf.mxu1 }
 0x229   :  { %v4415_v9 = vadd.f32 %v1476_v21, %v1373_v14  ;;  %v4417_v58 = vadd.f32 %v1271_v30, %v1168_v19  ;;  %1206 = vmatmul.bf16.gmra.mxu0 %v4077_v6  ;;  %v3442_v14 = vld [vmem:[#allocation10 + $0x14] sm:$0xf]  ;;  %v3260_v21 = vld [vmem:[#allocation10 + $0x18] sm:$0xf0] }
 0x22a   :  { %1310 = vmatmul.bf16.gmra.mxu1 %v4080_v15  ;;  %v3263_v19 = vor.u32 %v3442_v14, %v3260_v21  ;;  %v3458_v30 = vld [vmem:[#allocation10 + $0x94] sm:$0xf]  ;;  %v3459_v14 = vld [vmem:[#allocation10 + $0x94] sm:$0xf0] }
 0x22b   :  { %5588 = vst [vmem:[#allocation90_spill] sm:$0xff] %v4415_v9  ;;  %1414 = vmatmul.bf16.gmra.mxu2 %v4077_v6  ;;  %v3258_v6 = vld [vmem:[#allocation10 + $0x10] sm:$0xf] }
 0x22c   :  { %5589 = vst [vmem:[#allocation91_spill] sm:$0xff] %v4417_v58  ;;  %1518 = vmatmul.bf16.gmra.mxu3 %v4080_v15  ;;  %v3324_v58 = vld [vmem:[#allocation10 + $0x98] sm:$0xf0]  ;;  %v3443_v15 = vld [vmem:[#allocation10 + $0x14] sm:$0xf0]  ;;  %1966 = vmatpush.bf16.msra.mxu2 %v3263_v19 }
 0x22d   :  { %v3327_v9 = vor.u32 %v3458_v30, %v3324_v58  ;;  %v3259_v32 = vor.u32 %v3443_v15, %v3258_v6 }
 0x22e   :  { %v1375_v8 = vpop.f32.mrf.mxu2  ;;  %v1169_v56 = vpop.f32.mrf.mxu0 }
 0x22f   :  { %v1376_v22 = vadd.f32 %v1375_v8, %v4356_v54  ;;  %v1479_v52 = vpop.f32.mrf.mxu3  ;;  %v1170_v23 = vadd.f32 %v1169_v56, %v4345_v46  ;;  %v1273_v29 = vpop.f32.mrf.mxu1  ;;  %2070 = vmatpush.bf16.msra.mxu3 %v3327_v9  ;;  %1758 = vmatpush.bf16.msra.mxu0 %v3259_v32 }
 0x231   :  { %v4425_v26 = vadd.f32 %v1479_v52, %v1376_v22  ;;  %v4427_v34 = vadd.f32 %v1273_v29, %v1170_v23  ;;  %v3322_v29 = vld [vmem:[#allocation10 + $0x90] sm:$0xf] }
 0x232   :  { %v3323_v58 = vor.u32 %v3459_v14, %v3322_v29 }
 0x233   :  { %5590 = vst [vmem:[#allocation92_spill] sm:$0xff] %v4425_v26 }
 0x234   :  { %5591 = vst [vmem:[#allocation93_spill] sm:$0xff] %v4427_v34  ;;  %1862 = vmatpush.bf16.msra.mxu1 %v3323_v58  ;;  %v5661_v34 = vld [vmem:[#allocation28_spill] sm:$0xff] }
 0x236   :  { %v1377_v8 = vpop.f32.mrf.mxu2  ;;  %v1172_v22 = vpop.f32.mrf.mxu0 }
 0x237   :  { %v1378_v56 = vadd.f32 %v1377_v8, %v4356_v54  ;;  %v1481_v42 = vpop.f32.mrf.mxu3  ;;  %v1173_v52 = vadd.f32 %v1172_v22, %v4345_v46  ;;  %v1276_v26 = vpop.f32.mrf.mxu1 }
 0x239   :  { %v4431_v23 = vadd.f32 %v1481_v42, %v1378_v56  ;;  %v4433_v21 = vadd.f32 %v1276_v26, %v1173_v52  ;;  %1211 = vmatmul.bf16.gmra.mxu0 %v4097_v31 }
 0x23a   :  { %1315 = vmatmul.bf16.gmra.mxu1 %v4100_v49 }
 0x23b   :  { %5592 = vst [vmem:[#allocation94_spill] sm:$0xff] %v4431_v23  ;;  %1419 = vmatmul.bf16.gmra.mxu2 %v4097_v31 }
 0x23c   :  { %5593 = vst [vmem:[#allocation95_spill] sm:$0xff] %v4433_v21  ;;  %1523 = vmatmul.bf16.gmra.mxu3 %v4100_v49  ;;  %v5658_v21 = vld [vmem:[#allocation25_spill] sm:$0xff] }
 0x23e   :  { %v1380_v32 = vpop.f32.mrf.mxu2  ;;  %v1174_v42 = vpop.f32.mrf.mxu0 }
 0x23f   :  { %v1381_v9 = vadd.f32 %v1380_v32, %v4356_v54  ;;  %v1484_v19 = vpop.f32.mrf.mxu3  ;;  %v1175_v30 = vadd.f32 %v1174_v42, %v4345_v46  ;;  %v1278_v6 = vpop.f32.mrf.mxu1 }
 0x241   :  { %v4441_v26 = vadd.f32 %v1484_v19, %v1381_v9  ;;  %v4443_v15 = vadd.f32 %v1278_v6, %v1175_v30 }
 0x243   :  { %5594 = vst [vmem:[#allocation96_spill] sm:$0xff] %v4441_v26 }
 0x244   :  { %5595 = vst [vmem:[#allocation97_spill] sm:$0xff] %v4443_v15  ;;  %v3316_v15 = vld [vmem:[#allocation10 + $0x88] sm:$0xf0] }
 0x246   :  { %v1382_v8 = vpop.f32.mrf.mxu2  ;;  %v1177_v31 = vpop.f32.mrf.mxu0 }
 0x247   :  { %v1383_v56 = vadd.f32 %v1382_v8, %v4356_v54  ;;  %v1486_v22 = vpop.f32.mrf.mxu3  ;;  %v1178_v49 = vadd.f32 %v1177_v31, %v4345_v46  ;;  %v1281_v52 = vpop.f32.mrf.mxu1 }
 0x249   :  { %v4447_v29 = vadd.f32 %v1486_v22, %v1383_v56  ;;  %v4449_v14 = vadd.f32 %v1281_v52, %v1178_v49  ;;  %1216 = vmatmul.bf16.gmra.mxu0 %v4117_v50  ;;  %v3440_v56 = vld [vmem:[#allocation10 + $0x4] sm:$0xf]  ;;  %v3252_v22 = vld [vmem:[#allocation10 + $0x8] sm:$0xf0] }
 0x24a   :  { %1320 = vmatmul.bf16.gmra.mxu1 %v4120_v57  ;;  %v3255_v31 = vor.u32 %v3440_v56, %v3252_v22  ;;  %v3314_v56 = vld [vmem:[#allocation10 + $0x80] sm:$0xf] }
 0x24b   :  { %5596 = vst [vmem:[#allocation98_spill] sm:$0xff] %v4447_v29  ;;  %1424 = vmatmul.bf16.gmra.mxu2 %v4117_v50 }
 0x24c   :  { %5597 = vst [vmem:[#allocation99_spill] sm:$0xff] %v4449_v14  ;;  %1528 = vmatmul.bf16.gmra.mxu3 %v4120_v57  ;;  %1967 = vmatpush.bf16.msra.mxu2 %v3255_v31  ;;  %v3457_v31 = vld [vmem:[#allocation10 + $0x84] sm:$0xf0] }
 0x24e   :  { %v1385_v58 = vpop.f32.mrf.mxu2  ;;  %v1179_v19 = vpop.f32.mrf.mxu0 }
 0x24f   :  { %v1386_v32 = vadd.f32 %v1385_v58, %v4356_v54  ;;  %v1489_v9 = vpop.f32.mrf.mxu3  ;;  %v1180_v42 = vadd.f32 %v1179_v19, %v4345_v46  ;;  %v1283_v30 = vpop.f32.mrf.mxu1  ;;  %v3456_v19 = vld [vmem:[#allocation10 + $0x84] sm:$0xf] }
 0x251   :  { %v4457_v6 = vadd.f32 %v1489_v9, %v1386_v32  ;;  %v4459_v8 = vadd.f32 %v1283_v30, %v1180_v42  ;;  %v3319_v9 = vor.u32 %v3456_v19, %v3316_v15  ;;  %v3250_v42 = vld [vmem:[#allocation10] sm:$0xf]  ;;  %v3441_v30 = vld [vmem:[#allocation10 + $0x4] sm:$0xf0] }
 0x252   :  { %v3251_v22 = vor.u32 %v3441_v30, %v3250_v42 }
 0x253   :  { %5598 = vst [vmem:[#allocation100_spill] sm:$0xff] %v4457_v6  ;;  %2071 = vmatpush.bf16.msra.mxu3 %v3319_v9  ;;  %v5657_v6 = vld [vmem:[#allocation24_spill] sm:$0xff] }
 0x254   :  { %5599 = vst [vmem:[#allocation101_spill] sm:$0xff] %v4459_v8  ;;  %1759 = vmatpush.bf16.msra.mxu0 %v3251_v22 }
 0x256   :  { %v1387_v49 = vpop.f32.mrf.mxu2  ;;  %v1182_v52 = vpop.f32.mrf.mxu0 }
 0x257   :  { %v1388_v50 = vadd.f32 %v1387_v49, %v4356_v54  ;;  %v1491_v57 = vpop.f32.mrf.mxu3  ;;  %v1183_v58 = vadd.f32 %v1182_v52, %v4345_v46  ;;  %v1286_v14 = vpop.f32.mrf.mxu1 }
 0x259   :  { %v4463_v29 = vadd.f32 %v1491_v57, %v1388_v50  ;;  %v4465_v32 = vadd.f32 %v1286_v14, %v1183_v58  ;;  %1221 = vmatmul.bf16.gmra.mxu0 %v4137_v24  ;;  %v3315_v50 = vor.u32 %v3457_v31, %v3314_v56 }
 0x25a   :  { %1325 = vmatmul.bf16.gmra.mxu1 %v4140_v51 }
 0x25b   :  { %5600 = vst [vmem:[#allocation102_spill] sm:$0xff] %v4463_v29  ;;  %1429 = vmatmul.bf16.gmra.mxu2 %v4137_v24  ;;  %1863 = vmatpush.bf16.msra.mxu1 %v3315_v50  ;;  %v5654_v29 = vld [vmem:[#allocation21_spill] sm:$0xff] }
 0x25c   :  { %5601 = vst [vmem:[#allocation103_spill] sm:$0xff] %v4465_v32  ;;  %1533 = vmatmul.bf16.gmra.mxu3 %v4140_v51 }
 0x25e   :  { %v1390_v49 = vpop.f32.mrf.mxu2  ;;  %v1184_v52 = vpop.f32.mrf.mxu0 }
 0x25f   :  { %v1391_v14 = vadd.f32 %v1390_v49, %v4356_v54  ;;  %v1494_v57 = vpop.f32.mrf.mxu3  ;;  %v1185_v15 = vadd.f32 %v1184_v52, %v4345_v46  ;;  %v1288_v58 = vpop.f32.mrf.mxu1 }
 0x261   :  { %v4473_v24 = vadd.f32 %v1494_v57, %v1391_v14  ;;  %v4475_v51 = vadd.f32 %v1288_v58, %v1185_v15 }
 0x263   :  { %5602 = vst [vmem:[#allocation104_spill] sm:$0xff] %v4473_v24 }
 0x264   :  { %5603 = vst [vmem:[#allocation105_spill] sm:$0xff] %v4475_v51 }
 0x266   :  { %v1392_v19 = vpop.f32.mrf.mxu2  ;;  %v1187_v30 = vpop.f32.mrf.mxu0 }
 0x267   :  { %v1393_v9 = vadd.f32 %v1392_v19, %v4356_v54  ;;  %v1496_v42 = vpop.f32.mrf.mxu3  ;;  %v1188_v56 = vadd.f32 %v1187_v30, %v4345_v46  ;;  %v1291_v31 = vpop.f32.mrf.mxu1 }
 0x269   :  { %v4479_v49 = vadd.f32 %v1496_v42, %v1393_v9  ;;  %v4481_v32 = vadd.f32 %v1291_v31, %v1188_v56  ;;  %1226 = vmatmul.bf16.gmra.mxu0 %v4157_v40 }
 0x26a   :  { %1330 = vmatmul.bf16.gmra.mxu1 %v4160_v5 }
 0x26b   :  { %5604 = vst [vmem:[#allocation106_spill] sm:$0xff] %v4479_v49  ;;  %1434 = vmatmul.bf16.gmra.mxu2 %v4157_v40 }
 0x26c   :  { %5605 = vst [vmem:[#allocation107_spill] sm:$0xff] %v4481_v32  ;;  %1538 = vmatmul.bf16.gmra.mxu3 %v4160_v5  ;;  %v5650_v32 = vld [vmem:[#allocation17_spill] sm:$0xff] }
 0x26e   :  { %v1395_v22 = vpop.f32.mrf.mxu2  ;;  %v1189_v57 = vpop.f32.mrf.mxu0 }
 0x26f   :  { %v1396_v50 = vadd.f32 %v1395_v22, %v4356_v54  ;;  %v1499_v14 = vpop.f32.mrf.mxu3  ;;  %v1190_v52 = vadd.f32 %v1189_v57, %v4345_v46  ;;  %v1293_v15 = vpop.f32.mrf.mxu1 }
 0x271   :  { %v4489_v58 = vadd.f32 %v1499_v14, %v1396_v50  ;;  %v4491_v19 = vadd.f32 %v1293_v15, %v1190_v52 }
 0x273   :  { %5606 = vst [vmem:[#allocation108_spill] sm:$0xff] %v4489_v58 }
 0x274   :  { %5607 = vst [vmem:[#allocation109_spill] sm:$0xff] %v4491_v19 }
 0x276   :  { %v1397_v9 = vpop.f32.mrf.mxu2  ;;  %v1192_v56 = vpop.f32.mrf.mxu0 }
 0x277   :  { %v1398_v42 = vadd.f32 %v1397_v9, %v4356_v54  ;;  %v1501_v30 = vpop.f32.mrf.mxu3  ;;  %v1193_v40 = vadd.f32 %v1192_v56, %v4345_v46  ;;  %v1296_v5 = vpop.f32.mrf.mxu1 }
 0x279   :  { %v4495_v31 = vadd.f32 %v1501_v30, %v1398_v42  ;;  %v4497_v22 = vadd.f32 %v1296_v5, %v1193_v40  ;;  %1231 = vmatmul.bf16.gmra.mxu0 %v4177_v16 }
 0x27a   :  { %1335 = vmatmul.bf16.gmra.mxu1 %v4180_v37 }
 0x27b   :  { %5608 = vst [vmem:[#allocation110_spill] sm:$0xff] %v4495_v31  ;;  %1439 = vmatmul.bf16.gmra.mxu2 %v4177_v16 }
 0x27c   :  { %5609 = vst [vmem:[#allocation111_spill] sm:$0xff] %v4497_v22  ;;  %1543 = vmatmul.bf16.gmra.mxu3 %v4180_v37 }
 0x27e   :  { %v1400_v50 = vpop.f32.mrf.mxu2  ;;  %v1194_v52 = vpop.f32.mrf.mxu0 }
 0x27f   :  { %v1401_v14 = vadd.f32 %v1400_v50, %v4356_v54  ;;  %v1504_v57 = vpop.f32.mrf.mxu3  ;;  %v1195_v15 = vadd.f32 %v1194_v52, %v4345_v46  ;;  %v1298_v9 = vpop.f32.mrf.mxu1 }
 0x281   :  { %v4505_v42 = vadd.f32 %v1504_v57, %v1401_v14  ;;  %v4507_v30 = vadd.f32 %v1298_v9, %v1195_v15 }
 0x283   :  { %5610 = vst [vmem:[#allocation112_spill] sm:$0xff] %v4505_v42 }
 0x284   :  { %5611 = vst [vmem:[#allocation113_spill] sm:$0xff] %v4507_v30 }
 0x286   :  { %v1402_v56 = vpop.f32.mrf.mxu2  ;;  %v1197_v31 = vpop.f32.mrf.mxu0 }
 0x287   :  { %v1403_v40 = vadd.f32 %v1402_v56, %v4356_v54  ;;  %v1506_v5 = vpop.f32.mrf.mxu3  ;;  %v1198_v16 = vadd.f32 %v1197_v31, %v4345_v46  ;;  %v1301_v37 = vpop.f32.mrf.mxu1 }
 0x289   :  { %v4511_v19 = vadd.f32 %v1506_v5, %v1403_v40  ;;  %v4513_v50 = vadd.f32 %v1301_v37, %v1198_v16  ;;  %1236 = vmatmul.bf16.gmra.mxu0 %v4197_v12  ;;  %v214_v5 = vld [vmem:[#allocation5] sm:$0xff]  ;;  %v216_v16 = vld [vmem:[#allocation5 + $0x10] sm:$0xff]  ;;  %v215_v37 = vld [vmem:[#allocation5 + $0x8] sm:$0xff] }
 0x28a   :  { %1340 = vmatmul.bf16.gmra.mxu1 %v4200_v63 }
 0x28b   :  { %5612 = vst [vmem:[#allocation114_spill] sm:$0xff] %v4511_v19  ;;  %1444 = vmatmul.bf16.gmra.mxu2 %v4197_v12  ;;  %v290_v12 = vpack.c.bf16 %v216_v16, %v214_v5 }
 0x28c   :  { %5613 = vst [vmem:[#allocation115_spill] sm:$0xff] %v4513_v50  ;;  %1548 = vmatmul.bf16.gmra.mxu3 %v4200_v63  ;;  %v217_v50 = vld [vmem:[#allocation5 + $0x18] sm:$0xff] }
 0x28e   :  { %v1405_v14 = vpop.f32.mrf.mxu2  ;;  %v1199_v15 = vpop.f32.mrf.mxu0 }
 0x28f   :  { %v1406_v57 = vadd.f32 %v1405_v14, %v4356_v54  ;;  %v1509_v52 = vpop.f32.mrf.mxu3  ;;  %v1200_v31 = vadd.f32 %v1199_v15, %v4345_v46  ;;  %v1303_v9 = vpop.f32.mrf.mxu1  ;;  %v291_v14 = vpack.c.bf16 %v217_v50, %v215_v37  ;;  %v220_v37 = vld [vmem:[#allocation5 + $0x30] sm:$0xff] }
 0x291   :  { %v4521_v56 = vadd.f32 %v1509_v52, %v1406_v57  ;;  %v4523_v40 = vadd.f32 %v1303_v9, %v1200_v31 }
 0x293   :  { %5614 = vst [vmem:[#allocation116_spill] sm:$0xff] %v4521_v56 }
 0x294   :  { %5615 = vst [vmem:[#allocation117_spill] sm:$0xff] %v4523_v40 }
 0x296   :  { %v1407_v19 = vpop.f32.mrf.mxu2  ;;  %v1202_v42 = vpop.f32.mrf.mxu0 }
 0x297   :  { %v1408_v63 = vadd.f32 %v1407_v19, %v4356_v54  ;;  %v1511_v30 = vpop.f32.mrf.mxu3  ;;  %v1203_v22 = vadd.f32 %v1202_v42, %v4345_v46  ;;  %v1306_v58 = vpop.f32.mrf.mxu1 }
 0x299   :  { %v4527_v15 = vadd.f32 %v1511_v30, %v1408_v63  ;;  %v4529_v57 = vadd.f32 %v1306_v58, %v1203_v22  ;;  %1760 = vmatmul.bf16.vlgmr.msra.gmra.mxu0 %v290_v12  ;;  %v218_v30 = vld [vmem:[#allocation5 + $0x20] sm:$0xff]  ;;  %v219_v58 = vld [vmem:[#allocation5 + $0x28] sm:$0xff]  ;;  %v221_v22 = vld [vmem:[#allocation5 + $0x38] sm:$0xff] }
 0x29a   :  { %1864 = vmatmul.bf16.vlgmr.msra.gmra.mxu1 %v291_v14  ;;  %v292_v56 = vpack.c.bf16 %v220_v37, %v218_v30 }
 0x29b   :  { %5616 = vst [vmem:[#allocation118_spill] sm:$0xff] %v4527_v15  ;;  %1968 = vmatmul.bf16.vlgmr.msra.gmra.mxu2 %v290_v12 }
 0x29c   :  { %5617 = vst [vmem:[#allocation119_spill] sm:$0xff] %v4529_v57  ;;  %2072 = vmatmul.bf16.vlgmr.msra.gmra.mxu3 %v291_v14 }
 0x29e   :  { %v1410_v52 = vpop.f32.mrf.mxu2  ;;  %v1204_v5 = vpop.f32.mrf.mxu0 }
 0x29f   :  { %v1411_v31 = vadd.f32 %v1410_v52, %v4356_v54  ;;  %v1514_v9 = vpop.f32.mrf.mxu3  ;;  %v1205_v19 = vadd.f32 %v1204_v5, %v4345_v46  ;;  %v1308_v16 = vpop.f32.mrf.mxu1  ;;  %v293_v52 = vpack.c.bf16 %v221_v22, %v219_v58  ;;  %v222_v22 = vld [vmem:[#allocation5 + $0x40] sm:$0xff] }
 0x2a1   :  { %v4533_v50 = vadd.f32 %v1514_v9, %v1411_v31  ;;  %v4535_v42 = vadd.f32 %v1308_v16, %v1205_v19 }
 0x2a3   :  { %5618 = vst [vmem:[#allocation120_spill] sm:$0xff] %v4533_v50 }
 0x2a4   :  { %5619 = vst [vmem:[#allocation121_spill] sm:$0xff] %v4535_v42 }
 0x2a6   :  { %v1412_v63 = vpop.f32.mrf.mxu2  ;;  %v1207_v57 = vpop.f32.mrf.mxu0 }
 0x2a7   :  { %v1413_v12 = vadd.f32 %v1412_v63, %v4356_v54  ;;  %v1516_v14 = vpop.f32.mrf.mxu3  ;;  %v1208_v15 = vadd.f32 %v1207_v57, %v4345_v46  ;;  %v1311_v40 = vpop.f32.mrf.mxu1 }
 0x2a9   :  { %v4539_v5 = vadd.f32 %v1516_v14, %v1413_v12  ;;  %v4541_v31 = vadd.f32 %v1311_v40, %v1208_v15  ;;  %1765 = vmatmul.bf16.gmra.mxu0 %v292_v56  ;;  %v224_v12 = vld [vmem:[#allocation5 + $0x50] sm:$0xff]  ;;  %v223_v40 = vld [vmem:[#allocation5 + $0x48] sm:$0xff]  ;;  %v225_v15 = vld [vmem:[#allocation5 + $0x58] sm:$0xff] }
 0x2aa   :  { %1869 = vmatmul.bf16.gmra.mxu1 %v293_v52 }
 0x2ab   :  { %5620 = vst [vmem:[#allocation122_spill] sm:$0xff] %v4539_v5  ;;  %1973 = vmatmul.bf16.gmra.mxu2 %v292_v56 }
 0x2ac   :  { %5621 = vst [vmem:[#allocation123_spill] sm:$0xff] %v4541_v31  ;;  %2077 = vmatmul.bf16.gmra.mxu3 %v293_v52  ;;  %v294_v31 = vpack.c.bf16 %v224_v12, %v222_v22 }
 0x2ae   :  { %v1415_v9 = vpop.f32.mrf.mxu2  ;;  %v1209_v30 = vpop.f32.mrf.mxu0 }
 0x2af   :  { %v1416_v19 = vadd.f32 %v1415_v9, %v4356_v54  ;;  %v1519_v16 = vpop.f32.mrf.mxu3  ;;  %v1210_v37 = vadd.f32 %v1209_v30, %v4345_v46  ;;  %v1313_v63 = vpop.f32.mrf.mxu1  ;;  %v295_v9 = vpack.c.bf16 %v225_v15, %v223_v40  ;;  %v226_v15 = vld [vmem:[#allocation5 + $0x60] sm:$0xff] }
 0x2b1   :  { %v4545_v58 = vadd.f32 %v1519_v16, %v1416_v19  ;;  %v4547_v57 = vadd.f32 %v1313_v63, %v1210_v37 }
 0x2b3   :  { %5622 = vst [vmem:[#allocation124_spill] sm:$0xff] %v4545_v58 }
 0x2b4   :  { %5623 = vst [vmem:[#allocation125_spill] sm:$0xff] %v4547_v57 }
 0x2b6   :  { %v1417_v14 = vpop.f32.mrf.mxu2  ;;  %v1212_v5 = vpop.f32.mrf.mxu0 }
 0x2b7   :  { %v1418_v56 = vadd.f32 %v1417_v14, %v4356_v54  ;;  %v1521_v52 = vpop.f32.mrf.mxu3  ;;  %v1213_v42 = vadd.f32 %v1212_v5, %v4345_v46  ;;  %v1316_v50 = vpop.f32.mrf.mxu1 }
 0x2b9   :  { %v4551_v30 = vadd.f32 %v1521_v52, %v1418_v56  ;;  %v4553_v19 = vadd.f32 %v1316_v50, %v1213_v42  ;;  %1770 = vmatmul.bf16.gmra.mxu0 %v294_v31  ;;  %v228_v56 = vld [vmem:[#allocation5 + $0x70] sm:$0xff]  ;;  %v227_v50 = vld [vmem:[#allocation5 + $0x68] sm:$0xff]  ;;  %v229_v42 = vld [vmem:[#allocation5 + $0x78] sm:$0xff] }
 0x2ba   :  { %1874 = vmatmul.bf16.gmra.mxu1 %v295_v9 }
 0x2bb   :  { %5624 = vst [vmem:[#allocation126_spill] sm:$0xff] %v4551_v30  ;;  %1978 = vmatmul.bf16.gmra.mxu2 %v294_v31 }
 0x2bc   :  { %5625 = vst [vmem:[#allocation127_spill] sm:$0xff] %v4553_v19  ;;  %2082 = vmatmul.bf16.gmra.mxu3 %v295_v9  ;;  %v296_v19 = vpack.c.bf16 %v228_v56, %v226_v15 }
 0x2be   :  { %v1420_v16 = vpop.f32.mrf.mxu2  ;;  %v1214_v22 = vpop.f32.mrf.mxu0 }
 0x2bf   :  { %v1421_v37 = vadd.f32 %v1420_v16, %v4356_v54  ;;  %v1524_v63 = vpop.f32.mrf.mxu3  ;;  %v1215_v12 = vadd.f32 %v1214_v22, %v4345_v46  ;;  %v1318_v14 = vpop.f32.mrf.mxu1  ;;  %v297_v16 = vpack.c.bf16 %v229_v42, %v227_v50  ;;  %v230_v42 = vld [vmem:[#allocation5 + $0x80] sm:$0xff] }
 0x2c1   :  { %v4557_v40 = vadd.f32 %v1524_v63, %v1421_v37  ;;  %v4559_v5 = vadd.f32 %v1318_v14, %v1215_v12 }
 0x2c3   :  { %5626 = vst [vmem:[#allocation128_spill] sm:$0xff] %v4557_v40 }
 0x2c4   :  { %5627 = vst [vmem:[#allocation129_spill] sm:$0xff] %v4559_v5 }
 0x2c6   :  { %v1422_v52 = vpop.f32.mrf.mxu2  ;;  %v1217_v30 = vpop.f32.mrf.mxu0 }
 0x2c7   :  { %v1423_v31 = vadd.f32 %v1422_v52, %v4356_v54  ;;  %v1526_v9 = vpop.f32.mrf.mxu3  ;;  %v1218_v57 = vadd.f32 %v1217_v30, %v4345_v46  ;;  %v1321_v58 = vpop.f32.mrf.mxu1 }
 0x2c9   :  { %v4563_v22 = vadd.f32 %v1526_v9, %v1423_v31  ;;  %v4565_v37 = vadd.f32 %v1321_v58, %v1218_v57  ;;  %1775 = vmatmul.bf16.gmra.mxu0 %v296_v19  ;;  %v232_v31 = vld [vmem:[#allocation5 + $0x90] sm:$0xff]  ;;  %v231_v58 = vld [vmem:[#allocation5 + $0x88] sm:$0xff]  ;;  %v233_v57 = vld [vmem:[#allocation5 + $0x98] sm:$0xff] }
 0x2ca   :  { %1879 = vmatmul.bf16.gmra.mxu1 %v297_v16 }
 0x2cb   :  { %5628 = vst [vmem:[#allocation130_spill] sm:$0xff] %v4563_v22  ;;  %1983 = vmatmul.bf16.gmra.mxu2 %v296_v19 }
 0x2cc   :  { %5629 = vst [vmem:[#allocation131_spill] sm:$0xff] %v4565_v37  ;;  %2087 = vmatmul.bf16.gmra.mxu3 %v297_v16  ;;  %v298_v37 = vpack.c.bf16 %v232_v31, %v230_v42 }
 0x2ce   :  { %v1425_v63 = vpop.f32.mrf.mxu2  ;;  %v1219_v15 = vpop.f32.mrf.mxu0 }
 0x2cf   :  { %v1426_v12 = vadd.f32 %v1425_v63, %v4356_v54  ;;  %v1529_v14 = vpop.f32.mrf.mxu3  ;;  %v1220_v56 = vadd.f32 %v1219_v15, %v4345_v46  ;;  %v1323_v52 = vpop.f32.mrf.mxu1  ;;  %v299_v63 = vpack.c.bf16 %v233_v57, %v231_v58  ;;  %v234_v57 = vld [vmem:[#allocation5 + $0xa0] sm:$0xff] }
 0x2d1   :  { %v4569_v50 = vadd.f32 %v1529_v14, %v1426_v12  ;;  %v4571_v30 = vadd.f32 %v1323_v52, %v1220_v56 }
 0x2d3   :  { %5630 = vst [vmem:[#allocation132_spill] sm:$0xff] %v4569_v50 }
 0x2d4   :  { %5631 = vst [vmem:[#allocation133_spill] sm:$0xff] %v4571_v30 }
 0x2d6   :  { %v1427_v9 = vpop.f32.mrf.mxu2  ;;  %v1222_v22 = vpop.f32.mrf.mxu0 }
 0x2d7   :  { %v1428_v19 = vadd.f32 %v1427_v9, %v4356_v54  ;;  %v1531_v16 = vpop.f32.mrf.mxu3  ;;  %v1223_v5 = vadd.f32 %v1222_v22, %v4345_v46  ;;  %v1326_v40 = vpop.f32.mrf.mxu1 }
 0x2d9   :  { %v4575_v15 = vadd.f32 %v1531_v16, %v1428_v19  ;;  %v4577_v12 = vadd.f32 %v1326_v40, %v1223_v5  ;;  %1780 = vmatmul.bf16.gmra.mxu0 %v298_v37  ;;  %v236_v19 = vld [vmem:[#allocation5 + $0xb0] sm:$0xff]  ;;  %v235_v40 = vld [vmem:[#allocation5 + $0xa8] sm:$0xff]  ;;  %v237_v5 = vld [vmem:[#allocation5 + $0xb8] sm:$0xff] }
 0x2da   :  { %1884 = vmatmul.bf16.gmra.mxu1 %v299_v63 }
 0x2db   :  { %5632 = vst [vmem:[#allocation134_spill] sm:$0xff] %v4575_v15  ;;  %1988 = vmatmul.bf16.gmra.mxu2 %v298_v37 }
 0x2dc   :  { %5633 = vst [vmem:[#allocation135_spill] sm:$0xff] %v4577_v12  ;;  %2092 = vmatmul.bf16.gmra.mxu3 %v299_v63  ;;  %v300_v12 = vpack.c.bf16 %v236_v19, %v234_v57 }
 0x2de   :  { %v1430_v14 = vpop.f32.mrf.mxu2  ;;  %v1224_v42 = vpop.f32.mrf.mxu0 }
 0x2df   :  { %v1431_v56 = vadd.f32 %v1430_v14, %v4356_v54  ;;  %v1534_v52 = vpop.f32.mrf.mxu3  ;;  %v1225_v31 = vadd.f32 %v1224_v42, %v4345_v46  ;;  %v1328_v9 = vpop.f32.mrf.mxu1  ;;  %v301_v14 = vpack.c.bf16 %v237_v5, %v235_v40  ;;  %v238_v5 = vld [vmem:[#allocation5 + $0xc0] sm:$0xff] }
 0x2e1   :  { %v4581_v58 = vadd.f32 %v1534_v52, %v1431_v56  ;;  %v4583_v22 = vadd.f32 %v1328_v9, %v1225_v31 }
 0x2e3   :  { %5634 = vst [vmem:[#allocation136_spill] sm:$0xff] %v4581_v58 }
 0x2e4   :  { %5635 = vst [vmem:[#allocation137_spill] sm:$0xff] %v4583_v22 }
 0x2e6   :  { %v1432_v16 = vpop.f32.mrf.mxu2  ;;  %v1227_v15 = vpop.f32.mrf.mxu0 }
 0x2e7   :  { %v1433_v37 = vadd.f32 %v1432_v16, %v4356_v54  ;;  %v1536_v63 = vpop.f32.mrf.mxu3  ;;  %v1228_v30 = vadd.f32 %v1227_v15, %v4345_v46  ;;  %v1331_v50 = vpop.f32.mrf.mxu1 }
 0x2e9   :  { %v4587_v42 = vadd.f32 %v1536_v63, %v1433_v37  ;;  %v4589_v56 = vadd.f32 %v1331_v50, %v1228_v30  ;;  %1785 = vmatmul.bf16.gmra.mxu0 %v300_v12  ;;  %v240_v37 = vld [vmem:[#allocation5 + $0xd0] sm:$0xff]  ;;  %v239_v50 = vld [vmem:[#allocation5 + $0xc8] sm:$0xff]  ;;  %v241_v30 = vld [vmem:[#allocation5 + $0xd8] sm:$0xff] }
 0x2ea   :  { %1889 = vmatmul.bf16.gmra.mxu1 %v301_v14 }
 0x2eb   :  { %5636 = vst [vmem:[#allocation138_spill] sm:$0xff] %v4587_v42  ;;  %1993 = vmatmul.bf16.gmra.mxu2 %v300_v12 }
 0x2ec   :  { %5637 = vst [vmem:[#allocation139_spill] sm:$0xff] %v4589_v56  ;;  %2097 = vmatmul.bf16.gmra.mxu3 %v301_v14  ;;  %v302_v56 = vpack.c.bf16 %v240_v37, %v238_v5 }
 0x2ee   :  { %v1435_v52 = vpop.f32.mrf.mxu2  ;;  %v1229_v57 = vpop.f32.mrf.mxu0 }
 0x2ef   :  { %v1436_v31 = vadd.f32 %v1435_v52, %v4356_v54  ;;  %v1539_v9 = vpop.f32.mrf.mxu3  ;;  %v1230_v19 = vadd.f32 %v1229_v57, %v4345_v46  ;;  %v1333_v16 = vpop.f32.mrf.mxu1  ;;  %v303_v52 = vpack.c.bf16 %v241_v30, %v239_v50  ;;  %v242_v30 = vld [vmem:[#allocation5 + $0xe0] sm:$0xff] }
 0x2f1   :  { %v4593_v40 = vadd.f32 %v1539_v9, %v1436_v31  ;;  %v4595_v15 = vadd.f32 %v1333_v16, %v1230_v19 }
 0x2f3   :  { %5638 = vst [vmem:[#allocation140_spill] sm:$0xff] %v4593_v40 }
 0x2f4   :  { %5639 = vst [vmem:[#allocation141_spill] sm:$0xff] %v4595_v15 }
 0x2f6   :  { %v1437_v63 = vpop.f32.mrf.mxu2  ;;  %v1232_v42 = vpop.f32.mrf.mxu0 }
 0x2f7   :  { %v1438_v12 = vadd.f32 %v1437_v63, %v4356_v54  ;;  %v1541_v14 = vpop.f32.mrf.mxu3  ;;  %v1233_v22 = vadd.f32 %v1232_v42, %v4345_v46  ;;  %v1336_v58 = vpop.f32.mrf.mxu1 }
 0x2f9   :  { %v4599_v57 = vadd.f32 %v1541_v14, %v1438_v12  ;;  %v4601_v31 = vadd.f32 %v1336_v58, %v1233_v22  ;;  %1790 = vmatmul.bf16.gmra.mxu0 %v302_v56  ;;  %v244_v12 = vld [vmem:[#allocation5 + $0xf0] sm:$0xff]  ;;  %v243_v58 = vld [vmem:[#allocation5 + $0xe8] sm:$0xff]  ;;  %v245_v22 = vld [vmem:[#allocation5 + $0xf8] sm:$0xff] }
 0x2fa   :  { %1894 = vmatmul.bf16.gmra.mxu1 %v303_v52 }
 0x2fb   :  { %5640 = vst [vmem:[#allocation142_spill] sm:$0xff] %v4599_v57  ;;  %1998 = vmatmul.bf16.gmra.mxu2 %v302_v56 }
 0x2fc   :  { %5641 = vst [vmem:[#allocation143_spill] sm:$0xff] %v4601_v31  ;;  %2102 = vmatmul.bf16.gmra.mxu3 %v303_v52  ;;  %v304_v31 = vpack.c.bf16 %v244_v12, %v242_v30 }
 0x2fe   :  { %v1440_v9 = vpop.f32.mrf.mxu2  ;;  %v1234_v5 = vpop.f32.mrf.mxu0 }
 0x2ff   :  { %v1441_v19 = vadd.f32 %v1440_v9, %v4356_v54  ;;  %v1544_v16 = vpop.f32.mrf.mxu3  ;;  %v1235_v37 = vadd.f32 %v1234_v5, %v4345_v46  ;;  %v1338_v63 = vpop.f32.mrf.mxu1  ;;  %v305_v9 = vpack.c.bf16 %v245_v22, %v243_v58  ;;  %v246_v22 = vld [vmem:[#allocation5 + $0x100] sm:$0xff] }
 0x301   :  { %v4605_v50 = vadd.f32 %v1544_v16, %v1441_v19  ;;  %v4607_v42 = vadd.f32 %v1338_v63, %v1235_v37 }
 0x303   :  { %5642 = vst [vmem:[#allocation144_spill] sm:$0xff] %v4605_v50 }
 0x304   :  { %5643 = vst [vmem:[#allocation145_spill] sm:$0xff] %v4607_v42 }
 0x306   :  { %v1442_v14 = vpop.f32.mrf.mxu2  ;;  %v1237_v57 = vpop.f32.mrf.mxu0 }
 0x307   :  { %v1443_v56 = vadd.f32 %v1442_v14, %v4356_v54  ;;  %v1546_v52 = vpop.f32.mrf.mxu3  ;;  %v1238_v15 = vadd.f32 %v1237_v57, %v4345_v46  ;;  %v1341_v40 = vpop.f32.mrf.mxu1 }
 0x309   :  { %v4611_v5 = vadd.f32 %v1546_v52, %v1443_v56  ;;  %v4613_v19 = vadd.f32 %v1341_v40, %v1238_v15  ;;  %1795 = vmatmul.bf16.gmra.mxu0 %v304_v31  ;;  %v248_v56 = vld [vmem:[#allocation5 + $0x110] sm:$0xff]  ;;  %v1586_v40 = vld [vmem:[%s5486_s5] sm:$0x3]  ;;  %v247_v15 = vld [vmem:[#allocation5 + $0x108] sm:$0xff]  ;;  %s3872_s5 = smov [#allocation11]  }
 0x30a   :  { %1899 = vmatmul.bf16.gmra.mxu1 %v305_v9  ;;  %s2975_s23 = sshll.u32 %s3872_s5, 4  ;;  %s2976_s23 = int_to_ptr.vmem [resolvable:$true] %s2975_s23 }
 0x30b   :  { %5644 = vst [vmem:[#allocation146_spill] sm:$0xff] %v4611_v5  ;;  %2003 = vmatmul.bf16.gmra.mxu2 %v304_v31  ;;  %v249_v31 = vld [vmem:[#allocation5 + $0x118] sm:$0xff]  ;;  %v4625_v5 = vperm.slane %v1586_v40, 0 }
 0x30c   :  { %5645 = vst [vmem:[#allocation147_spill] sm:$0xff] %v4613_v19  ;;  %2107 = vmatmul.bf16.gmra.mxu3 %v305_v9  ;;  %v306_v9 = vpack.c.bf16 %v248_v56, %v246_v22 }
 0x30e   :  { %v1445_v16 = vpop.f32.mrf.mxu2  ;;  %v1239_v30 = vpop.f32.mrf.mxu0 }
 0x30f   :  { %v1446_v37 = vadd.f32 %v1445_v16, %v4356_v54  ;;  %v1549_v63 = vpop.f32.mrf.mxu3  ;;  %v1240_v12 = vadd.f32 %v1239_v30, %v4345_v46  ;;  %v1343_v14 = vpop.f32.mrf.mxu1 }
 0x311   :  { %v4617_v58 = vadd.f32 %v1549_v63, %v1446_v37  ;;  %v4619_v57 = vadd.f32 %v1343_v14, %v1240_v12  ;;  %v307_v37 = vpack.c.bf16 %v249_v31, %v247_v15  ;;  %v4630_v14 = vperm.slane %v1586_v40, 1  ;;  %v252_v40 = vld [vmem:[#allocation5 + $0x130] sm:$0xff] }
 0x313   :  { %5646 = vst [vmem:[#allocation148_spill] sm:$0xff] %v4617_v58 }
 0x314   :  { %5647 = vst [vmem:[#allocation149_spill] sm:$0xff] %v4619_v57 }
 0x316   :  { %v1447_v52 = vpop.f32.mrf.mxu2  ;;  %v1761_v46 = vpop.f32.mrf.mxu0 }
 0x317   :  { %v1448_v16 = vadd.f32 %v1447_v52, %v4356_v54  ;;  %v1551_v19 = vpop.f32.mrf.mxu3  ;;  %v1865_v63 = vpop.f32.mrf.mxu1  ;;  %v1762_v12 = vadd.f32 %v1761_v46, %v4625_v5  ;;  %v253_v46 = vld [vmem:[#allocation5 + $0x138] sm:$0xff] }
 0x319   :  { %v4627_v30 = vadd.f32 %v1551_v19, %v1448_v16  ;;  %1800 = vmatmul.bf16.gmra.mxu0 %v306_v9  ;;  %v1866_v22 = vadd.f32 %v1865_v63, %v1762_v12  ;;  %v251_v16 = vld [vmem:[#allocation5 + $0x128] sm:$0xff] }
 0x31a   :  { %1904 = vmatmul.bf16.gmra.mxu1 %v307_v37 }
 0x31b   :  { %5648 = vst [vmem:[#allocation150_spill] sm:$0xff] %v4627_v30  ;;  %2008 = vmatmul.bf16.gmra.mxu2 %v306_v9  ;;  %v4635_v19 = vmul.f32 %v1866_v22, %v4003_v25  ;;  %v250_v9 = vld [vmem:[#allocation5 + $0x120] sm:$0xff]  ;;  %v309_v25 = vpack.c.bf16 %v253_v46, %v251_v16 }
 0x31c   :  { %2112 = vmatmul.bf16.gmra.mxu3 %v307_v37  ;;  %v308_v63 = vpack.c.bf16 %v252_v40, %v250_v9 }
 0x31e   :  { %v1969_v57 = vpop.f32.mrf.mxu2  ;;  %v1763_v52 = vpop.f32.mrf.mxu0 }
 0x31f   :  { %v1970_v54 = vadd.f32 %v1969_v57, %v4630_v14  ;;  %v2073_v56 = vpop.f32.mrf.mxu3  ;;  %v1867_v58 = vpop.f32.mrf.mxu1  ;;  %v1764_v15 = vadd.f32 %v1763_v52, %v4625_v5 }
 0x321   :  { %v2074_v42 = vadd.f32 %v2073_v56, %v1970_v54  ;;  %v1868_v12 = vadd.f32 %v1867_v58, %v1764_v15 }
 0x323   :  { %v4638_v31 = vmul.f32 %v2074_v42, %v4013_v44  ;;  %v4645_v42 = vmul.f32 %v1868_v12, %v4015_v45  ;;  %v256_v12 = vld [vmem:[#allocation5 + $0x150] sm:$0xff] }
 0x325   :  { %v2244_v37 = vmax.f32 %v4635_v19, %v4638_v31 }
 0x326   :  { %v1971_v57 = vpop.f32.mrf.mxu2  ;;  %v1766_v52 = vpop.f32.mrf.mxu0 }
 0x327   :  { %v1972_v54 = vadd.f32 %v1971_v57, %v4630_v14  ;;  %v2075_v56 = vpop.f32.mrf.mxu3  ;;  %2245 = vmax.xlane.f32.xlu0 %v2244_v37  ;;  %v1870_v22 = vpop.f32.mrf.mxu1  ;;  %v1767_v44 = vadd.f32 %v1766_v52, %v4625_v5 }
 0x329   :  { %v2076_v30 = vadd.f32 %v2075_v56, %v1972_v54  ;;  %1805 = vmatmul.bf16.gmra.mxu0 %v308_v63  ;;  %v1871_v9 = vadd.f32 %v1870_v22, %v1767_v44  ;;  %v255_v54 = vld [vmem:[#allocation5 + $0x148] sm:$0xff]  ;;  %v257_v56 = vld [vmem:[#allocation5 + $0x158] sm:$0xff] }
 0x32a   :  { %1909 = vmatmul.bf16.gmra.mxu1 %v309_v25 }
 0x32b   :  { %2013 = vmatmul.bf16.gmra.mxu2 %v308_v63  ;;  %v4648_v50 = vmul.f32 %v2076_v30, %v4023_v61  ;;  %v4655_v45 = vmul.f32 %v1871_v9, %v4025_v62  ;;  %v254_v30 = vld [vmem:[#allocation5 + $0x140] sm:$0xff]  ;;  %v311_v62 = vpack.c.bf16 %v257_v56, %v255_v54 }
 0x32c   :  { %2117 = vmatmul.bf16.gmra.mxu3 %v309_v25  ;;  %v310_v22 = vpack.c.bf16 %v256_v12, %v254_v30 }
 0x32d   :  { %v2247_v58 = vmax.f32 %v4645_v42, %v4648_v50 }
 0x32e   :  { %v1974_v15 = vpop.f32.mrf.mxu2  ;;  %v1768_v46 = vpop.f32.mrf.mxu0 }
 0x32f   :  { %v1975_v40 = vadd.f32 %v1974_v15, %v4630_v14  ;;  %v2078_v16 = vpop.f32.mrf.mxu3  ;;  %2248 = vmax.xlane.f32.xlu0 %v2247_v58  ;;  %v1872_v37 = vpop.f32.mrf.mxu1  ;;  %v1769_v63 = vadd.f32 %v1768_v46, %v4625_v5  ;;  %v5649_v46 = vld [vmem:[#allocation16_spill] sm:$0xff] }
 0x331   :  { %v2079_v57 = vadd.f32 %v2078_v16, %v1975_v40  ;;  %v1873_v44 = vadd.f32 %v1872_v37, %v1769_v63 }
 0x333   :  { %v4658_v61 = vmul.f32 %v2079_v57, %v4033_v11  ;;  %v4665_v57 = vmul.f32 %v1873_v44, %v5649_v46  ;;  %v5651_v44 = vld [vmem:[#allocation18_spill] sm:$0xff] }
 0x334   :  { %v261_v46 = vld [vmem:[#allocation5 + $0x178] sm:$0xff] }
 0x335   :  { %v2250_v52 = vmax.f32 %v4655_v45, %v4658_v61 }
 0x336   :  { %v1976_v25 = vpop.f32.mrf.mxu2  ;;  %v1771_v40 = vpop.f32.mrf.mxu0 }
 0x337   :  { %v1977_v58 = vadd.f32 %v1976_v25, %v4630_v14  ;;  %v2080_v15 = vpop.f32.mrf.mxu3  ;;  %2251 = vmax.xlane.f32.xlu1 %v2250_v52  ;;  %v1875_v9 = vpop.f32.mrf.mxu1  ;;  %v1772_v11 = vadd.f32 %v1771_v40, %v4625_v5  ;;  %v258_v40 = vld [vmem:[#allocation5 + $0x160] sm:$0xff] }
 0x339   :  { %v2081_v16 = vadd.f32 %v2080_v15, %v1977_v58  ;;  %1810 = vmatmul.bf16.gmra.mxu0 %v310_v22  ;;  %v1876_v30 = vadd.f32 %v1875_v9, %v1772_v11 }
 0x33a   :  { %1914 = vmatmul.bf16.gmra.mxu1 %v311_v62 }
 0x33b   :  { %2018 = vmatmul.bf16.gmra.mxu2 %v310_v22  ;;  %v4668_v49 = vmul.f32 %v2081_v16, %v5650_v32  ;;  %v4675_v58 = vmul.f32 %v1876_v30, %v5651_v44  ;;  %v5652_v32 = vld [vmem:[#allocation19_spill] sm:$0xff]  ;;  %v259_v16 = vld [vmem:[#allocation5 + $0x168] sm:$0xff] }
 0x33c   :  { %2122 = vmatmul.bf16.gmra.mxu3 %v311_v62  ;;  %v260_v62 = vld [vmem:[#allocation5 + $0x170] sm:$0xff]  ;;  %v313_v30 = vpack.c.bf16 %v261_v46, %v259_v16 }
 0x33d   :  { %v2253_v37 = vmax.f32 %v4665_v57, %v4668_v49 }
 0x33e   :  { %v1979_v63 = vpop.f32.mrf.mxu2  ;;  %v1773_v56 = vpop.f32.mrf.mxu0 }
 0x33f   :  { %v1980_v12 = vadd.f32 %v1979_v63, %v4630_v14  ;;  %v2083_v54 = vpop.f32.mrf.mxu3  ;;  %2254 = vmax.xlane.f32.xlu1 %v2253_v37  ;;  %v1877_v52 = vpop.f32.mrf.mxu1  ;;  %v1774_v22 = vadd.f32 %v1773_v56, %v4625_v5  ;;  %v312_v37 = vpack.c.bf16 %v260_v62, %v258_v40 }
 0x341   :  { %v2084_v25 = vadd.f32 %v2083_v54, %v1980_v12  ;;  %v1878_v63 = vadd.f32 %v1877_v52, %v1774_v22 }
 0x343   :  { %v4678_v15 = vmul.f32 %v2084_v25, %v5652_v32  ;;  %v5653_v32 = vld [vmem:[#allocation20_spill] sm:$0xff] }
 0x344   :  { %v4685_v24 = vmul.f32 %v1878_v63, %v5653_v32  ;;  %v5656_v63 = vld [vmem:[#allocation23_spill] sm:$0xff] }
 0x345   :  { %v2256_v9 = vmax.f32 %v4675_v58, %v4678_v15  ;;  %v265_v32 = vld [vmem:[#allocation5 + $0x198] sm:$0xff] }
 0x346   :  { %v1981_v11 = vpop.f32.mrf.mxu2  ;;  %v1776_v56 = vpop.f32.mrf.mxu0 }
 0x347   :  { %v1982_v12 = vadd.f32 %v1981_v11, %v4630_v14  ;;  %v2085_v54 = vpop.f32.mrf.mxu3  ;;  %2257 = vmax.xlane.f32.xlu2 %v2256_v9  ;;  %v1880_v44 = vpop.f32.mrf.mxu1  ;;  %v1777_v25 = vadd.f32 %v1776_v56, %v4625_v5  ;;  %v264_v56 = vld [vmem:[#allocation5 + $0x190] sm:$0xff] }
 0x349   :  { %v2086_v51 = vadd.f32 %v2085_v54, %v1982_v12  ;;  %1815 = vmatmul.bf16.gmra.mxu0 %v312_v37  ;;  %v1881_v40 = vadd.f32 %v1880_v44, %v1777_v25 }
 0x34a   :  { %1919 = vmatmul.bf16.gmra.mxu1 %v313_v30 }
 0x34b   :  { %2023 = vmatmul.bf16.gmra.mxu2 %v312_v37  ;;  %v4688_v8 = vmul.f32 %v2086_v51, %v5654_v29  ;;  %v5655_v37 = vld [vmem:[#allocation22_spill] sm:$0xff]  ;;  %v262_v51 = vld [vmem:[#allocation5 + $0x180] sm:$0xff] }
 0x34c   :  { %2127 = vmatmul.bf16.gmra.mxu3 %v313_v30  ;;  %v4694_v12 = vmul.f32 %v1881_v40, %v5655_v37  ;;  %v263_v30 = vld [vmem:[#allocation5 + $0x188] sm:$0xff] }
 0x34d   :  { %v2259_v52 = vmax.f32 %v4685_v24, %v4688_v8  ;;  %v315_v37 = vpack.c.bf16 %v265_v32, %v263_v30 }
 0x34e   :  { %v1984_v22 = vpop.f32.mrf.mxu2  ;;  %v1778_v46 = vpop.f32.mrf.mxu0 }
 0x34f   :  { %v1985_v62 = vadd.f32 %v1984_v22, %v4630_v14  ;;  %v2088_v16 = vpop.f32.mrf.mxu3  ;;  %2260 = vmax.xlane.f32.xlu2 %v2259_v52  ;;  %v1882_v9 = vpop.f32.mrf.mxu1  ;;  %v1779_v29 = vadd.f32 %v1778_v46, %v4625_v5  ;;  %v314_v52 = vpack.c.bf16 %v264_v56, %v262_v51 }
 0x351   :  { %v2089_v11 = vadd.f32 %v2088_v16, %v1985_v62  ;;  %v1883_v22 = vadd.f32 %v1882_v9, %v1779_v29 }
 0x353   :  { %v4697_v54 = vmul.f32 %v2089_v11, %v5656_v63  ;;  %v4705_v26 = vmul.f32 %v1883_v22, %v5657_v6  ;;  %v5660_v6 = vld [vmem:[#allocation27_spill] sm:$0xff] }
 0x355   :  { %v2262_v44 = vmax.f32 %v4694_v12, %v4697_v54 }
 0x356   :  { %v1986_v25 = vpop.f32.mrf.mxu2  ;;  %v1781_v40 = vpop.f32.mrf.mxu0 }
 0x357   :  { %v1987_v62 = vadd.f32 %v1986_v25, %v4630_v14  ;;  %v2090_v16 = vpop.f32.mrf.mxu3  ;;  %2263 = vmax.xlane.f32.xlu0 %v2262_v44  ;;  %v1885_v11 = vpop.f32.mrf.mxu1  ;;  %v1782_v46 = vadd.f32 %v1781_v40, %v4625_v5  ;;  %v268_v40 = vld [vmem:[#allocation5 + $0x1b0] sm:$0xff] }
 0x359   :  { %v2091_v63 = vadd.f32 %v2090_v16, %v1987_v62  ;;  %1820 = vmatmul.bf16.gmra.mxu0 %v314_v52  ;;  %v1886_v51 = vadd.f32 %v1885_v11, %v1782_v46  ;;  %v266_v16 = vld [vmem:[#allocation5 + $0x1a0] sm:$0xff] }
 0x35a   :  { %1924 = vmatmul.bf16.gmra.mxu1 %v315_v37 }
 0x35b   :  { %2028 = vmatmul.bf16.gmra.mxu2 %v314_v52  ;;  %v4708_v23 = vmul.f32 %v2091_v63, %v5658_v21  ;;  %v5659_v52 = vld [vmem:[#allocation26_spill] sm:$0xff] }
 0x35c   :  { %2132 = vmatmul.bf16.gmra.mxu3 %v315_v37  ;;  %v4714_v62 = vmul.f32 %v1886_v51, %v5659_v52  ;;  %v267_v37 = vld [vmem:[#allocation5 + $0x1a8] sm:$0xff]  ;;  %v269_v63 = vld [vmem:[#allocation5 + $0x1b8] sm:$0xff] }
 0x35d   :  { %v2265_v9 = vmax.f32 %v4705_v26, %v4708_v23  ;;  %v317_v52 = vpack.c.bf16 %v269_v63, %v267_v37 }
 0x35e   :  { %v1989_v29 = vpop.f32.mrf.mxu2  ;;  %v1783_v32 = vpop.f32.mrf.mxu0 }
 0x35f   :  { %v1990_v56 = vadd.f32 %v1989_v29, %v4630_v14  ;;  %v2093_v30 = vpop.f32.mrf.mxu3  ;;  %2266 = vmax.xlane.f32.xlu1 %v2265_v9  ;;  %v1887_v44 = vpop.f32.mrf.mxu1  ;;  %v1784_v21 = vadd.f32 %v1783_v32, %v4625_v5  ;;  %v316_v9 = vpack.c.bf16 %v268_v40, %v266_v16 }
 0x361   :  { %v2094_v25 = vadd.f32 %v2093_v30, %v1990_v56  ;;  %v1888_v29 = vadd.f32 %v1887_v44, %v1784_v21 }
 0x363   :  { %v4717_v22 = vmul.f32 %v2094_v25, %v5660_v6  ;;  %v4725_v28 = vmul.f32 %v1888_v29, %v5661_v34  ;;  %v5664_v34 = vld [vmem:[#allocation31_spill] sm:$0xff] }
 0x365   :  { %v2268_v11 = vmax.f32 %v4714_v62, %v4717_v22 }
 0x366   :  { %v1991_v46 = vpop.f32.mrf.mxu2  ;;  %v1786_v51 = vpop.f32.mrf.mxu0 }
 0x367   :  { %v1992_v56 = vadd.f32 %v1991_v46, %v4630_v14  ;;  %v2095_v30 = vpop.f32.mrf.mxu3  ;;  %2269 = vmax.xlane.f32.xlu2 %v2268_v11  ;;  %v1890_v25 = vpop.f32.mrf.mxu1  ;;  %v1787_v32 = vadd.f32 %v1786_v51, %v4625_v5  ;;  %v272_v51 = vld [vmem:[#allocation5 + $0x1d0] sm:$0xff] }
 0x369   :  { %v2096_v6 = vadd.f32 %v2095_v30, %v1992_v56  ;;  %1825 = vmatmul.bf16.gmra.mxu0 %v316_v9  ;;  %v1891_v16 = vadd.f32 %v1890_v25, %v1787_v32  ;;  %v270_v30 = vld [vmem:[#allocation5 + $0x1c0] sm:$0xff] }
 0x36a   :  { %1929 = vmatmul.bf16.gmra.mxu1 %v317_v52 }
 0x36b   :  { %2033 = vmatmul.bf16.gmra.mxu2 %v316_v9  ;;  %v4728_v38 = vmul.f32 %v2096_v6, %v5662_v20  ;;  %v5663_v9 = vld [vmem:[#allocation30_spill] sm:$0xff] }
 0x36c   :  { %2137 = vmatmul.bf16.gmra.mxu3 %v317_v52  ;;  %v4734_v56 = vmul.f32 %v1891_v16, %v5663_v9  ;;  %v271_v52 = vld [vmem:[#allocation5 + $0x1c8] sm:$0xff]  ;;  %v273_v6 = vld [vmem:[#allocation5 + $0x1d8] sm:$0xff] }
 0x36d   :  { %v2271_v44 = vmax.f32 %v4725_v28, %v4728_v38  ;;  %v319_v9 = vpack.c.bf16 %v273_v6, %v271_v52 }
 0x36e   :  { %v1994_v21 = vpop.f32.mrf.mxu2  ;;  %v1788_v63 = vpop.f32.mrf.mxu0 }
 0x36f   :  { %v1995_v40 = vadd.f32 %v1994_v21, %v4630_v14  ;;  %v2098_v37 = vpop.f32.mrf.mxu3  ;;  %2272 = vmax.xlane.f32.xlu0 %v2271_v44  ;;  %v1892_v11 = vpop.f32.mrf.mxu1  ;;  %v1789_v20 = vadd.f32 %v1788_v63, %v4625_v5  ;;  %v318_v44 = vpack.c.bf16 %v272_v51, %v270_v30 }
 0x371   :  { %v2099_v46 = vadd.f32 %v2098_v37, %v1995_v40  ;;  %v1893_v21 = vadd.f32 %v1892_v11, %v1789_v20 }
 0x373   :  { %v4737_v29 = vmul.f32 %v2099_v46, %v5664_v34  ;;  %v4745_v0 = vmul.f32 %v1893_v21, %v5665_v10  ;;  %v5668_v10 = vld [vmem:[#allocation35_spill] sm:$0xff] }
 0x375   :  { %v2274_v25 = vmax.f32 %v4734_v56, %v4737_v29 }
 0x376   :  { %v1996_v32 = vpop.f32.mrf.mxu2  ;;  %v1791_v16 = vpop.f32.mrf.mxu0 }
 0x377   :  { %v1997_v40 = vadd.f32 %v1996_v32, %v4630_v14  ;;  %v2100_v37 = vpop.f32.mrf.mxu3  ;;  %2275 = vmax.xlane.f32.xlu1 %v2274_v25  ;;  %v1895_v46 = vpop.f32.mrf.mxu1  ;;  %v1792_v63 = vadd.f32 %v1791_v16, %v4625_v5  ;;  %v276_v16 = vld [vmem:[#allocation5 + $0x1f0] sm:$0xff] }
 0x379   :  { %v2101_v34 = vadd.f32 %v2100_v37, %v1997_v40  ;;  %1830 = vmatmul.bf16.gmra.mxu0 %v318_v44  ;;  %v1896_v30 = vadd.f32 %v1895_v46, %v1792_v63  ;;  %v274_v37 = vld [vmem:[#allocation5 + $0x1e0] sm:$0xff] }
 0x37a   :  { %1934 = vmatmul.bf16.gmra.mxu1 %v319_v9 }
 0x37b   :  { %2038 = vmatmul.bf16.gmra.mxu2 %v318_v44  ;;  %v4748_v39 = vmul.f32 %v2101_v34, %v5666_v1  ;;  %v5667_v44 = vld [vmem:[#allocation34_spill] sm:$0xff] }
 0x37c   :  { %2142 = vmatmul.bf16.gmra.mxu3 %v319_v9  ;;  %v4754_v40 = vmul.f32 %v1896_v30, %v5667_v44  ;;  %v275_v9 = vld [vmem:[#allocation5 + $0x1e8] sm:$0xff]  ;;  %v277_v34 = vld [vmem:[#allocation5 + $0x1f8] sm:$0xff] }
 0x37d   :  { %v2277_v11 = vmax.f32 %v4745_v0, %v4748_v39  ;;  %v321_v44 = vpack.c.bf16 %v277_v34, %v275_v9 }
 0x37e   :  { %v1999_v20 = vpop.f32.mrf.mxu2  ;;  %v1793_v6 = vpop.f32.mrf.mxu0 }
 0x37f   :  { %v2000_v51 = vadd.f32 %v1999_v20, %v4630_v14  ;;  %v2103_v52 = vpop.f32.mrf.mxu3  ;;  %2278 = vmax.xlane.f32.xlu2 %v2277_v11  ;;  %v1897_v25 = vpop.f32.mrf.mxu1  ;;  %v1794_v1 = vadd.f32 %v1793_v6, %v4625_v5  ;;  %v320_v11 = vpack.c.bf16 %v276_v16, %v274_v37 }
 0x381   :  { %v2104_v32 = vadd.f32 %v2103_v52, %v2000_v51  ;;  %v1898_v20 = vadd.f32 %v1897_v25, %v1794_v1 }
 0x383   :  { %v4757_v21 = vmul.f32 %v2104_v32, %v5668_v10  ;;  %v4765_v59 = vmul.f32 %v1898_v20, %v5669_v4  ;;  %v5671_v4 = vld [vmem:[#allocation38_spill] sm:$0xff] }
 0x385   :  { %v2280_v46 = vmax.f32 %v4754_v40, %v4757_v21 }
 0x386   :  { %v2001_v63 = vpop.f32.mrf.mxu2  ;;  %v1796_v30 = vpop.f32.mrf.mxu0 }
 0x387   :  { %v2002_v51 = vadd.f32 %v2001_v63, %v4630_v14  ;;  %v2105_v52 = vpop.f32.mrf.mxu3  ;;  %2281 = vmax.xlane.f32.xlu0 %v2280_v46  ;;  %v1900_v32 = vpop.f32.mrf.mxu1  ;;  %v1797_v6 = vadd.f32 %v1796_v30, %v4625_v5  ;;  %v280_v30 = vld [vmem:[#allocation5 + $0x210] sm:$0xff] }
 0x389   :  { %v2106_v10 = vadd.f32 %v2105_v52, %v2002_v51  ;;  %1835 = vmatmul.bf16.gmra.mxu0 %v320_v11  ;;  %v1901_v37 = vadd.f32 %v1900_v32, %v1797_v6  ;;  %v278_v52 = vld [vmem:[#allocation5 + $0x200] sm:$0xff] }
 0x38a   :  { %1939 = vmatmul.bf16.gmra.mxu1 %v321_v44 }
 0x38b   :  { %2043 = vmatmul.bf16.gmra.mxu2 %v320_v11  ;;  %v4768_v43 = vmul.f32 %v2106_v10, %v5670_v18  ;;  %v4775_v20 = vmul.f32 %v1901_v37, %v5671_v4  ;;  %v5672_v18 = vld [vmem:[#allocation39_spill] sm:$0xff] }
 0x38c   :  { %2147 = vmatmul.bf16.gmra.mxu3 %v321_v44  ;;  %v279_v44 = vld [vmem:[#allocation5 + $0x208] sm:$0xff]  ;;  %v281_v10 = vld [vmem:[#allocation5 + $0x218] sm:$0xff] }
 0x38d   :  { %v2283_v25 = vmax.f32 %v4765_v59, %v4768_v43  ;;  %v323_v37 = vpack.c.bf16 %v281_v10, %v279_v44 }
 0x38e   :  { %v2004_v1 = vpop.f32.mrf.mxu2  ;;  %v1798_v34 = vpop.f32.mrf.mxu0 }
 0x38f   :  { %v2005_v16 = vadd.f32 %v2004_v1, %v4630_v14  ;;  %v2108_v9 = vpop.f32.mrf.mxu3  ;;  %2284 = vmax.xlane.f32.xlu1 %v2283_v25  ;;  %v1902_v46 = vpop.f32.mrf.mxu1  ;;  %v1799_v11 = vadd.f32 %v1798_v34, %v4625_v5  ;;  %v322_v1 = vpack.c.bf16 %v280_v30, %v278_v52 }
 0x391   :  { %v2109_v63 = vadd.f32 %v2108_v9, %v2005_v16  ;;  %v1903_v6 = vadd.f32 %v1902_v46, %v1799_v11 }
 0x393   :  { %v4778_v51 = vmul.f32 %v2109_v63, %v5672_v18  ;;  %v5674_v63 = vld [vmem:[#allocation40_spill] sm:$0xff] }
 0x394   :  { %v4784_v18 = vmul.f32 %v1903_v6, %v5674_v63  ;;  %v284_v63 = vld [vmem:[#allocation5 + $0x230] sm:$0xff] }
 0x395   :  { %5673 = vst [vmem:[#allocation16_spill] sm:$0xff] %v4778_v51  ;;  %v2286_v32 = vmax.f32 %v4775_v20, %v4778_v51 }
 0x396   :  { %v2006_v25 = vpop.f32.mrf.mxu2  ;;  %v1801_v34 = vpop.f32.mrf.mxu0 }
 0x397   :  { %v2007_v16 = vadd.f32 %v2006_v25, %v4630_v14  ;;  %v2110_v9 = vpop.f32.mrf.mxu3  ;;  %2287 = vmax.xlane.f32.xlu2 %v2286_v32  ;;  %v1905_v4 = vpop.f32.mrf.mxu1  ;;  %v1802_v47 = vadd.f32 %v1801_v34, %v4625_v5 }
 0x399   :  { %v2111_v3 = vadd.f32 %v2110_v9, %v2007_v16  ;;  %1840 = vmatmul.bf16.gmra.mxu0 %v322_v1  ;;  %v1906_v32 = vadd.f32 %v1905_v4, %v1802_v47  ;;  %v5677_v9 = vld [vmem:[#allocation43_spill] sm:$0xff] }
 0x39a   :  { %v2246_v33 = vpop.xlane.xlu0 %2245  ;;  %1944 = vmatmul.bf16.gmra.mxu1 %v323_v37  ;;  %v282_v4 = vld [vmem:[#allocation5 + $0x220] sm:$0xff] }
 0x39b   :  { %v4788_v51 = vmul.f32 %v2111_v3, %v5675_v48  ;;  %v2361_v46 = vsub.f32 %v4635_v19, %v2246_v33  ;;  %v2362_v11 = vsub.f32 %v4638_v31, %v2246_v33  ;;  %2048 = vmatmul.bf16.gmra.mxu2 %v322_v1  ;;  %v5676_v1 = vld [vmem:[#allocation42_spill] sm:$0xff] }
 0x39c   :  { %2152 = vmatmul.bf16.gmra.mxu3 %v323_v37  ;;  %v4797_v16 = vmul.f32 %v1906_v32, %v5676_v1 }
 0x39d   :  { %v2437_v52 = vmul.f32 1.442695, %v2361_v46  ;;  %v2439_v30 = vmul.f32 1.442695, %v2362_v11  ;;  %v2289_v44 = vmax.f32 %v4784_v18, %v4788_v51  ;;  %v283_v46 = vld [vmem:[#allocation5 + $0x228] sm:$0xff]  ;;  %v285_v11 = vld [vmem:[#allocation5 + $0x238] sm:$0xff] }
 0x39e   :  { %v2009_v10 = vpop.f32.mrf.mxu2  ;;  %v1803_v48 = vpop.f32.mrf.mxu0  ;;  %v325_v1 = vpack.c.bf16 %v285_v11, %v283_v46 }
 0x39f   :  { %3482 = vpow2.f32 %v2437_v52  ;;  %v2010_v6 = vadd.f32 %v2009_v10, %v4630_v14  ;;  %v2113_v25 = vpop.f32.mrf.mxu3  ;;  %2290 = vmax.xlane.f32.xlu0 %v2289_v44  ;;  %v1907_v3 = vpop.f32.mrf.mxu1  ;;  %v1804_v33 = vadd.f32 %v1803_v48, %v4625_v5  ;;  %v324_v48 = vpack.c.bf16 %v284_v63, %v282_v4  ;;  %v5681_v4 = vld [vmem:[#allocation45_spill] sm:$0xff] }
 0x3a0   :  { %3484 = vpow2.f32 %v2439_v30 }
 0x3a1   :  { %v2114_v19 = vadd.f32 %v2113_v25, %v2010_v6  ;;  %v1908_v6 = vadd.f32 %v1907_v3, %v1804_v33 }
 0x3a2   :  { %v2249_v31 = vpop.xlane.xlu0 %2248 }
 0x3a3   :  { %v4800_v34 = vmul.f32 %v2114_v19, %v5677_v9  ;;  %v2363_v47 = vsub.f32 %v4645_v42, %v2249_v31  ;;  %v2364_v37 = vsub.f32 %v4648_v50, %v2249_v31 }
 0x3a5   :  { %5678 = vst [vmem:[#allocation17_spill] sm:$0xff] %v4800_v34  ;;  %v4804_v52 = vpop.eup %3482  ;;  %v2441_v30 = vmul.f32 1.442695, %v2363_v47  ;;  %v2443_v44 = vmul.f32 1.442695, %v2364_v37  ;;  %v2292_v10 = vmax.f32 %v4797_v16, %v4800_v34  ;;  %v5679_v37 = vld [vmem:[#allocation44_spill] sm:$0xff] }
 0x3a6   :  { %v4808_v32 = vpop.eup %3484  ;;  %v2011_v25 = vpop.f32.mrf.mxu2  ;;  %v4814_v34 = vmul.f32 %v1908_v6, %v5679_v37 }
 0x3a7   :  { %3486 = vpow2.f32 %v2441_v30  ;;  %v2012_v42 = vadd.f32 %v2011_v25, %v4630_v14  ;;  %v2115_v50 = vpop.f32.mrf.mxu3  ;;  %2293 = vmax.xlane.f32.xlu1 %v2292_v10  ;;  %v1806_v19 = vpop.f32.mrf.mxu0  ;;  %v2589_v31 = vadd.f32 %v4808_v32, %v4804_v52 }
 0x3a8   :  { %3488 = vpow2.f32 %v2443_v44  ;;  %v1910_v9 = vpop.f32.mrf.mxu1  ;;  %5680 = vst [vmem:[#allocation18_spill] sm:$0xff] %v4814_v34  ;;  %v1807_v3 = vadd.f32 %v1806_v19, %v4625_v5 }
 0x3a9   :  { %v2116_v47 = vadd.f32 %v2115_v50, %v2012_v42  ;;  %2590 = vadd.xlane.f32.xlu2 %v2589_v31  ;;  %1845 = vmatmul.bf16.gmra.mxu0 %v324_v48 }
 0x3aa   :  { %v2252_v33 = vpop.xlane.xlu1 %2251  ;;  %1949 = vmatmul.bf16.gmra.mxu1 %v325_v1  ;;  %v1911_v50 = vadd.f32 %v1910_v9, %v1807_v3 }
 0x3ab   :  { %v4818_v63 = vmul.f32 %v2116_v47, %v5681_v4  ;;  %v2365_v30 = vsub.f32 %v4655_v45, %v2252_v33  ;;  %v2366_v10 = vsub.f32 %v4658_v61, %v2252_v33  ;;  %2053 = vmatmul.bf16.gmra.mxu2 %v324_v48  ;;  %v5683_v33 = vld [vmem:[#allocation46_spill] sm:$0xff] }
 0x3ac   :  { %2157 = vmatmul.bf16.gmra.mxu3 %v325_v1  ;;  %v4833_v4 = vmul.f32 %v1911_v50, %v5683_v33 }
 0x3ad   :  { %5682 = vst [vmem:[#allocation19_spill] sm:$0xff] %v4818_v63  ;;  %v4822_v46 = vpop.eup %3486  ;;  %v2445_v11 = vmul.f32 1.442695, %v2365_v30  ;;  %v2447_v44 = vmul.f32 1.442695, %v2366_v10  ;;  %v2295_v6 = vmax.f32 %v4814_v34, %v4818_v63  ;;  %v286_v10 = vld [vmem:[#allocation5 + $0x240] sm:$0xff] }
 0x3ae   :  { %v4826_v25 = vpop.eup %3488  ;;  %v2014_v42 = vpop.f32.mrf.mxu2  ;;  %v5685_v34 = vld [vmem:[#allocation47_spill] sm:$0xff] }
 0x3af   :  { %3490 = vpow2.f32 %v2445_v11  ;;  %v2015_v19 = vadd.f32 %v2014_v42, %v4630_v14  ;;  %v2118_v45 = vpop.f32.mrf.mxu3  ;;  %v1808_v31 = vpop.f32.mrf.mxu0  ;;  %v2592_v61 = vadd.f32 %v4826_v25, %v4822_v46  ;;  %v288_v11 = vld [vmem:[#allocation5 + $0x250] sm:$0xf]  ;;  %v289_v42 = vld [vmem:[#allocation5 + $0x258] sm:$0xf] }
 0x3b0   :  { %3492 = vpow2.f32 %v2447_v44  ;;  %v1912_v48 = vpop.f32.mrf.mxu1  ;;  %v1809_v47 = vadd.f32 %v1808_v31, %v4625_v5  ;;  %v287_v44 = vld [vmem:[#allocation5 + $0x248] sm:$0xff] }
 0x3b1   :  { %v2119_v1 = vadd.f32 %v2118_v45, %v2015_v19  ;;  %2296 = vmax.xlane.f32.xlu2 %v2295_v6  ;;  %2593 = vadd.xlane.f32.xlu0 %v2592_v61  ;;  %v327_v63 = vpack.c.bf16 %v289_v42, %v287_v44 }
 0x3b2   :  { %v2255_v37 = vpop.xlane.xlu1 %2254  ;;  %v1913_v61 = vadd.f32 %v1912_v48, %v1809_v47 }
 0x3b3   :  { %v4836_v9 = vmul.f32 %v2119_v1, %v4193_v60  ;;  %v2367_v3 = vsub.f32 %v4665_v57, %v2255_v37  ;;  %v2368_v30 = vsub.f32 %v4668_v49, %v2255_v37  ;;  %v326_v1 = vpack.c.bf16 %v288_v11, %v286_v10 }
 0x3b5   :  { %5684 = vst [vmem:[#allocation20_spill] sm:$0xff] %v4836_v9  ;;  %v4840_v19 = vpop.eup %3490  ;;  %v2449_v6 = vmul.f32 1.442695, %v2367_v3  ;;  %v2451_v45 = vmul.f32 1.442695, %v2368_v30  ;;  %v2298_v31 = vmax.f32 %v4833_v4, %v4836_v9  ;;  %v4850_v9 = vmul.f32 %v1913_v61, %v5685_v34 }
 0x3b6   :  { %v4844_v50 = vpop.eup %3492  ;;  %v2016_v60 = vpop.f32.mrf.mxu2 }
 0x3b7   :  { %3494 = vpow2.f32 %v2449_v6  ;;  %v2017_v57 = vadd.f32 %v2016_v60, %v4630_v14  ;;  %v2120_v49 = vpop.f32.mrf.mxu3  ;;  %v1811_v37 = vpop.f32.mrf.mxu0  ;;  %v2595_v33 = vadd.f32 %v4844_v50, %v4840_v19 }
 0x3b8   :  { %3496 = vpow2.f32 %v2451_v45  ;;  %v1915_v3 = vpop.f32.mrf.mxu1  ;;  %v1812_v48 = vadd.f32 %v1811_v37, %v4625_v5 }
 0x3b9   :  { %v2121_v30 = vadd.f32 %v2120_v49, %v2017_v57  ;;  %2596 = vadd.xlane.f32.xlu1 %v2595_v33  ;;  %2299 = vmax.xlane.f32.xlu0 %v2298_v31  ;;  %v5686_v33 = vld [vmem:[#allocation48_spill] sm:$0xff] }
 0x3ba   :  { %v2258_v47 = vpop.xlane.xlu2 %2257  ;;  %1850 = vmatmul.bf16.gmra.mxu0 %v326_v1  ;;  %1954 = vmatmul.bf16.gmra.mxu1 %v327_v63  ;;  %v1916_v60 = vadd.f32 %v1915_v3, %v1812_v48  ;;  %v5687_v3 = vld [vmem:[#allocation49_spill] sm:$0xff] }
 0x3bb   :  { %v4854_v10 = vmul.f32 %v2121_v30, %v4203_v36  ;;  %v2369_v11 = vsub.f32 %v4675_v58, %v2258_v47  ;;  %v2370_v6 = vsub.f32 %v4678_v15, %v2258_v47  ;;  %2058 = vmatmul.bf16.gmra.mxu2 %v326_v1 }
 0x3bc   :  { %2162 = vmatmul.bf16.gmra.mxu3 %v327_v63  ;;  %v4869_v30 = vmul.f32 %v1916_v60, %v5686_v33 }
 0x3bd   :  { %v4858_v44 = vpop.eup %3494  ;;  %v2453_v42 = vmul.f32 1.442695, %v2369_v11  ;;  %v2455_v45 = vmul.f32 1.442695, %v2370_v6  ;;  %v2301_v34 = vmax.f32 %v4850_v9, %v4854_v10 }
 0x3be   :  { %v4862_v31 = vpop.eup %3496  ;;  %v2019_v61 = vpop.f32.mrf.mxu2 }
 0x3bf   :  { %3498 = vpow2.f32 %v2453_v42  ;;  %v2020_v36 = vadd.f32 %v2019_v61, %v4630_v14  ;;  %v2123_v58 = vpop.f32.mrf.mxu3  ;;  %v1813_v57 = vpop.f32.mrf.mxu0  ;;  %v2598_v15 = vadd.f32 %v4862_v31, %v4858_v44 }
 0x3c0   :  { %3500 = vpow2.f32 %v2455_v45  ;;  %v1917_v63 = vpop.f32.mrf.mxu1  ;;  %v1814_v49 = vadd.f32 %v1813_v57, %v4625_v5 }
 0x3c1   :  { %v2124_v1 = vadd.f32 %v2123_v58, %v2020_v36  ;;  %2302 = vmax.xlane.f32.xlu1 %v2301_v34  ;;  %2599 = vadd.xlane.f32.xlu2 %v2598_v15 }
 0x3c2   :  { %v2261_v37 = vpop.xlane.xlu2 %2260  ;;  %v1918_v36 = vadd.f32 %v1917_v63, %v1814_v49 }
 0x3c3   :  { %v4872_v48 = vmul.f32 %v2124_v1, %v5687_v3  ;;  %v2371_v47 = vsub.f32 %v4685_v24, %v2261_v37  ;;  %v2372_v11 = vsub.f32 %v4688_v8, %v2261_v37  ;;  %v5689_v37 = vld [vmem:[#allocation50_spill] sm:$0xff] }
 0x3c4   :  { %v4886_v33 = vmul.f32 %v1918_v36, %v5689_v37 }
 0x3c5   :  { %5688 = vst [vmem:[#allocation21_spill] sm:$0xff] %v4872_v48  ;;  %v4876_v6 = vpop.eup %3498  ;;  %v2457_v42 = vmul.f32 1.442695, %v2371_v47  ;;  %v2459_v45 = vmul.f32 1.442695, %v2372_v11  ;;  %v2304_v34 = vmax.f32 %v4869_v30, %v4872_v48  ;;  %v5690_v47 = vld [vmem:[#allocation51_spill] sm:$0xff] }
 0x3c6   :  { %v4880_v61 = vpop.eup %3500  ;;  %v2021_v58 = vpop.f32.mrf.mxu2 }
 0x3c7   :  { %3502 = vpow2.f32 %v2457_v42  ;;  %v2022_v60 = vadd.f32 %v2021_v58, %v4630_v14  ;;  %v2125_v57 = vpop.f32.mrf.mxu3  ;;  %v1816_v15 = vpop.f32.mrf.mxu0  ;;  %v2601_v24 = vadd.f32 %v4880_v61, %v4876_v6 }
 0x3c8   :  { %3504 = vpow2.f32 %v2459_v45  ;;  %v1920_v8 = vpop.f32.mrf.mxu1  ;;  %v1817_v49 = vadd.f32 %v1816_v15, %v4625_v5 }
 0x3c9   :  { %v2126_v1 = vadd.f32 %v2125_v57, %v2022_v60  ;;  %2305 = vmax.xlane.f32.xlu2 %v2304_v34  ;;  %2602 = vadd.xlane.f32.xlu0 %v2601_v24 }
 0x3ca   :  { %v2264_v3 = vpop.xlane.xlu0 %2263  ;;  %v1921_v57 = vadd.f32 %v1920_v8, %v1817_v49 }
 0x3cb   :  { %v4889_v63 = vmul.f32 %v2126_v1, %v5690_v47  ;;  %v2373_v11 = vsub.f32 %v4694_v12, %v2264_v3  ;;  %v2374_v42 = vsub.f32 %v4697_v54, %v2264_v3 }
 0x3cd   :  { %v4894_v58 = vpop.eup %3502  ;;  %v2461_v45 = vmul.f32 1.442695, %v2373_v11  ;;  %v2463_v48 = vmul.f32 1.442695, %v2374_v42  ;;  %v2307_v34 = vmax.f32 %v4886_v33, %v4889_v63  ;;  %v5692_v11 = vld [vmem:[#allocation52_spill] sm:$0xff] }
 0x3ce   :  { %v4898_v60 = vpop.eup %3504  ;;  %v2024_v36 = vpop.f32.mrf.mxu2  ;;  %v4905_v42 = vmul.f32 %v1921_v57, %v5692_v11 }
 0x3cf   :  { %5691 = vst [vmem:[#allocation22_spill] sm:$0xff] %v4898_v60  ;;  %3506 = vpow2.f32 %v2461_v45  ;;  %v2025_v24 = vadd.f32 %v2024_v36, %v4630_v14  ;;  %v2128_v1 = vpop.f32.mrf.mxu3  ;;  %v1818_v15 = vpop.f32.mrf.mxu0  ;;  %v2604_v12 = vadd.f32 %v4898_v60, %v4894_v58 }
 0x3d0   :  { %3508 = vpow2.f32 %v2463_v48  ;;  %v1922_v54 = vpop.f32.mrf.mxu1  ;;  %v1819_v3 = vadd.f32 %v1818_v15, %v4625_v5 }
 0x3d1   :  { %v2129_v37 = vadd.f32 %v2128_v1, %v2025_v24  ;;  %2605 = vadd.xlane.f32.xlu1 %v2604_v12  ;;  %2308 = vmax.xlane.f32.xlu0 %v2307_v34 }
 0x3d2   :  { %v2267_v47 = vpop.xlane.xlu1 %2266  ;;  %v1923_v1 = vadd.f32 %v1922_v54, %v1819_v3 }
 0x3d3   :  { %v4908_v8 = vmul.f32 %v2129_v37, %v4229_v53  ;;  %v2375_v49 = vsub.f32 %v4705_v26, %v2267_v47  ;;  %v2376_v45 = vsub.f32 %v4708_v23, %v2267_v47 }
 0x3d4   :  { %v4922_v47 = vmul.f32 %v1923_v1, %v4231_v13 }
 0x3d5   :  { %v4912_v36 = vpop.eup %3506  ;;  %v2465_v48 = vmul.f32 1.442695, %v2375_v49  ;;  %v2467_v60 = vmul.f32 1.442695, %v2376_v45  ;;  %v2310_v34 = vmax.f32 %v4905_v42, %v4908_v8 }
 0x3d6   :  { %v4916_v24 = vpop.eup %3508  ;;  %v2026_v15 = vpop.f32.mrf.mxu2 }
 0x3d7   :  { %3510 = vpow2.f32 %v2465_v48  ;;  %v2027_v57 = vadd.f32 %v2026_v15, %v4630_v14  ;;  %v2130_v53 = vpop.f32.mrf.mxu3  ;;  %v1821_v12 = vpop.f32.mrf.mxu0  ;;  %v2607_v26 = vadd.f32 %v4916_v24, %v4912_v36 }
 0x3d8   :  { %3512 = vpow2.f32 %v2467_v60  ;;  %v1925_v23 = vpop.f32.mrf.mxu1  ;;  %v1822_v3 = vadd.f32 %v1821_v12, %v4625_v5 }
 0x3d9   :  { %v2131_v37 = vadd.f32 %v2130_v53, %v2027_v57  ;;  %2311 = vmax.xlane.f32.xlu1 %v2310_v34  ;;  %2608 = vadd.xlane.f32.xlu2 %v2607_v26 }
 0x3da   :  { %v2270_v11 = vpop.xlane.xlu2 %2269  ;;  %v1926_v1 = vadd.f32 %v1925_v23, %v1822_v3 }
 0x3db   :  { %v4925_v54 = vmul.f32 %v2131_v37, %v4235_v55  ;;  %v2377_v49 = vsub.f32 %v4714_v62, %v2270_v11  ;;  %v2378_v45 = vsub.f32 %v4717_v22, %v2270_v11 }
 0x3dd   :  { %v4930_v48 = vpop.eup %3510  ;;  %v2469_v60 = vmul.f32 1.442695, %v2377_v49  ;;  %v2471_v15 = vmul.f32 1.442695, %v2378_v45  ;;  %v2313_v34 = vmax.f32 %v4922_v47, %v4925_v54  ;;  %v4941_v49 = vmul.f32 %v1926_v1, %v4237_v17 }
 0x3de   :  { %v4934_v57 = vpop.eup %3512  ;;  %v2029_v13 = vpop.f32.mrf.mxu2 }
 0x3df   :  { %3514 = vpow2.f32 %v2469_v60  ;;  %v2030_v55 = vadd.f32 %v2029_v13, %v4630_v14  ;;  %v2133_v53 = vpop.f32.mrf.mxu3  ;;  %v1823_v12 = vpop.f32.mrf.mxu0  ;;  %v2610_v62 = vadd.f32 %v4934_v57, %v4930_v48 }
 0x3e0   :  { %3516 = vpow2.f32 %v2471_v15  ;;  %v1927_v22 = vpop.f32.mrf.mxu1  ;;  %v1824_v37 = vadd.f32 %v1823_v12, %v4625_v5 }
 0x3e1   :  { %v2134_v26 = vadd.f32 %v2133_v53, %v2030_v55  ;;  %2611 = vadd.xlane.f32.xlu0 %v2610_v62  ;;  %2314 = vmax.xlane.f32.xlu2 %v2313_v34 }
 0x3e2   :  { %v2273_v11 = vpop.xlane.xlu0 %2272  ;;  %v1928_v53 = vadd.f32 %v1927_v22, %v1824_v37 }
 0x3e3   :  { %v4944_v23 = vmul.f32 %v2134_v26, %v4245_v35  ;;  %v2379_v3 = vsub.f32 %v4725_v28, %v2273_v11  ;;  %v2380_v45 = vsub.f32 %v4728_v38, %v2273_v11  ;;  %v5695_v26 = vld [vmem:[#allocation53_spill] sm:$0xff] }
 0x3e4   :  { %v4958_v11 = vmul.f32 %v1928_v53, %v5695_v26 }
 0x3e5   :  { %5693 = vst [vmem:[#allocation23_spill] sm:$0xff] %v4944_v23  ;;  %v4948_v60 = vpop.eup %3514  ;;  %v2473_v15 = vmul.f32 1.442695, %v2379_v3  ;;  %v2475_v13 = vmul.f32 1.442695, %v2380_v45  ;;  %v2316_v34 = vmax.f32 %v4941_v49, %v4944_v23  ;;  %v5696_v45 = vld [vmem:[#allocation54_spill] sm:$0xff] }
 0x3e6   :  { %v4952_v55 = vpop.eup %3516  ;;  %v2031_v12 = vpop.f32.mrf.mxu2 }
 0x3e7   :  { %5694 = vst [vmem:[#allocation24_spill] sm:$0xff] %v4952_v55  ;;  %3518 = vpow2.f32 %v2473_v15  ;;  %v2032_v17 = vadd.f32 %v2031_v12, %v4630_v14  ;;  %v2135_v35 = vpop.f32.mrf.mxu3  ;;  %v1826_v1 = vpop.f32.mrf.mxu0  ;;  %v2613_v28 = vadd.f32 %v4952_v55, %v4948_v60 }
 0x3e8   :  { %3520 = vpow2.f32 %v2475_v13  ;;  %v1930_v38 = vpop.f32.mrf.mxu1  ;;  %v1827_v37 = vadd.f32 %v1826_v1, %v4625_v5 }
 0x3e9   :  { %v2136_v62 = vadd.f32 %v2135_v35, %v2032_v17  ;;  %2614 = vadd.xlane.f32.xlu1 %v2613_v28  ;;  %2317 = vmax.xlane.f32.xlu0 %v2316_v34 }
 0x3ea   :  { %v2276_v3 = vpop.xlane.xlu1 %2275  ;;  %v1931_v35 = vadd.f32 %v1930_v38, %v1827_v37 }
 0x3eb   :  { %v4961_v22 = vmul.f32 %v2136_v62, %v5696_v45  ;;  %v2381_v15 = vsub.f32 %v4734_v56, %v2276_v3  ;;  %v2382_v12 = vsub.f32 %v4737_v29, %v2276_v3 }
 0x3ed   :  { %v4966_v23 = vpop.eup %3518  ;;  %v2477_v13 = vmul.f32 1.442695, %v2381_v15  ;;  %v2479_v55 = vmul.f32 1.442695, %v2382_v12  ;;  %v2319_v34 = vmax.f32 %v4958_v11, %v4961_v22  ;;  %v5698_v15 = vld [vmem:[#allocation55_spill] sm:$0xff] }
 0x3ee   :  { %v4970_v17 = vpop.eup %3520  ;;  %v2034_v53 = vpop.f32.mrf.mxu2  ;;  %v4977_v12 = vmul.f32 %v1931_v35, %v5698_v15 }
 0x3ef   :  { %5697 = vst [vmem:[#allocation25_spill] sm:$0xff] %v4970_v17  ;;  %3522 = vpow2.f32 %v2477_v13  ;;  %v2035_v28 = vadd.f32 %v2034_v53, %v4630_v14  ;;  %v2138_v62 = vpop.f32.mrf.mxu3  ;;  %v1828_v1 = vpop.f32.mrf.mxu0  ;;  %v2616_v56 = vadd.f32 %v4970_v17, %v4966_v23 }
 0x3f0   :  { %3524 = vpow2.f32 %v2479_v55  ;;  %v1932_v29 = vpop.f32.mrf.mxu1  ;;  %v1829_v3 = vadd.f32 %v1828_v1, %v4625_v5 }
 0x3f1   :  { %v2139_v26 = vadd.f32 %v2138_v62, %v2035_v28  ;;  %2320 = vmax.xlane.f32.xlu1 %v2319_v34  ;;  %2617 = vadd.xlane.f32.xlu2 %v2616_v56 }
 0x3f2   :  { %v2279_v45 = vpop.xlane.xlu2 %2278  ;;  %v1933_v62 = vadd.f32 %v1932_v29, %v1829_v3 }
 0x3f3   :  { %v4980_v38 = vmul.f32 %v2139_v26, %v4261_v7  ;;  %v2383_v37 = vsub.f32 %v4745_v0, %v2279_v45  ;;  %v2384_v13 = vsub.f32 %v4748_v39, %v2279_v45 }
 0x3f4   :  { %v4994_v45 = vmul.f32 %v1933_v62, %v4263_v2 }
 0x3f5   :  { %v4984_v53 = vpop.eup %3522  ;;  %v2481_v55 = vmul.f32 1.442695, %v2383_v37  ;;  %v2483_v17 = vmul.f32 1.442695, %v2384_v13  ;;  %v2322_v34 = vmax.f32 %v4977_v12, %v4980_v38  ;;  %v5700_v37 = vld [vmem:[#allocation56_spill] sm:$0xff] }
 0x3f6   :  { %v4988_v28 = vpop.eup %3524  ;;  %v2036_v1 = vpop.f32.mrf.mxu2 }
 0x3f7   :  { %5699 = vst [vmem:[#allocation26_spill] sm:$0xff] %v4988_v28  ;;  %3526 = vpow2.f32 %v2481_v55  ;;  %v2037_v35 = vadd.f32 %v2036_v1, %v4630_v14  ;;  %v2140_v7 = vpop.f32.mrf.mxu3  ;;  %v1831_v56 = vpop.f32.mrf.mxu0  ;;  %v2619_v0 = vadd.f32 %v4988_v28, %v4984_v53 }
 0x3f8   :  { %3528 = vpow2.f32 %v2483_v17  ;;  %v1935_v39 = vpop.f32.mrf.mxu1  ;;  %v1832_v3 = vadd.f32 %v1831_v56, %v4625_v5 }
 0x3f9   :  { %v2141_v26 = vadd.f32 %v2140_v7, %v2037_v35  ;;  %2620 = vadd.xlane.f32.xlu0 %v2619_v0  ;;  %2323 = vmax.xlane.f32.xlu2 %v2322_v34 }
 0x3fa   :  { %v2282_v15 = vpop.xlane.xlu0 %2281  ;;  %v1936_v62 = vadd.f32 %v1935_v39, %v1832_v3 }
 0x3fb   :  { %v4997_v29 = vmul.f32 %v2141_v26, %v5700_v37  ;;  %v2385_v13 = vsub.f32 %v4754_v40, %v2282_v15  ;;  %v2386_v55 = vsub.f32 %v4757_v21, %v2282_v15 }
 0x3fd   :  { %v5002_v1 = vpop.eup %3526  ;;  %v2485_v17 = vmul.f32 1.442695, %v2385_v13  ;;  %v2487_v28 = vmul.f32 1.442695, %v2386_v55  ;;  %v2325_v34 = vmax.f32 %v4994_v45, %v4997_v29  ;;  %v5702_v13 = vld [vmem:[#allocation57_spill] sm:$0xff] }
 0x3fe   :  { %v5006_v35 = vpop.eup %3528  ;;  %v2039_v2 = vpop.f32.mrf.mxu2  ;;  %v5013_v55 = vmul.f32 %v1936_v62, %v5702_v13 }
 0x3ff   :  { %5701 = vst [vmem:[#allocation27_spill] sm:$0xff] %v5006_v35  ;;  %3530 = vpow2.f32 %v2485_v17  ;;  %v2040_v7 = vadd.f32 %v2039_v2, %v4630_v14  ;;  %v2143_v0 = vpop.f32.mrf.mxu3  ;;  %v1833_v56 = vpop.f32.mrf.mxu0  ;;  %v2622_v40 = vadd.f32 %v5006_v35, %v5002_v1 }
 0x400   :  { %3532 = vpow2.f32 %v2487_v28  ;;  %v1937_v21 = vpop.f32.mrf.mxu1  ;;  %v1834_v15 = vadd.f32 %v1833_v56, %v4625_v5 }
 0x401   :  { %v2144_v26 = vadd.f32 %v2143_v0, %v2040_v7  ;;  %2623 = vadd.xlane.f32.xlu1 %v2622_v40  ;;  %2326 = vmax.xlane.f32.xlu0 %v2325_v34 }
 0x402   :  { %v2285_v37 = vpop.xlane.xlu1 %2284  ;;  %v1938_v0 = vadd.f32 %v1937_v21, %v1834_v15 }
 0x403   :  { %v5016_v39 = vmul.f32 %v2144_v26, %v4277_v41  ;;  %v2387_v3 = vsub.f32 %v4765_v59, %v2285_v37  ;;  %v2388_v17 = vsub.f32 %v4768_v43, %v2285_v37 }
 0x404   :  { %v5030_v37 = vmul.f32 %v1938_v0, %v4279_v27 }
 0x405   :  { %5703 = vst [vmem:[#allocation28_spill] sm:$0xff] %v5016_v39  ;;  %v5020_v2 = vpop.eup %3530  ;;  %v2489_v28 = vmul.f32 1.442695, %v2387_v3  ;;  %v2491_v35 = vmul.f32 1.442695, %v2388_v17  ;;  %v2328_v34 = vmax.f32 %v5013_v55, %v5016_v39  ;;  %v5705_v3 = vld [vmem:[#allocation58_spill] sm:$0xff] }
 0x406   :  { %v5024_v7 = vpop.eup %3532  ;;  %v2041_v56 = vpop.f32.mrf.mxu2 }
 0x407   :  { %5704 = vst [vmem:[#allocation29_spill] sm:$0xff] %v5024_v7  ;;  %3534 = vpow2.f32 %v2489_v28  ;;  %v2042_v62 = vadd.f32 %v2041_v56, %v4630_v14  ;;  %v2145_v41 = vpop.f32.mrf.mxu3  ;;  %v1836_v40 = vpop.f32.mrf.mxu0  ;;  %v2625_v59 = vadd.f32 %v5024_v7, %v5020_v2  ;;  %v5707_v28 = vld [vmem:[#allocation16_spill] sm:$0xff] }
 0x408   :  { %3536 = vpow2.f32 %v2491_v35  ;;  %v1940_v43 = vpop.f32.mrf.mxu1  ;;  %v1837_v15 = vadd.f32 %v1836_v40, %v4625_v5 }
 0x409   :  { %v2146_v26 = vadd.f32 %v2145_v41, %v2042_v62  ;;  %2329 = vmax.xlane.f32.xlu1 %v2328_v34  ;;  %2626 = vadd.xlane.f32.xlu2 %v2625_v59 }
 0x40a   :  { %v2288_v13 = vpop.xlane.xlu2 %2287  ;;  %v1941_v0 = vadd.f32 %v1940_v43, %v1837_v15  ;;  %v5711_v43 = vld [vmem:[#allocation60_spill] sm:$0xff] }
 0x40b   :  { %v5033_v21 = vmul.f32 %v2146_v26, %v5705_v3  ;;  %v2389_v17 = vsub.f32 %v4775_v20, %v2288_v13  ;;  %v2390_v56 = vsub.f32 %v5707_v28, %v2288_v13  ;;  %v5709_v28 = vld [vmem:[#allocation59_spill] sm:$0xff] }
 0x40d   :  { %5706 = vst [vmem:[#allocation30_spill] sm:$0xff] %v5033_v21  ;;  %v5038_v39 = vpop.eup %3534  ;;  %v2493_v35 = vmul.f32 1.442695, %v2389_v17  ;;  %v2495_v7 = vmul.f32 1.442695, %v2390_v56  ;;  %v2331_v34 = vmax.f32 %v5030_v37, %v5033_v21  ;;  %v5049_v56 = vmul.f32 %v1941_v0, %v5709_v28  ;;  %v5714_v28 = vld [vmem:[#allocation61_spill] sm:$0xff] }
 0x40e   :  { %v5042_v62 = vpop.eup %3536  ;;  %v2044_v27 = vpop.f32.mrf.mxu2 }
 0x40f   :  { %5708 = vst [vmem:[#allocation31_spill] sm:$0xff] %v5042_v62  ;;  %3538 = vpow2.f32 %v2493_v35  ;;  %v2045_v41 = vadd.f32 %v2044_v27, %v4630_v14  ;;  %v2148_v59 = vpop.f32.mrf.mxu3  ;;  %v1838_v40 = vpop.f32.mrf.mxu0  ;;  %v2628_v20 = vadd.f32 %v5042_v62, %v5038_v39 }
 0x410   :  { %3540 = vpow2.f32 %v2495_v7  ;;  %v1942_v26 = vpop.f32.mrf.mxu1  ;;  %v1839_v3 = vadd.f32 %v1838_v40, %v4625_v5  ;;  %5710 = vst [vmem:[#allocation32_spill] sm:$0xff] %v5049_v56 }
 0x411   :  { %v2149_v13 = vadd.f32 %v2148_v59, %v2045_v41  ;;  %2629 = vadd.xlane.f32.xlu0 %v2628_v20  ;;  %2332 = vmax.xlane.f32.xlu2 %v2331_v34 }
 0x412   :  { %v2291_v17 = vpop.xlane.xlu0 %2290  ;;  %v1943_v59 = vadd.f32 %v1942_v26, %v1839_v3 }
 0x413   :  { %v5052_v15 = vmul.f32 %v2149_v13, %v5711_v43  ;;  %v2391_v35 = vsub.f32 %v4784_v18, %v2291_v17  ;;  %v2392_v27 = vsub.f32 %v4788_v51, %v2291_v17 }
 0x414   :  { %v5066_v43 = vmul.f32 %v1943_v59, %v5714_v28 }
 0x415   :  { %5712 = vst [vmem:[#allocation33_spill] sm:$0xff] %v5052_v15  ;;  %v5056_v21 = vpop.eup %3538  ;;  %v2497_v7 = vmul.f32 1.442695, %v2391_v35  ;;  %v2499_v62 = vmul.f32 1.442695, %v2392_v27  ;;  %v2334_v34 = vmax.f32 %v5049_v56, %v5052_v15  ;;  %v5715_v27 = vld [vmem:[#allocation62_spill] sm:$0xff] }
 0x416   :  { %v5060_v41 = vpop.eup %3540  ;;  %v2046_v40 = vpop.f32.mrf.mxu2 }
 0x417   :  { %5713 = vst [vmem:[#allocation34_spill] sm:$0xff] %v5060_v41  ;;  %3542 = vpow2.f32 %v2497_v7  ;;  %v2047_v0 = vadd.f32 %v2046_v40, %v4630_v14  ;;  %v2150_v20 = vpop.f32.mrf.mxu3  ;;  %v1841_v13 = vpop.f32.mrf.mxu0  ;;  %v2631_v18 = vadd.f32 %v5060_v41, %v5056_v21  ;;  %v5717_v40 = vld [vmem:[#allocation17_spill] sm:$0xff] }
 0x418   :  { %3544 = vpow2.f32 %v2499_v62  ;;  %v1945_v51 = vpop.f32.mrf.mxu1  ;;  %v1842_v3 = vadd.f32 %v1841_v13, %v4625_v5 }
 0x419   :  { %v2151_v17 = vadd.f32 %v2150_v20, %v2047_v0  ;;  %2632 = vadd.xlane.f32.xlu1 %v2631_v18  ;;  %2335 = vmax.xlane.f32.xlu0 %v2334_v34 }
 0x41a   :  { %v2294_v35 = vpop.xlane.xlu1 %2293  ;;  %v1946_v18 = vadd.f32 %v1945_v51, %v1842_v3 }
 0x41b   :  { %v5069_v26 = vmul.f32 %v2151_v17, %v5715_v27  ;;  %v2393_v7 = vsub.f32 %v4797_v16, %v2294_v35  ;;  %v2394_v15 = vsub.f32 %v5717_v40, %v2294_v35  ;;  %v5721_v40 = vld [vmem:[#allocation64_spill] sm:$0xff] }
 0x41c   :  { %v2591_v56 = vpop.xlane.xlu2 %2590 }
 0x41d   :  { %5716 = vst [vmem:[#allocation35_spill] sm:$0xff] %v5069_v26  ;;  %v5074_v41 = vpop.eup %3542  ;;  %v2501_v62 = vmul.f32 1.442695, %v2393_v7  ;;  %v2503_v0 = vmul.f32 1.442695, %v2394_v15  ;;  %3546 = vrcp.f32 %v2591_v56  ;;  %v2337_v34 = vmax.f32 %v5066_v43, %v5069_v26  ;;  %v5719_v15 = vld [vmem:[#allocation63_spill] sm:$0xff] }
 0x41e   :  { %v5078_v59 = vpop.eup %3544  ;;  %v2049_v20 = vpop.f32.mrf.mxu2  ;;  %v5084_v7 = vmul.f32 %v1946_v18, %v5719_v15  ;;  %v5724_v18 = vld [vmem:[#allocation75_spill] sm:$0xff] }
 0x41f   :  { %5718 = vst [vmem:[#allocation36_spill] sm:$0xff] %v5078_v59  ;;  %3548 = vpow2.f32 %v2501_v62  ;;  %v2050_v13 = vadd.f32 %v2049_v20, %v4630_v14  ;;  %v2153_v17 = vpop.f32.mrf.mxu3  ;;  %v1843_v16 = vpop.f32.mrf.mxu0  ;;  %v2634_v28 = vadd.f32 %v5078_v59, %v5074_v41 }
 0x420   :  { %3550 = vpow2.f32 %v2503_v0  ;;  %v1947_v35 = vpop.f32.mrf.mxu1  ;;  %5720 = vst [vmem:[#allocation37_spill] sm:$0xff] %v5084_v7  ;;  %v1844_v51 = vadd.f32 %v1843_v16, %v4625_v5 }
 0x421   :  { %v2154_v27 = vadd.f32 %v2153_v17, %v2050_v13  ;;  %2338 = vmax.xlane.f32.xlu1 %v2337_v34  ;;  %2635 = vadd.xlane.f32.xlu2 %v2634_v28  ;;  %v5725_v17 = vld [vmem:[#allocation76_spill] sm:$0xff] }
 0x422   :  { %v1948_v15 = vadd.f32 %v1947_v35, %v1844_v51 }
 0x423   :  { %v3547_v56 = vpop.eup %3546  ;;  %v5087_v26 = vmul.f32 %v2154_v27, %v5721_v40 }
 0x424   :  { %v2743_v3 = vmul.f32 %v3547_v56, %v4804_v52  ;;  %v2744_v62 = vmul.f32 %v3547_v56, %v4808_v32  ;;  %v2594_v20 = vpop.xlane.xlu0 %2593  ;;  %v5110_v51 = vpop.xlane.xlu2 %2296 }
 0x425   :  { %5722 = vst [vmem:[#allocation38_spill] sm:$0xff] %v5087_v26  ;;  %v5092_v59 = vpop.eup %3548  ;;  %3552 = vrcp.f32 %v2594_v20  ;;  %v2340_v0 = vmax.f32 %v5084_v7, %v5087_v26  ;;  %v5726_v7 = vld [vmem:[#allocation65_spill] sm:$0xff] }
 0x426   :  { %v5096_v34 = vpop.eup %3550  ;;  %v2819_v13 = vmul.f32 %v2743_v3, %v5724_v18  ;;  %v2820_v28 = vmul.f32 %v2744_v62, %v5725_v17  ;;  %v2051_v27 = vpop.f32.mrf.mxu2  ;;  %v5104_v3 = vmul.f32 %v1948_v15, %v5726_v7  ;;  %v5728_v62 = vld [vmem:[#allocation66_spill] sm:$0xff] }
 0x427   :  { %5723 = vst [vmem:[#allocation39_spill] sm:$0xff] %v5096_v34  ;;  %v2052_v16 = vadd.f32 %v2051_v27, %v4630_v14  ;;  %v2155_v52 = vpop.f32.mrf.mxu3  ;;  %v1846_v40 = vpop.f32.mrf.mxu0  ;;  %v2637_v32 = vadd.f32 %v5096_v34, %v5092_v59  ;;  %v5731_v7 = vld [vmem:[#allocation78_spill] sm:$0xff] }
 0x428   :  { %2895 = vst [vmem:[#allocation11] sm:$0xff] %v2819_v13  ;;  %v1950_v56 = vpop.f32.mrf.mxu1  ;;  %v1847_v35 = vadd.f32 %v1846_v40, %v4625_v5 }
 0x429   :  { %2896 = vst [vmem:[#allocation11 + $0x8] sm:$0xff] %v2820_v28  ;;  %v2156_v20 = vadd.f32 %v2155_v52, %v2052_v16  ;;  %2638 = vadd.xlane.f32.xlu0 %v2637_v32  ;;  %2341 = vmax.xlane.f32.xlu2 %v2340_v0  ;;  %v5730_v28 = vld [vmem:[#allocation77_spill] sm:$0xff] }
 0x42a   :  { %5727 = vst [vmem:[#allocation40_spill] sm:$0xff] %v5104_v3 }
 0x42b   :  { %v3553_v26 = vpop.eup %3552  ;;  %v5107_v18 = vmul.f32 %v2156_v20, %v5728_v62  ;;  %v1951_v20 = vadd.f32 %v1950_v56, %v1847_v35 }
 0x42c   :  { %v2745_v17 = vmul.f32 %v3553_v26, %v4822_v46  ;;  %v2746_v13 = vmul.f32 %v3553_v26, %v4826_v25  ;;  %v2597_v27 = vpop.xlane.xlu1 %2596  ;;  %v2300_v52 = vpop.xlane.xlu0 %2299 }
 0x42d   :  { %5729 = vst [vmem:[#allocation41_spill] sm:$0xff] %v5107_v18  ;;  %3554 = vrcp.f32 %v2597_v27  ;;  %v2343_v0 = vmax.f32 %v5104_v3, %v5107_v18  ;;  %v2397_v25 = vsub.f32 %v4833_v4, %v2300_v52  ;;  %v5732_v27 = vld [vmem:[#allocation20_spill] sm:$0xff] }
 0x42e   :  { %v2821_v16 = vmul.f32 %v2745_v17, %v5730_v28  ;;  %v2822_v15 = vmul.f32 %v2746_v13, %v5731_v7  ;;  %v2054_v32 = vpop.f32.mrf.mxu2  ;;  %v2398_v18 = vsub.f32 %v5732_v27, %v2300_v52  ;;  %v5733_v17 = vld [vmem:[#allocation67_spill] sm:$0xff]  ;;  %v5734_v13 = vld [vmem:[#allocation68_spill] sm:$0xff] }
 0x42f   :  { %v2055_v40 = vadd.f32 %v2054_v32, %v4630_v14  ;;  %v2158_v62 = vpop.f32.mrf.mxu3  ;;  %v1848_v34 = vpop.f32.mrf.mxu0  ;;  %v5122_v28 = vmul.f32 %v1951_v20, %v5733_v17  ;;  %v2509_v32 = vmul.f32 1.442695, %v2397_v25 }
 0x430   :  { %2897 = vst [vmem:[#allocation11 + $0x10] sm:$0xff] %v2821_v16  ;;  %v1952_v46 = vpop.f32.mrf.mxu1  ;;  %v1849_v56 = vadd.f32 %v1848_v34, %v4625_v5 }
 0x431   :  { %2898 = vst [vmem:[#allocation11 + $0x18] sm:$0xff] %v2822_v15  ;;  %v2159_v26 = vadd.f32 %v2158_v62, %v2055_v40  ;;  %2344 = vmax.xlane.f32.xlu0 %v2343_v0  ;;  %v5735_v0 = vld [vmem:[#allocation79_spill] sm:$0xff]  ;;  %v5736_v40 = vld [vmem:[#allocation80_spill] sm:$0xff]  ;;  %v2511_v62 = vmul.f32 1.442695, %v2398_v18 }
 0x432   :  { %v1953_v17 = vadd.f32 %v1952_v46, %v1849_v56  ;;  %v5738_v46 = vld [vmem:[#allocation70_spill] sm:$0xff] }
 0x433   :  { %v3555_v3 = vpop.eup %3554  ;;  %v5125_v7 = vmul.f32 %v2159_v26, %v5734_v13 }
 0x434   :  { %v2747_v35 = vmul.f32 %v3555_v3, %v4840_v19  ;;  %v2748_v16 = vmul.f32 %v3555_v3, %v4844_v50  ;;  %v2600_v15 = vpop.xlane.xlu2 %2599  ;;  %v2303_v27 = vpop.xlane.xlu1 %2302 }
 0x435   :  { %3556 = vrcp.f32 %v2600_v15  ;;  %v2346_v4 = vmax.f32 %v5122_v28, %v5125_v7  ;;  %v2399_v25 = vsub.f32 %v4850_v9, %v2303_v27  ;;  %v5737_v15 = vld [vmem:[#allocation69_spill] sm:$0xff]  ;;  %v2400_v18 = vsub.f32 %v4854_v10, %v2303_v27 }
 0x436   :  { %v2823_v52 = vmul.f32 %v2747_v35, %v5735_v0  ;;  %v2824_v20 = vmul.f32 %v2748_v16, %v5736_v40  ;;  %v2056_v26 = vpop.f32.mrf.mxu2  ;;  %3558 = vpow2.f32 %v2509_v32  ;;  %v5137_v16 = vmul.f32 %v1953_v17, %v5737_v15 }
 0x437   :  { %v2057_v34 = vadd.f32 %v2056_v26, %v4630_v14  ;;  %v2160_v13 = vpop.f32.mrf.mxu3  ;;  %2347 = vmax.xlane.f32.xlu1 %v2346_v4  ;;  %v1851_v19 = vpop.f32.mrf.mxu0  ;;  %3560 = vpow2.f32 %v2511_v62  ;;  %v2513_v40 = vmul.f32 1.442695, %v2399_v25  ;;  %v5740_v26 = vld [vmem:[#allocation82_spill] sm:$0xff] }
 0x438   :  { %2899 = vst [vmem:[#allocation11 + $0x20] sm:$0xff] %v2823_v52  ;;  %v1955_v3 = vpop.f32.mrf.mxu1  ;;  %v1852_v4 = vadd.f32 %v1851_v19, %v4625_v5  ;;  %v2515_v19 = vmul.f32 1.442695, %v2400_v18 }
 0x439   :  { %2900 = vst [vmem:[#allocation11 + $0x28] sm:$0xff] %v2824_v20  ;;  %v2161_v50 = vadd.f32 %v2160_v13, %v2057_v34  ;;  %v5739_v20 = vld [vmem:[#allocation81_spill] sm:$0xff]  ;;  %v5741_v34 = vld [vmem:[#allocation18_spill] sm:$0xff] }
 0x43a   :  { %v2395_v13 = vsub.f32 %v5741_v34, %v5110_v51 }
 0x43b   :  { %v3557_v35 = vpop.eup %3556  ;;  %v5141_v56 = vmul.f32 %v2161_v50, %v5738_v46 }
 0x43c   :  { %v2749_v0 = vmul.f32 %v3557_v35, %v4858_v44  ;;  %v2750_v32 = vmul.f32 %v3557_v35, %v4862_v31  ;;  %v2603_v52 = vpop.xlane.xlu0 %2602  ;;  %v5150_v27 = vpop.eup %3558  ;;  %v1956_v44 = vadd.f32 %v1955_v3, %v1852_v4  ;;  %v5743_v3 = vld [vmem:[#allocation71_spill] sm:$0xff] }
 0x43d   :  { %3562 = vrcp.f32 %v2603_v52  ;;  %v2349_v9 = vmax.f32 %v5137_v16, %v5141_v56  ;;  %v5155_v15 = vpop.eup %3560  ;;  %v2306_v4 = vpop.xlane.xlu2 %2305 }
 0x43e   :  { %v2825_v62 = vmul.f32 %v2749_v0, %v5739_v20  ;;  %v2826_v17 = vmul.f32 %v2750_v32, %v5740_v26  ;;  %v2059_v10 = vpop.f32.mrf.mxu2  ;;  %v5742_v0 = vld [vmem:[#allocation19_spill] sm:$0xff]  ;;  %3564 = vpow2.f32 %v2513_v40  ;;  %v2505_v20 = vmul.f32 1.442695, %v2395_v13 }
 0x43f   :  { %v2060_v31 = vadd.f32 %v2059_v10, %v4630_v14  ;;  %v2163_v50 = vpop.f32.mrf.mxu3  ;;  %2350 = vmax.xlane.f32.xlu2 %v2349_v9  ;;  %v1853_v35 = vpop.f32.mrf.mxu0  ;;  %v2396_v32 = vsub.f32 %v5742_v0, %v5110_v51  ;;  %3566 = vpow2.f32 %v2515_v19  ;;  %v5161_v18 = vmul.f32 %v1956_v44, %v5743_v3  ;;  %v5744_v9 = vld [vmem:[#allocation72_spill] sm:$0xff]  ;;  %v5745_v44 = vld [vmem:[#allocation83_spill] sm:$0xff] }
 0x440   :  { %2901 = vst [vmem:[#allocation11 + $0x30] sm:$0xff] %v2825_v62  ;;  %v1854_v25 = vadd.f32 %v1853_v35, %v4625_v5  ;;  %v1957_v10 = vpop.f32.mrf.mxu1  ;;  %v2643_v51 = vadd.f32 %v5155_v15, %v5150_v27  ;;  %v5746_v35 = vld [vmem:[#allocation84_spill] sm:$0xff] }
 0x441   :  { %2902 = vst [vmem:[#allocation11 + $0x38] sm:$0xff] %v2826_v17  ;;  %v2164_v46 = vadd.f32 %v2163_v50, %v2060_v31 }
 0x442   :  { %v1958_v17 = vadd.f32 %v1957_v10, %v1854_v25 }
 0x443   :  { %v3563_v52 = vpop.eup %3562  ;;  %v5164_v26 = vmul.f32 %v2164_v46, %v5744_v9 }
 0x444   :  { %v2751_v62 = vmul.f32 %v3563_v52, %v4876_v6  ;;  %v2752_v5 = vmul.f32 %v3563_v52, %v4880_v61  ;;  %v2606_v34 = vpop.xlane.xlu1 %2605  ;;  %v2309_v31 = vpop.xlane.xlu0 %2308  ;;  %v2507_v61 = vmul.f32 1.442695, %v2396_v32 }
 0x445   :  { %3568 = vrcp.f32 %v2606_v34  ;;  %v2403_v40 = vsub.f32 %v4886_v33, %v2309_v31  ;;  %v2404_v13 = vsub.f32 %v4889_v63, %v2309_v31  ;;  %v2352_v19 = vmax.f32 %v5161_v18, %v5164_v26  ;;  %v5177_v3 = vpop.eup %3564  ;;  %v5747_v33 = vld [vmem:[#allocation73_spill] sm:$0xff]  ;;  %v5749_v31 = vld [vmem:[#allocation74_spill] sm:$0xff] }
 0x446   :  { %v2827_v50 = vmul.f32 %v2751_v62, %v5745_v44  ;;  %v2828_v6 = vmul.f32 %v2752_v5, %v5746_v35  ;;  %v2061_v46 = vpop.f32.mrf.mxu2  ;;  %3570 = vpow2.f32 %v2505_v20  ;;  %v5180_v63 = vmul.f32 %v1958_v17, %v5747_v33  ;;  %v5182_v10 = vpop.eup %3566  ;;  %v5748_v5 = vld [vmem:[#allocation21_spill] sm:$0xff] }
 0x447   :  { %v2521_v25 = vmul.f32 1.442695, %v2403_v40  ;;  %v2523_v0 = vmul.f32 1.442695, %v2404_v13  ;;  %v2062_v52 = vadd.f32 %v2061_v46, %v4630_v14  ;;  %2353 = vmax.xlane.f32.xlu0 %v2352_v19  ;;  %2644 = vadd.xlane.f32.xlu2 %v2643_v51  ;;  %v2165_v9 = vpop.f32.mrf.mxu3  ;;  %v2401_v14 = vsub.f32 %v4869_v30, %v2306_v4  ;;  %v5750_v51 = vld [vmem:[#allocation22_spill] sm:$0xff] }
 0x448   :  { %2903 = vst [vmem:[#allocation11 + $0x40] sm:$0xff] %v2827_v50  ;;  %v2402_v34 = vsub.f32 %v5748_v5, %v2306_v4  ;;  %v2646_v44 = vadd.f32 %v5182_v10, %v5177_v3  ;;  %v2356_v50 = vsel %vm2355_vm0, %v5180_v63, -inf }
 0x449   :  { %2904 = vst [vmem:[#allocation11 + $0x48] sm:$0xff] %v2828_v6  ;;  %3572 = vpow2.f32 %v2521_v25  ;;  %v2166_v62 = vadd.f32 %v2165_v9, %v2062_v52  ;;  %v2517_v33 = vmul.f32 1.442695, %v2401_v14 }
 0x44a   :  { %3574 = vpow2.f32 %v2523_v0 }
 0x44b   :  { %v3569_v32 = vpop.eup %3568  ;;  %3576 = vpow2.f32 %v2507_v61  ;;  %v5187_v20 = vmul.f32 %v2166_v62, %v5749_v31  ;;  %v5752_v61 = vld [vmem:[#allocation86_spill] sm:$0xff] }
 0x44c   :  { %v2753_v17 = vmul.f32 %v3569_v32, %v4894_v58  ;;  %v2754_v40 = vmul.f32 %v3569_v32, %v5750_v51  ;;  %v2312_v13 = vpop.xlane.xlu1 %2311  ;;  %v2609_v19 = vpop.xlane.xlu2 %2608  ;;  %v5751_v58 = vld [vmem:[#allocation85_spill] sm:$0xff] }
 0x44d   :  { %v2405_v35 = vsub.f32 %v4905_v42, %v2312_v13  ;;  %v2406_v30 = vsub.f32 %v4908_v8, %v2312_v13  ;;  %3578 = vrcp.f32 %v2609_v19  ;;  %v2357_v4 = vsel %vm2355_vm0, %v5187_v20, -inf  ;;  %v5199_v6 = vpop.eup %3570  ;;  %v5753_v19 = vld [vmem:[#allocation87_spill] sm:$0xff] }
 0x44e   :  { %v2829_v46 = vmul.f32 %v2753_v17, %v5751_v58  ;;  %v2830_v25 = vmul.f32 %v2754_v40, %v5752_v61  ;;  %v2358_v0 = vmax.f32 %v2356_v50, %v2357_v4  ;;  %v2519_v8 = vmul.f32 1.442695, %v2402_v34  ;;  %v5754_v50 = vld [vmem:[#allocation88_spill] sm:$0xff] }
 0x44f   :  { %v5203_v52 = vpop.eup %3572  ;;  %v2525_v9 = vmul.f32 1.442695, %v2405_v35  ;;  %v2527_v62 = vmul.f32 1.442695, %v2406_v30  ;;  %2647 = vadd.xlane.f32.xlu0 %v2646_v44 }
 0x450   :  { %v5205_v42 = vpop.eup %3574  ;;  %2905 = vst [vmem:[#allocation11 + $0x50] sm:$0xff] %v2829_v46  ;;  %2359 = vmax.xlane.f32.xlu1 %v2358_v0 }
 0x451   :  { %v5207_v32 = vpop.eup %3576  ;;  %2906 = vst [vmem:[#allocation11 + $0x58] sm:$0xff] %v2830_v25  ;;  %3580 = vpow2.f32 %v2525_v9  ;;  %v2652_v5 = vadd.f32 %v5205_v42, %v5203_v52 }
 0x452   :  { %3582 = vpow2.f32 %v2527_v62  ;;  %v2640_v30 = vadd.f32 %v5207_v32, %v5199_v6 }
 0x453   :  { %v3579_v31 = vpop.eup %3578  ;;  %3584 = vpow2.f32 %v2517_v33  ;;  %2653 = vadd.xlane.f32.xlu2 %v2652_v5 }
 0x454   :  { %3586 = vpow2.f32 %v2519_v8  ;;  %v2755_v14 = vmul.f32 %v3579_v31, %v4912_v36  ;;  %v2756_v17 = vmul.f32 %v3579_v31, %v4916_v24  ;;  %v2315_v51 = vpop.xlane.xlu2 %2314  ;;  %v2612_v34 = vpop.xlane.xlu0 %2611  ;;  %v5755_v8 = vld [vmem:[#allocation23_spill] sm:$0xff]  ;;  %v5756_v31 = vld [vmem:[#allocation89_spill] sm:$0xff] }
 0x455   :  { %v2407_v40 = vsub.f32 %v4922_v47, %v2315_v51  ;;  %v2408_v13 = vsub.f32 %v4925_v54, %v2315_v51  ;;  %3588 = vrcp.f32 %v2612_v34 }
 0x456   :  { %v2831_v44 = vmul.f32 %v2755_v14, %v5753_v19  ;;  %v2832_v35 = vmul.f32 %v2756_v17, %v5754_v50  ;;  %v5757_v17 = vld [vmem:[#allocation90_spill] sm:$0xff] }
 0x457   :  { %v5219_v4 = vpop.eup %3580  ;;  %v2529_v58 = vmul.f32 1.442695, %v2407_v40  ;;  %v2531_v24 = vmul.f32 1.442695, %v2408_v13 }
 0x458   :  { %v5221_v36 = vpop.eup %3582  ;;  %2907 = vst [vmem:[#allocation11 + $0x60] sm:$0xff] %v2831_v44  ;;  %2641 = vadd.xlane.f32.xlu1 %v2640_v30  ;;  %v5758_v44 = vld [vmem:[#allocation24_spill] sm:$0xff] }
 0x459   :  { %v5223_v46 = vpop.eup %3584  ;;  %2908 = vst [vmem:[#allocation11 + $0x68] sm:$0xff] %v2832_v35  ;;  %v2655_v47 = vadd.f32 %v5221_v36, %v5219_v4  ;;  %3590 = vpow2.f32 %v2529_v58 }
 0x45a   :  { %v5227_v54 = vpop.eup %3586  ;;  %3592 = vpow2.f32 %v2531_v24 }
 0x45b   :  { %v3589_v61 = vpop.eup %3588  ;;  %2656 = vadd.xlane.f32.xlu0 %v2655_v47  ;;  %v2649_v34 = vadd.f32 %v5227_v54, %v5223_v46  ;;  %v5759_v47 = vld [vmem:[#allocation91_spill] sm:$0xff] }
 0x45c   :  { %v2757_v25 = vmul.f32 %v3589_v61, %v4930_v48  ;;  %v2758_v0 = vmul.f32 %v3589_v61, %v4934_v57  ;;  %v2615_v33 = vpop.xlane.xlu1 %2614  ;;  %v2318_v9 = vpop.xlane.xlu0 %2317 }
 0x45d   :  { %3594 = vrcp.f32 %v2615_v33  ;;  %v2409_v62 = vsub.f32 %v4941_v49, %v2318_v9  ;;  %v2410_v5 = vsub.f32 %v5755_v8, %v2318_v9 }
 0x45e   :  { %v2833_v14 = vmul.f32 %v2757_v25, %v5756_v31  ;;  %v2834_v51 = vmul.f32 %v2758_v0, %v5757_v17  ;;  %v5760_v25 = vld [vmem:[#allocation92_spill] sm:$0xff]  ;;  %v5761_v31 = vld [vmem:[#allocation25_spill] sm:$0xff] }
 0x45f   :  { %v2533_v40 = vmul.f32 1.442695, %v2409_v62  ;;  %v2535_v13 = vmul.f32 1.442695, %v2410_v5  ;;  %v5237_v48 = vpop.eup %3590 }
 0x460   :  { %2909 = vst [vmem:[#allocation11 + $0x70] sm:$0xff] %v2833_v14  ;;  %2650 = vadd.xlane.f32.xlu1 %v2649_v34  ;;  %v5239_v57 = vpop.eup %3592 }
 0x461   :  { %2910 = vst [vmem:[#allocation11 + $0x78] sm:$0xff] %v2834_v51  ;;  %3596 = vpow2.f32 %v2533_v40  ;;  %v2658_v33 = vadd.f32 %v5239_v57, %v5237_v48 }
 0x462   :  { %3598 = vpow2.f32 %v2535_v13  ;;  %v5762_v13 = vld [vmem:[#allocation93_spill] sm:$0xff] }
 0x463   :  { %v3595_v49 = vpop.eup %3594 }
 0x464   :  { %v2759_v19 = vmul.f32 %v3595_v49, %v4948_v60  ;;  %v2760_v50 = vmul.f32 %v3595_v49, %v5758_v44  ;;  %v2321_v35 = vpop.xlane.xlu1 %2320  ;;  %v2618_v30 = vpop.xlane.xlu2 %2617 }
 0x465   :  { %v2411_v58 = vsub.f32 %v4958_v11, %v2321_v35  ;;  %v2412_v24 = vsub.f32 %v4961_v22, %v2321_v35  ;;  %3600 = vrcp.f32 %v2618_v30 }
 0x466   :  { %v2835_v61 = vmul.f32 %v2759_v19, %v5759_v47  ;;  %v2836_v0 = vmul.f32 %v2760_v50, %v5760_v25  ;;  %v5763_v19 = vld [vmem:[#allocation94_spill] sm:$0xff] }
 0x467   :  { %v5249_v9 = vpop.eup %3596  ;;  %v2537_v62 = vmul.f32 1.442695, %v2411_v58  ;;  %v2539_v60 = vmul.f32 1.442695, %v2412_v24  ;;  %v5764_v24 = vld [vmem:[#allocation26_spill] sm:$0xff] }
 0x468   :  { %v5251_v8 = vpop.eup %3598  ;;  %2911 = vst [vmem:[#allocation11 + $0x80] sm:$0xff] %v2835_v61  ;;  %2659 = vadd.xlane.f32.xlu1 %v2658_v33 }
 0x469   :  { %2912 = vst [vmem:[#allocation11 + $0x88] sm:$0xff] %v2836_v0  ;;  %3602 = vpow2.f32 %v2537_v62  ;;  %v2661_v11 = vadd.f32 %v5251_v8, %v5249_v9  ;;  %v5765_v62 = vld [vmem:[#allocation95_spill] sm:$0xff] }
 0x46a   :  { %3604 = vpow2.f32 %v2539_v60 }
 0x46b   :  { %v3601_v22 = vpop.eup %3600  ;;  %2662 = vadd.xlane.f32.xlu2 %v2661_v11  ;;  %v5766_v11 = vld [vmem:[#allocation96_spill] sm:$0xff] }
 0x46c   :  { %v2761_v5 = vmul.f32 %v3601_v22, %v4966_v23  ;;  %v2762_v14 = vmul.f32 %v3601_v22, %v5761_v31  ;;  %v2324_v17 = vpop.xlane.xlu2 %2323  ;;  %v2621_v51 = vpop.xlane.xlu0 %2620 }
 0x46d   :  { %v2413_v34 = vsub.f32 %v4977_v12, %v2324_v17  ;;  %v2414_v40 = vsub.f32 %v4980_v38, %v2324_v17  ;;  %3606 = vrcp.f32 %v2621_v51  ;;  %v5767_v51 = vld [vmem:[#allocation27_spill] sm:$0xff] }
 0x46e   :  { %v2837_v49 = vmul.f32 %v2761_v5, %v5762_v13  ;;  %v2838_v44 = vmul.f32 %v2762_v14, %v5763_v19  ;;  %v5768_v19 = vld [vmem:[#allocation28_spill] sm:$0xff] }
 0x46f   :  { %v5261_v50 = vpop.eup %3602  ;;  %v2541_v35 = vmul.f32 1.442695, %v2413_v34  ;;  %v2543_v30 = vmul.f32 1.442695, %v2414_v40 }
 0x470   :  { %v5263_v58 = vpop.eup %3604  ;;  %2913 = vst [vmem:[#allocation11 + $0x90] sm:$0xff] %v2837_v49 }
 0x471   :  { %2914 = vst [vmem:[#allocation11 + $0x98] sm:$0xff] %v2838_v44  ;;  %3608 = vpow2.f32 %v2541_v35  ;;  %v2664_v23 = vadd.f32 %v5263_v58, %v5261_v50  ;;  %v5769_v35 = vld [vmem:[#allocation97_spill] sm:$0xff] }
 0x472   :  { %3610 = vpow2.f32 %v2543_v30 }
 0x473   :  { %v3607_v12 = vpop.eup %3606  ;;  %2665 = vadd.xlane.f32.xlu0 %v2664_v23  ;;  %v5770_v23 = vld [vmem:[#allocation98_spill] sm:$0xff] }
 0x474   :  { %v2763_v38 = vmul.f32 %v3607_v12, %v4984_v53  ;;  %v2764_v47 = vmul.f32 %v3607_v12, %v5764_v24  ;;  %v2624_v61 = vpop.xlane.xlu1 %2623  ;;  %v2327_v25 = vpop.xlane.xlu0 %2326 }
 0x475   :  { %3612 = vrcp.f32 %v2624_v61  ;;  %v2415_v0 = vsub.f32 %v4994_v45, %v2327_v25  ;;  %v2416_v33 = vsub.f32 %v4997_v29, %v2327_v25 }
 0x476   :  { %v2839_v60 = vmul.f32 %v2763_v38, %v5765_v62  ;;  %v2840_v22 = vmul.f32 %v2764_v47, %v5766_v11 }
 0x477   :  { %v5273_v5 = vpop.eup %3608  ;;  %v2545_v31 = vmul.f32 1.442695, %v2415_v0  ;;  %v2547_v14 = vmul.f32 1.442695, %v2416_v33  ;;  %v5771_v0 = vld [vmem:[#allocation29_spill] sm:$0xff] }
 0x478   :  { %v5275_v17 = vpop.eup %3610  ;;  %2915 = vst [vmem:[#allocation11 + $0xa0] sm:$0xff] %v2839_v60 }
 0x479   :  { %2916 = vst [vmem:[#allocation11 + $0xa8] sm:$0xff] %v2840_v22  ;;  %3614 = vpow2.f32 %v2545_v31  ;;  %v2667_v53 = vadd.f32 %v5275_v17, %v5273_v5  ;;  %v5772_v22 = vld [vmem:[#allocation30_spill] sm:$0xff] }
 0x47a   :  { %3616 = vpow2.f32 %v2547_v14  ;;  %v5773_v14 = vld [vmem:[#allocation99_spill] sm:$0xff] }
 0x47b   :  { %v3613_v45 = vpop.eup %3612  ;;  %2668 = vadd.xlane.f32.xlu1 %v2667_v53 }
 0x47c   :  { %v2765_v29 = vmul.f32 %v3613_v45, %v5002_v1  ;;  %v2766_v34 = vmul.f32 %v3613_v45, %v5767_v51  ;;  %v2330_v40 = vpop.xlane.xlu1 %2329  ;;  %v2627_v13 = vpop.xlane.xlu2 %2626  ;;  %v5774_v45 = vld [vmem:[#allocation100_spill] sm:$0xff] }
 0x47d   :  { %v2417_v49 = vsub.f32 %v5013_v55, %v2330_v40  ;;  %v2418_v44 = vsub.f32 %v5768_v19, %v2330_v40  ;;  %3618 = vrcp.f32 %v2627_v13  ;;  %v5775_v19 = vld [vmem:[#allocation31_spill] sm:$0xff] }
 0x47e   :  { %v2841_v30 = vmul.f32 %v2765_v29, %v5769_v35  ;;  %v2842_v12 = vmul.f32 %v2766_v34, %v5770_v23  ;;  %v5776_v23 = vld [vmem:[#allocation32_spill] sm:$0xff] }
 0x47f   :  { %v5285_v38 = vpop.eup %3614  ;;  %v2549_v24 = vmul.f32 1.442695, %v2417_v49  ;;  %v2551_v47 = vmul.f32 1.442695, %v2418_v44 }
 0x480   :  { %v5287_v61 = vpop.eup %3616  ;;  %2917 = vst [vmem:[#allocation11 + $0xb0] sm:$0xff] %v2841_v30 }
 0x481   :  { %2918 = vst [vmem:[#allocation11 + $0xb8] sm:$0xff] %v2842_v12  ;;  %3620 = vpow2.f32 %v2549_v24  ;;  %v2670_v1 = vadd.f32 %v5287_v61, %v5285_v38  ;;  %v5777_v24 = vld [vmem:[#allocation33_spill] sm:$0xff] }
 0x482   :  { %3622 = vpow2.f32 %v2551_v47 }
 0x483   :  { %v3619_v55 = vpop.eup %3618  ;;  %2671 = vadd.xlane.f32.xlu2 %v2670_v1  ;;  %v5778_v1 = vld [vmem:[#allocation101_spill] sm:$0xff] }
 0x484   :  { %v2767_v25 = vmul.f32 %v3619_v55, %v5020_v2  ;;  %v2768_v33 = vmul.f32 %v3619_v55, %v5771_v0  ;;  %v2333_v62 = vpop.xlane.xlu2 %2332  ;;  %v2630_v60 = vpop.xlane.xlu0 %2629 }
 0x485   :  { %v2419_v11 = vsub.f32 %v5030_v37, %v2333_v62  ;;  %v2420_v31 = vsub.f32 %v5772_v22, %v2333_v62  ;;  %3624 = vrcp.f32 %v2630_v60 }
 0x486   :  { %v2843_v53 = vmul.f32 %v2767_v25, %v5773_v14  ;;  %v2844_v29 = vmul.f32 %v2768_v33, %v5774_v45  ;;  %v5779_v25 = vld [vmem:[#allocation102_spill] sm:$0xff] }
 0x487   :  { %v5297_v51 = vpop.eup %3620  ;;  %v2553_v34 = vmul.f32 1.442695, %v2419_v11  ;;  %v2555_v40 = vmul.f32 1.442695, %v2420_v31  ;;  %v5780_v14 = vld [vmem:[#allocation34_spill] sm:$0xff] }
 0x488   :  { %v5299_v13 = vpop.eup %3622  ;;  %2919 = vst [vmem:[#allocation11 + $0xc0] sm:$0xff] %v2843_v53 }
 0x489   :  { %2920 = vst [vmem:[#allocation11 + $0xc8] sm:$0xff] %v2844_v29  ;;  %3626 = vpow2.f32 %v2553_v34  ;;  %v2673_v2 = vadd.f32 %v5299_v13, %v5297_v51 }
 0x48a   :  { %3628 = vpow2.f32 %v2555_v40  ;;  %v5781_v40 = vld [vmem:[#allocation35_spill] sm:$0xff] }
 0x48b   :  { %v3625_v37 = vpop.eup %3624  ;;  %2674 = vadd.xlane.f32.xlu0 %v2673_v2 }
 0x48c   :  { %v2769_v49 = vmul.f32 %v3625_v37, %v5038_v39  ;;  %v2770_v44 = vmul.f32 %v3625_v37, %v5775_v19  ;;  %v2633_v35 = vpop.xlane.xlu1 %2632  ;;  %v2336_v30 = vpop.xlane.xlu0 %2335  ;;  %v5782_v37 = vld [vmem:[#allocation103_spill] sm:$0xff]  ;;  %v5783_v19 = vld [vmem:[#allocation104_spill] sm:$0xff] }
 0x48d   :  { %3630 = vrcp.f32 %v2633_v35  ;;  %v2421_v12 = vsub.f32 %v5776_v23, %v2336_v30  ;;  %v2422_v47 = vsub.f32 %v5777_v24, %v2336_v30 }
 0x48e   :  { %v2845_v55 = vmul.f32 %v2769_v49, %v5778_v1  ;;  %v2846_v0 = vmul.f32 %v2770_v44, %v5779_v25 }
 0x48f   :  { %v5309_v33 = vpop.eup %3626  ;;  %v2557_v62 = vmul.f32 1.442695, %v2421_v12  ;;  %v2559_v60 = vmul.f32 1.442695, %v2422_v47  ;;  %v5784_v47 = vld [vmem:[#allocation36_spill] sm:$0xff] }
 0x490   :  { %v5311_v11 = vpop.eup %3628  ;;  %2921 = vst [vmem:[#allocation11 + $0xd0] sm:$0xff] %v2845_v55 }
 0x491   :  { %2922 = vst [vmem:[#allocation11 + $0xd8] sm:$0xff] %v2846_v0  ;;  %3632 = vpow2.f32 %v2557_v62  ;;  %v2676_v39 = vadd.f32 %v5311_v11, %v5309_v33  ;;  %v5785_v0 = vld [vmem:[#allocation37_spill] sm:$0xff] }
 0x492   :  { %3634 = vpow2.f32 %v2559_v60  ;;  %v5786_v60 = vld [vmem:[#allocation38_spill] sm:$0xff] }
 0x493   :  { %v3631_v22 = vpop.eup %3630  ;;  %2677 = vadd.xlane.f32.xlu1 %v2676_v39 }
 0x494   :  { %v2771_v31 = vmul.f32 %v3631_v22, %v5056_v21  ;;  %v2772_v53 = vmul.f32 %v3631_v22, %v5780_v14  ;;  %v2339_v45 = vpop.xlane.xlu1 %2338  ;;  %v2636_v29 = vpop.xlane.xlu2 %2635  ;;  %v5787_v22 = vld [vmem:[#allocation105_spill] sm:$0xff]  ;;  %v5788_v14 = vld [vmem:[#allocation106_spill] sm:$0xff] }
 0x495   :  { %v2423_v34 = vsub.f32 %v5066_v43, %v2339_v45  ;;  %v2424_v2 = vsub.f32 %v5781_v40, %v2339_v45  ;;  %3636 = vrcp.f32 %v2636_v29 }
 0x496   :  { %v2847_v49 = vmul.f32 %v2771_v31, %v5782_v37  ;;  %v2848_v44 = vmul.f32 %v2772_v53, %v5783_v19 }
 0x497   :  { %v5321_v35 = vpop.eup %3632  ;;  %v2561_v30 = vmul.f32 1.442695, %v2423_v34  ;;  %v2563_v23 = vmul.f32 1.442695, %v2424_v2 }
 0x498   :  { %v5323_v12 = vpop.eup %3634  ;;  %2923 = vst [vmem:[#allocation11 + $0xe0] sm:$0xff] %v2847_v49  ;;  %v5789_v49 = vld [vmem:[#allocation39_spill] sm:$0xff] }
 0x499   :  { %2924 = vst [vmem:[#allocation11 + $0xe8] sm:$0xff] %v2848_v44  ;;  %3638 = vpow2.f32 %v2561_v30  ;;  %v2679_v21 = vadd.f32 %v5323_v12, %v5321_v35  ;;  %v5790_v30 = vld [vmem:[#allocation40_spill] sm:$0xff] }
 0x49a   :  { %3640 = vpow2.f32 %v2563_v23 }
 0x49b   :  { %v3637_v43 = vpop.eup %3636  ;;  %2680 = vadd.xlane.f32.xlu2 %v2679_v21  ;;  %v5791_v21 = vld [vmem:[#allocation41_spill] sm:$0xff] }
 0x49c   :  { %v2773_v24 = vmul.f32 %v3637_v43, %v5074_v41  ;;  %v2774_v1 = vmul.f32 %v3637_v43, %v5784_v47  ;;  %v2342_v55 = vpop.xlane.xlu2 %2341  ;;  %v2639_v25 = vpop.xlane.xlu0 %2638 }
 0x49d   :  { %v2425_v62 = vsub.f32 %v5785_v0, %v2342_v55  ;;  %v2426_v39 = vsub.f32 %v5786_v60, %v2342_v55  ;;  %3642 = vrcp.f32 %v2639_v25 }
 0x49e   :  { %v2849_v31 = vmul.f32 %v2773_v24, %v5787_v22  ;;  %v2850_v53 = vmul.f32 %v2774_v1, %v5788_v14  ;;  %v5792_v24 = vld [vmem:[#allocation107_spill] sm:$0xff]  ;;  %v5793_v1 = vld [vmem:[#allocation108_spill] sm:$0xff] }
 0x49f   :  { %v5333_v45 = vpop.eup %3638  ;;  %v2565_v29 = vmul.f32 1.442695, %v2425_v62  ;;  %v2567_v34 = vmul.f32 1.442695, %v2426_v39 }
 0x4a0   :  { %v5335_v40 = vpop.eup %3640  ;;  %2925 = vst [vmem:[#allocation11 + $0xf0] sm:$0xff] %v2849_v31 }
 0x4a1   :  { %2926 = vst [vmem:[#allocation11 + $0xf8] sm:$0xff] %v2850_v53  ;;  %3644 = vpow2.f32 %v2565_v29  ;;  %v2682_v41 = vadd.f32 %v5335_v40, %v5333_v45 }
 0x4a2   :  { %3646 = vpow2.f32 %v2567_v34 }
 0x4a3   :  { %v3643_v2 = vpop.eup %3642  ;;  %2683 = vadd.xlane.f32.xlu0 %v2682_v41 }
 0x4a4   :  { %v2775_v37 = vmul.f32 %v3643_v2, %v5092_v59  ;;  %v2776_v19 = vmul.f32 %v3643_v2, %v5789_v49  ;;  %v2345_v44 = vpop.xlane.xlu0 %2344 }
 0x4a5   :  { %v2427_v23 = vsub.f32 %v5790_v30, %v2345_v44  ;;  %v2428_v43 = vsub.f32 %v5791_v21, %v2345_v44 }
 0x4a6   :  { %v2851_v47 = vmul.f32 %v2775_v37, %v5792_v24  ;;  %v2852_v55 = vmul.f32 %v2776_v19, %v5793_v1 }
 0x4a7   :  { %v5345_v25 = vpop.eup %3644  ;;  %v2569_v0 = vmul.f32 1.442695, %v2427_v23  ;;  %v2571_v62 = vmul.f32 1.442695, %v2428_v43 }
 0x4a8   :  { %v5347_v60 = vpop.eup %3646  ;;  %2927 = vst [vmem:[#allocation11 + $0x100] sm:$0xff] %v2851_v47 }
 0x4a9   :  { %2928 = vst [vmem:[#allocation11 + $0x108] sm:$0xff] %v2852_v55  ;;  %3648 = vpow2.f32 %v2569_v0  ;;  %v2685_v59 = vadd.f32 %v5347_v60, %v5345_v25 }
 0x4aa   :  { %3650 = vpow2.f32 %v2571_v62  ;;  %v2348_v39 = vpop.xlane.xlu1 %2347 }
 0x4ab   :  { %2686 = vadd.xlane.f32.xlu1 %v2685_v59  ;;  %v2429_v22 = vsub.f32 %v5122_v28, %v2348_v39  ;;  %v2430_v31 = vsub.f32 %v5125_v7, %v2348_v39  ;;  %v5794_v39 = vld [vmem:[#allocation111_spill] sm:$0xff] }
 0x4ad   :  { %v2573_v14 = vmul.f32 1.442695, %v2429_v22  ;;  %v2575_v53 = vmul.f32 1.442695, %v2430_v31  ;;  %v5795_v31 = vld [vmem:[#allocation112_spill] sm:$0xff] }
 0x4af   :  { %v5353_v29 = vpop.eup %3648  ;;  %3652 = vpow2.f32 %v2573_v14 }
 0x4b0   :  { %v5355_v34 = vpop.eup %3650  ;;  %3654 = vpow2.f32 %v2575_v53 }
 0x4b1   :  { %v2688_v41 = vadd.f32 %v5355_v34, %v5353_v29 }
 0x4b2   :  { %v2351_v2 = vpop.xlane.xlu2 %2350 }
 0x4b3   :  { %2689 = vadd.xlane.f32.xlu2 %v2688_v41  ;;  %v2431_v37 = vsub.f32 %v5137_v16, %v2351_v2  ;;  %v2432_v49 = vsub.f32 %v5141_v56, %v2351_v2 }
 0x4b5   :  { %v5361_v28 = vpop.eup %3652  ;;  %v2577_v7 = vmul.f32 1.442695, %v2431_v37  ;;  %v2579_v19 = vmul.f32 1.442695, %v2432_v49 }
 0x4b6   :  { %v5363_v44 = vpop.eup %3654 }
 0x4b7   :  { %3656 = vpow2.f32 %v2577_v7  ;;  %v2691_v30 = vadd.f32 %v5363_v44, %v5361_v28 }
 0x4b8   :  { %3658 = vpow2.f32 %v2579_v19 }
 0x4b9   :  { %2692 = vadd.xlane.f32.xlu0 %v2691_v30 }
 0x4ba   :  { %v2645_v23 = vpop.xlane.xlu2 %2644  ;;  %v2354_v21 = vpop.xlane.xlu0 %2353 }
 0x4bb   :  { %3660 = vrcp.f32 %v2645_v23  ;;  %v2433_v43 = vsub.f32 %v5161_v18, %v2354_v21  ;;  %v2434_v16 = vsub.f32 %v5164_v26, %v2354_v21  ;;  %v5796_v23 = vld [vmem:[#allocation113_spill] sm:$0xff] }
 0x4bd   :  { %v5369_v56 = vpop.eup %3656  ;;  %v2581_v24 = vmul.f32 1.442695, %v2433_v43  ;;  %v2583_v47 = vmul.f32 1.442695, %v2434_v16  ;;  %v5797_v43 = vld [vmem:[#allocation114_spill] sm:$0xff] }
 0x4be   :  { %v5371_v1 = vpop.eup %3658 }
 0x4bf   :  { %3662 = vpow2.f32 %v2581_v24  ;;  %v2694_v55 = vadd.f32 %v5371_v1, %v5369_v56 }
 0x4c0   :  { %3664 = vpow2.f32 %v2583_v47 }
 0x4c1   :  { %v3661_v0 = vpop.eup %3660  ;;  %2695 = vadd.xlane.f32.xlu1 %v2694_v55 }
 0x4c2   :  { %v2779_v62 = vmul.f32 %v3661_v0, %v5150_v27  ;;  %v2780_v59 = vmul.f32 %v3661_v0, %v5155_v15  ;;  %v2648_v18 = vpop.xlane.xlu0 %2647 }
 0x4c3   :  { %3666 = vrcp.f32 %v2648_v18  ;;  %v2360_v26 = vpop.xlane.xlu1 %2359 }
 0x4c4   :  { %v2855_v22 = vmul.f32 %v2779_v62, %v5794_v39  ;;  %v2856_v14 = vmul.f32 %v2780_v59, %v5795_v31  ;;  %v2435_v53 = vsub.f32 %v5180_v63, %v2360_v26  ;;  %v2436_v41 = vsub.f32 %v5187_v20, %v2360_v26  ;;  %v5799_v26 = vld [vmem:[#allocation118_spill] sm:$0xff] }
 0x4c5   :  { %v5381_v2 = vpop.eup %3662 }
 0x4c6   :  { %v5383_v37 = vpop.eup %3664  ;;  %2931 = vst [vmem:[#allocation11 + $0x120] sm:$0xff] %v2855_v22  ;;  %v2585_v49 = vmul.f32 1.442695, %v2435_v53  ;;  %v2587_v27 = vmul.f32 1.442695, %v2436_v41  ;;  %v2654_v7 = vpop.xlane.xlu2 %2653 }
 0x4c7   :  { %2932 = vst [vmem:[#allocation11 + $0x128] sm:$0xff] %v2856_v14  ;;  %3668 = vrcp.f32 %v2654_v7  ;;  %v2697_v15 = vadd.f32 %v5383_v37, %v5381_v2  ;;  %v5801_v7 = vld [vmem:[#allocation110_spill] sm:$0xff] }
 0x4c8   :  { %3670 = vpow2.f32 %v2585_v49  ;;  %v5800_v49 = vld [vmem:[#allocation109_spill] sm:$0xff] }
 0x4c9   :  { %v3667_v19 = vpop.eup %3666  ;;  %3672 = vpow2.f32 %v2587_v27  ;;  %2698 = vadd.xlane.f32.xlu2 %v2697_v15 }
 0x4ca   :  { %v2781_v63 = vmul.f32 %v3667_v19, %v5177_v3  ;;  %v2782_v20 = vmul.f32 %v3667_v19, %v5182_v10  ;;  %v5798_v10 = vld [vmem:[#allocation117_spill] sm:$0xff] }
 0x4cb   :  { %v2642_v30 = vpop.xlane.xlu1 %2641 }
 0x4cc   :  { %v2857_v21 = vmul.f32 %v2781_v63, %v5796_v23  ;;  %v2858_v16 = vmul.f32 %v2782_v20, %v5797_v43  ;;  %3674 = vrcp.f32 %v2642_v30  ;;  %v5802_v20 = vld [vmem:[#allocation119_spill] sm:$0xff]  ;;  %v5803_v23 = vld [vmem:[#allocation120_spill] sm:$0xff] }
 0x4cd   :  { %v3669_v24 = vpop.eup %3668 }
 0x4ce   :  { %v5391_v47 = vpop.eup %3670  ;;  %2933 = vst [vmem:[#allocation11 + $0x130] sm:$0xff] %v2857_v21  ;;  %v2785_v55 = vmul.f32 %v3669_v24, %v5203_v52  ;;  %v2786_v0 = vmul.f32 %v3669_v24, %v5205_v42  ;;  %v2657_v62 = vpop.xlane.xlu0 %2656  ;;  %v5804_v24 = vld [vmem:[#allocation115_spill] sm:$0xff] }
 0x4cf   :  { %v5395_v59 = vpop.eup %3672  ;;  %2934 = vst [vmem:[#allocation11 + $0x138] sm:$0xff] %v2858_v16  ;;  %3676 = vrcp.f32 %v2657_v62  ;;  %v2700_v3 = vsel %vm2355_vm0, %v5391_v47, 0.0 }
 0x4d0   :  { %v2861_v18 = vmul.f32 %v2785_v55, %v5798_v10  ;;  %v2862_v39 = vmul.f32 %v2786_v0, %v5799_v26  ;;  %v2701_v22 = vsel %vm2355_vm0, %v5395_v59, 0.0  ;;  %v5806_v26 = vld [vmem:[#allocation121_spill] sm:$0xff] }
 0x4d1   :  { %v2702_v31 = vadd.f32 %v2701_v22, %v2700_v3 }
 0x4d2   :  { %v3675_v14 = vpop.eup %3674  ;;  %2937 = vst [vmem:[#allocation11 + $0x150] sm:$0xff] %v2861_v18 }
 0x4d3   :  { %2938 = vst [vmem:[#allocation11 + $0x158] sm:$0xff] %v2862_v39  ;;  %v2777_v52 = vmul.f32 %v3675_v14, %v5199_v6  ;;  %v2778_v42 = vmul.f32 %v3675_v14, %v5207_v32  ;;  %2703 = vadd.xlane.f32.xlu0 %v2702_v31  ;;  %v2651_v53 = vpop.xlane.xlu1 %2650  ;;  %v5807_v39 = vld [vmem:[#allocation122_spill] sm:$0xff] }
 0x4d4   :  { %3678 = vrcp.f32 %v2651_v53  ;;  %v5809_v53 = vld [vmem:[#allocation124_spill] sm:$0xff] }
 0x4d5   :  { %v3677_v41 = vpop.eup %3676  ;;  %v2853_v27 = vmul.f32 %v2777_v52, %v5800_v49  ;;  %v2854_v15 = vmul.f32 %v2778_v42, %v5801_v7  ;;  %v5808_v52 = vld [vmem:[#allocation123_spill] sm:$0xff] }
 0x4d6   :  { %v2787_v19 = vmul.f32 %v3677_v41, %v5219_v4  ;;  %v2788_v63 = vmul.f32 %v3677_v41, %v5221_v36  ;;  %v5805_v4 = vld [vmem:[#allocation116_spill] sm:$0xff] }
 0x4d7   :  { %2929 = vst [vmem:[#allocation11 + $0x110] sm:$0xff] %v2853_v27 }
 0x4d8   :  { %2930 = vst [vmem:[#allocation11 + $0x118] sm:$0xff] %v2854_v15  ;;  %v2863_v30 = vmul.f32 %v2787_v19, %v5802_v20  ;;  %v2864_v6 = vmul.f32 %v2788_v63, %v5803_v23  ;;  %v5812_v23 = vld [vmem:[#allocation127_spill] sm:$0xff] }
 0x4da   :  { %v3679_v21 = vpop.eup %3678  ;;  %2939 = vst [vmem:[#allocation11 + $0x160] sm:$0xff] %v2863_v30 }
 0x4db   :  { %2940 = vst [vmem:[#allocation11 + $0x168] sm:$0xff] %v2864_v6  ;;  %v2783_v32 = vmul.f32 %v3679_v21, %v5223_v46  ;;  %v2784_v43 = vmul.f32 %v3679_v21, %v5227_v54  ;;  %v2660_v16 = vpop.xlane.xlu1 %2659 }
 0x4dc   :  { %3680 = vrcp.f32 %v2660_v16 }
 0x4dd   :  { %v2859_v55 = vmul.f32 %v2783_v32, %v5804_v24  ;;  %v2860_v0 = vmul.f32 %v2784_v43, %v5805_v4  ;;  %v5814_v24 = vld [vmem:[#allocation129_spill] sm:$0xff] }
 0x4de   :  { %v2663_v36 = vpop.xlane.xlu2 %2662 }
 0x4df   :  { %2935 = vst [vmem:[#allocation11 + $0x140] sm:$0xff] %v2859_v55  ;;  %3682 = vrcp.f32 %v2663_v36 }
 0x4e0   :  { %2936 = vst [vmem:[#allocation11 + $0x148] sm:$0xff] %v2860_v0 }
 0x4e2   :  { %v3681_v62 = vpop.eup %3680 }
 0x4e3   :  { %v2789_v3 = vmul.f32 %v3681_v62, %v5237_v48  ;;  %v2790_v10 = vmul.f32 %v3681_v62, %v5239_v57 }
 0x4e5   :  { %v3683_v18 = vpop.eup %3682  ;;  %v2865_v46 = vmul.f32 %v2789_v3, %v5806_v26  ;;  %v2866_v54 = vmul.f32 %v2790_v10, %v5807_v39  ;;  %v5816_v3 = vld [vmem:[#allocation131_spill] sm:$0xff] }
 0x4e6   :  { %v2791_v22 = vmul.f32 %v3683_v18, %v5249_v9  ;;  %v2792_v31 = vmul.f32 %v3683_v18, %v5251_v8  ;;  %v2666_v14 = vpop.xlane.xlu0 %2665  ;;  %v5810_v9 = vld [vmem:[#allocation125_spill] sm:$0xff]  ;;  %v5811_v8 = vld [vmem:[#allocation126_spill] sm:$0xff] }
 0x4e7   :  { %2941 = vst [vmem:[#allocation11 + $0x170] sm:$0xff] %v2865_v46  ;;  %3684 = vrcp.f32 %v2666_v14 }
 0x4e8   :  { %2942 = vst [vmem:[#allocation11 + $0x178] sm:$0xff] %v2866_v54  ;;  %v2867_v42 = vmul.f32 %v2791_v22, %v5808_v52  ;;  %v2868_v41 = vmul.f32 %v2792_v31, %v5809_v53  ;;  %v5818_v54 = vld [vmem:[#allocation133_spill] sm:$0xff]  ;;  %v5820_v53 = vld [vmem:[#allocation135_spill] sm:$0xff] }
 0x4ea   :  { %2943 = vst [vmem:[#allocation11 + $0x180] sm:$0xff] %v2867_v42 }
 0x4eb   :  { %2944 = vst [vmem:[#allocation11 + $0x188] sm:$0xff] %v2868_v41 }
 0x4ed   :  { %v3685_v48 = vpop.eup %3684 }
 0x4ee   :  { %v2793_v57 = vmul.f32 %v3685_v48, %v5261_v50  ;;  %v2794_v49 = vmul.f32 %v3685_v48, %v5263_v58  ;;  %v2669_v27 = vpop.xlane.xlu1 %2668  ;;  %v5813_v50 = vld [vmem:[#allocation128_spill] sm:$0xff] }
 0x4ef   :  { %3686 = vrcp.f32 %v2669_v27 }
 0x4f0   :  { %v2869_v7 = vmul.f32 %v2793_v57, %v5810_v9  ;;  %v2870_v15 = vmul.f32 %v2794_v49, %v5811_v8  ;;  %v5822_v9 = vld [vmem:[#allocation137_spill] sm:$0xff] }
 0x4f2   :  { %2945 = vst [vmem:[#allocation11 + $0x190] sm:$0xff] %v2869_v7 }
 0x4f3   :  { %2946 = vst [vmem:[#allocation11 + $0x198] sm:$0xff] %v2870_v15 }
 0x4f5   :  { %v3687_v19 = vpop.eup %3686 }
 0x4f6   :  { %v2795_v63 = vmul.f32 %v3687_v19, %v5273_v5  ;;  %v2796_v20 = vmul.f32 %v3687_v19, %v5275_v17  ;;  %v2672_v30 = vpop.xlane.xlu2 %2671  ;;  %v5815_v5 = vld [vmem:[#allocation130_spill] sm:$0xff] }
 0x4f7   :  { %3688 = vrcp.f32 %v2672_v30 }
 0x4f8   :  { %v2871_v6 = vmul.f32 %v2795_v63, %v5812_v23  ;;  %v2872_v21 = vmul.f32 %v2796_v20, %v5813_v50  ;;  %v5824_v20 = vld [vmem:[#allocation139_spill] sm:$0xff] }
 0x4fa   :  { %2947 = vst [vmem:[#allocation11 + $0x1a0] sm:$0xff] %v2871_v6 }
 0x4fb   :  { %2948 = vst [vmem:[#allocation11 + $0x1a8] sm:$0xff] %v2872_v21 }
 0x4fd   :  { %v3689_v58 = vpop.eup %3688 }
 0x4fe   :  { %v2797_v32 = vmul.f32 %v3689_v58, %v5285_v38  ;;  %v2798_v43 = vmul.f32 %v3689_v58, %v5287_v61  ;;  %v2675_v16 = vpop.xlane.xlu0 %2674  ;;  %v5817_v38 = vld [vmem:[#allocation132_spill] sm:$0xff]  ;;  %v5826_v58 = vld [vmem:[#allocation141_spill] sm:$0xff] }
 0x4ff   :  { %3690 = vrcp.f32 %v2675_v16 }
 0x500   :  { %v2873_v55 = vmul.f32 %v2797_v32, %v5814_v24  ;;  %v2874_v4 = vmul.f32 %v2798_v43, %v5815_v5  ;;  %v5828_v5 = vld [vmem:[#allocation143_spill] sm:$0xff] }
 0x502   :  { %2949 = vst [vmem:[#allocation11 + $0x1b0] sm:$0xff] %v2873_v55 }
 0x503   :  { %2950 = vst [vmem:[#allocation11 + $0x1b8] sm:$0xff] %v2874_v4 }
 0x505   :  { %v3691_v17 = vpop.eup %3690 }
 0x506   :  { %v2799_v0 = vmul.f32 %v3691_v17, %v5297_v51  ;;  %v2800_v36 = vmul.f32 %v3691_v17, %v5299_v13  ;;  %v2678_v62 = vpop.xlane.xlu1 %2677  ;;  %v5819_v51 = vld [vmem:[#allocation134_spill] sm:$0xff]  ;;  %v5829_v17 = vld [vmem:[#allocation144_spill] sm:$0xff] }
 0x507   :  { %3692 = vrcp.f32 %v2678_v62 }
 0x508   :  { %v2875_v10 = vmul.f32 %v2799_v0, %v5816_v3  ;;  %v2876_v18 = vmul.f32 %v2800_v36, %v5817_v38  ;;  %v5830_v3 = vld [vmem:[#allocation145_spill] sm:$0xff] }
 0x50a   :  { %2951 = vst [vmem:[#allocation11 + $0x1c0] sm:$0xff] %v2875_v10 }
 0x50b   :  { %2952 = vst [vmem:[#allocation11 + $0x1c8] sm:$0xff] %v2876_v18 }
 0x50d   :  { %v3693_v61 = vpop.eup %3692 }
 0x50e   :  { %v2801_v26 = vmul.f32 %v3693_v61, %v5309_v33  ;;  %v2802_v46 = vmul.f32 %v3693_v61, %v5311_v11  ;;  %v2681_v39 = vpop.xlane.xlu2 %2680  ;;  %v5821_v33 = vld [vmem:[#allocation136_spill] sm:$0xff] }
 0x50f   :  { %3694 = vrcp.f32 %v2681_v39  ;;  %v5833_v39 = vld [vmem:[#allocation148_spill] sm:$0xff] }
 0x510   :  { %v2877_v22 = vmul.f32 %v2801_v26, %v5818_v54  ;;  %v2878_v31 = vmul.f32 %v2802_v46, %v5819_v51  ;;  %v5832_v26 = vld [vmem:[#allocation147_spill] sm:$0xff] }
 0x512   :  { %2953 = vst [vmem:[#allocation11 + $0x1d0] sm:$0xff] %v2877_v22 }
 0x513   :  { %2954 = vst [vmem:[#allocation11 + $0x1d8] sm:$0xff] %v2878_v31  ;;  %v5835_v31 = vld [vmem:[#allocation150_spill] sm:$0xff] }
 0x515   :  { %v3695_v13 = vpop.eup %3694 }
 0x516   :  { %v2803_v14 = vmul.f32 %v3695_v13, %v5321_v35  ;;  %v2804_v52 = vmul.f32 %v3695_v13, %v5323_v12  ;;  %v2684_v42 = vpop.xlane.xlu0 %2683  ;;  %v5823_v35 = vld [vmem:[#allocation138_spill] sm:$0xff] }
 0x517   :  { %3696 = vrcp.f32 %v2684_v42 }
 0x518   :  { %v2879_v41 = vmul.f32 %v2803_v14, %v5820_v53  ;;  %v2880_v48 = vmul.f32 %v2804_v52, %v5821_v33 }
 0x51a   :  { %2955 = vst [vmem:[#allocation11 + $0x1e0] sm:$0xff] %v2879_v41 }
 0x51b   :  { %2956 = vst [vmem:[#allocation11 + $0x1e8] sm:$0xff] %v2880_v48 }
 0x51d   :  { %v3697_v11 = vpop.eup %3696 }
 0x51e   :  { %v2805_v57 = vmul.f32 %v3697_v11, %v5333_v45  ;;  %v2806_v49 = vmul.f32 %v3697_v11, %v5335_v40  ;;  %v2687_v27 = vpop.xlane.xlu1 %2686  ;;  %v5825_v45 = vld [vmem:[#allocation140_spill] sm:$0xff] }
 0x51f   :  { %3698 = vrcp.f32 %v2687_v27 }
 0x520   :  { %v2881_v7 = vmul.f32 %v2805_v57, %v5822_v9  ;;  %v2882_v8 = vmul.f32 %v2806_v49, %v5823_v35 }
 0x522   :  { %2957 = vst [vmem:[#allocation11 + $0x1f0] sm:$0xff] %v2881_v7 }
 0x523   :  { %2958 = vst [vmem:[#allocation11 + $0x1f8] sm:$0xff] %v2882_v8 }
 0x525   :  { %v3699_v12 = vpop.eup %3698 }
 0x526   :  { %v2807_v15 = vmul.f32 %v3699_v12, %v5345_v25  ;;  %v2808_v19 = vmul.f32 %v3699_v12, %v5347_v60  ;;  %v2690_v63 = vpop.xlane.xlu2 %2689  ;;  %v5827_v25 = vld [vmem:[#allocation142_spill] sm:$0xff] }
 0x527   :  { %3700 = vrcp.f32 %v2690_v63 }
 0x528   :  { %v2883_v30 = vmul.f32 %v2807_v15, %v5824_v20  ;;  %v2884_v23 = vmul.f32 %v2808_v19, %v5825_v45 }
 0x52a   :  { %2959 = vst [vmem:[#allocation11 + $0x200] sm:$0xff] %v2883_v30 }
 0x52b   :  { %2960 = vst [vmem:[#allocation11 + $0x208] sm:$0xff] %v2884_v23 }
 0x52c   :  { %v2693_v40 = vpop.xlane.xlu0 %2692 }
 0x52d   :  { %v3701_v6 = vpop.eup %3700  ;;  %3702 = vrcp.f32 %v2693_v40 }
 0x52e   :  { %v2809_v50 = vmul.f32 %v3701_v6, %v5353_v29  ;;  %v2810_v21 = vmul.f32 %v3701_v6, %v5355_v34 }
 0x530   :  { %v2885_v32 = vmul.f32 %v2809_v50, %v5826_v58  ;;  %v2886_v43 = vmul.f32 %v2810_v21, %v5827_v25 }
 0x532   :  { %2961 = vst [vmem:[#allocation11 + $0x210] sm:$0xff] %v2885_v32 }
 0x533   :  { %v3703_v60 = vpop.eup %3702  ;;  %2962 = vst [vmem:[#allocation11 + $0x218] sm:$0xff] %v2886_v43 }
 0x534   :  { %v2811_v16 = vmul.f32 %v3703_v60, %v5361_v28  ;;  %v2812_v24 = vmul.f32 %v3703_v60, %v5363_v44  ;;  %v2696_v55 = vpop.xlane.xlu1 %2695  ;;  %v5831_v28 = vld [vmem:[#allocation146_spill] sm:$0xff] }
 0x535   :  { %3704 = vrcp.f32 %v2696_v55 }
 0x536   :  { %v2887_v4 = vmul.f32 %v2811_v16, %v5828_v5  ;;  %v2888_v0 = vmul.f32 %v2812_v24, %v5829_v17 }
 0x538   :  { %2963 = vst [vmem:[#allocation11 + $0x220] sm:$0xff] %v2887_v4 }
 0x539   :  { %2964 = vst [vmem:[#allocation11 + $0x228] sm:$0xff] %v2888_v0 }
 0x53b   :  { %v3705_v29 = vpop.eup %3704 }
 0x53c   :  { %v2813_v34 = vmul.f32 %v3705_v29, %v5369_v56  ;;  %v2814_v36 = vmul.f32 %v3705_v29, %v5371_v1  ;;  %v2699_v62 = vpop.xlane.xlu2 %2698 }
 0x53d   :  { %3706 = vrcp.f32 %v2699_v62 }
 0x53e   :  { %v2889_v10 = vmul.f32 %v2813_v34, %v5830_v3  ;;  %v2890_v38 = vmul.f32 %v2814_v36, %v5831_v28 }
 0x540   :  { %2965 = vst [vmem:[#allocation11 + $0x230] sm:$0xff] %v2889_v10 }
 0x541   :  { %2966 = vst [vmem:[#allocation11 + $0x238] sm:$0xff] %v2890_v38 }
 0x543   :  { %v3707_v44 = vpop.eup %3706 }
 0x544   :  { %v2815_v18 = vmul.f32 %v3707_v44, %v5381_v2  ;;  %v2816_v61 = vmul.f32 %v3707_v44, %v5383_v37  ;;  %v5834_v2 = vld [vmem:[#allocation149_spill] sm:$0xff] }
 0x546   :  { %v2891_v46 = vmul.f32 %v2815_v18, %v5832_v26  ;;  %v2892_v54 = vmul.f32 %v2816_v61, %v5833_v39  ;;  %v2704_v56 = vpop.xlane.xlu0 %2703 }
 0x547   :  { %3708 = vrcp.f32 %v2704_v56 }
 0x548   :  { %2967 = vst [vmem:[#allocation11 + $0x240] sm:$0xff] %v2891_v46 }
 0x549   :  { %2968 = vst [vmem:[#allocation11 + $0x248] sm:$0xff] %v2892_v54 }
 0x54d   :  { %v3709_v1 = vpop.eup %3708 }
 0x54e   :  { %v2817_v22 = vmul.f32 %v3709_v1, %v5391_v47  ;;  %v2818_v51 = vmul.f32 %v3709_v1, %v5395_v59 }
 0x550   :  { %v2893_v37 = vmul.f32 %v2817_v22, %v5834_v2  ;;  %v2894_v13 = vmul.f32 %v2818_v51, %v5835_v31 }
 0x552   :  { %2969 = vst [vmem:[#allocation11 + $0x250] sm:$0xf] %v2893_v37 }
 0x553   :  { %2970 = vst [vmem:[#allocation11 + $0x258] sm:$0xf] %v2894_v13 }
 0x554   :  { %2983 = dma.vmem_to_hbm [thread:$0]  %s2976_s23, 9728, %s2978_s26, [#allocation4], %s3864_s29, %s3864_s29, %s3865_s30  }
 0x555   :  { %3861 = dma.done.wait [#allocation4], 9728  }
 0x556   :  { %3862 = vsyncadd [#allocation4], 4294957568 }
 0x557   :  { %2988 = vsyncpa [#allocation3], 1 }
 0x558   :  { %2989 = vsyncpa [#allocation6], 1 }
 0x559   :  { %2990 = vsyncpa [#allocation9], 1 }
 0x55a   :  { %2991 = vsyncpa [#allocation4], 1 }

</bundles_post_ra>
